<compile_context>
chip_gen: v5e
topology: v5e:2x2
jax: 0.10.0
libtpu: 0.0.40
codegen_flags: <defaults>
</compile_context>

<pallas_src>
import jax
import jax.numpy as jnp
from jax.experimental import pallas as pl
from jax.experimental.pallas import tpu as pltpu

EPS = 1e-5
LANE = 128


def _round_up(x, m):
    return (x + m - 1) // m * m


def _pad_channels(c):
    # Lane-pad to 128 only when the channel count is already large; small
    # counts stay narrow (multiple of 8) so K / intermediate HBM bytes aren't
    # inflated (review item 5).
    return _round_up(c, LANE) if c >= 96 else _round_up(c, 8)


# --------------------------------------------------------------------------
# In-kernel conv helper: grouped-tap accumulation (no materialized im2col).
# --------------------------------------------------------------------------
def _conv3x3_rows(xp, w_ref, H, W, Ci, Co):
    """3x3 'same' conv as 3 matmuls (one per kernel row), K = 3*Ci each.

    xp:    (H+2, W+2, Ci) bf16 value with a 1-px zero halo.
    w_ref: (9*Ci, Co) bf16 ref, rows ordered (dy, dx, ci).
    Returns a (H*W, Co) f32 accumulator (bias NOT added).
    """
    acc = None
    for dy in range(3):
        # bf16 LHS for this kernel row: [dx=0 | dx=1 | dx=2] channel blocks.
        lhs = jnp.concatenate(
            [xp[dy:dy + H, dx:dx + W, :] for dx in range(3)],
            axis=-1).reshape(H * W, 3 * Ci)
        part = jnp.dot(lhs, w_ref[dy * 3 * Ci:(dy + 1) * 3 * Ci, :],
                       preferred_element_type=jnp.float32)
        acc = part if acc is None else acc + part
    return acc


def _partial_stats(y, hw):
    """y: (H*W, C) f32 -> (2, C) rows = [sum, centered sum of squares]."""
    s = jnp.sum(y, axis=0, keepdims=True)
    mu = s * (1.0 / hw)
    d = y - mu
    m2 = jnp.sum(d * d, axis=0, keepdims=True)
    return jnp.concatenate([s, m2], axis=0)


# --------------------------------------------------------------------------
# Kernel bodies (one batch sample per grid step, grid marked "parallel").
# --------------------------------------------------------------------------
def _conv1_kernel(x_ref, w_ref, b_ref, y_ref, s_ref):
    """conv1 + bias; emits bf16 y1 and per-sample BN1 partial stats."""
    Hp, Wp, Ci = x_ref.shape
    H, W = Hp - 2, Wp - 2
    Co = y_ref.shape[-1]
    y = _conv3x3_rows(x_ref[...], w_ref, H, W, Ci, Co) + b_ref[...]
    y_ref[...] = y.reshape(H, W, Co).astype(y_ref.dtype)
    s_ref[...] = _partial_stats(y, H * W)


def _bn_relu_conv2_kernel(y1_ref, v_ref, w_ref, y_ref, s_ref):
    """BN1(train) + ReLU + conv2 + bias; emits bf16 y2 and BN2 partial stats.

    v_ref rows: [mean1, rstd1, gamma1, beta1, bias2].
    """
    H, W, C = y1_ref.shape
    v = v_ref[...]
    z = (y1_ref[...].astype(jnp.float32) - v[0:1]) * (v[1:2] * v[2:3]) + v[3:4]
    # NOTE: padded channels come out exactly 0 here only because gamma/beta/
    # bias are zero-padded (rstd of a padded lane is 1/sqrt(eps)); w2's padded
    # rows are zero too, so nothing can leak even if that changed.
    z = jnp.maximum(z, 0.0).astype(jnp.bfloat16)
    zrow = jnp.zeros((1, W, C), jnp.bfloat16)
    zcol = jnp.zeros((H + 2, 1, C), jnp.bfloat16)
    zp = jnp.concatenate(
        [zcol, jnp.concatenate([zrow, z, zrow], axis=0), zcol], axis=1)
    y = _conv3x3_rows(zp, w_ref, H, W, C, C) + v[4:5]
    y_ref[...] = y.reshape(H, W, C).astype(y_ref.dtype)
    s_ref[...] = _partial_stats(y, H * W)


def _bn_relu_out_kernel(y2_ref, v_ref, o_ref):
    """BN2(train) + ReLU; writes only the real Cout channels, in f32.

    v_ref rows: [mean2, rstd2, gamma2, beta2].
    """
    Co = o_ref.shape[-1]
    v = v_ref[...]
    z = (y2_ref[...].astype(jnp.float32) - v[0:1]) * (v[1:2] * v[2:3]) + v[3:4]
    o_ref[...] = jnp.maximum(z, 0.0)[..., :Co].astype(o_ref.dtype)


# --------------------------------------------------------------------------
# Host-side helpers
# --------------------------------------------------------------------------
def _prep_weight(w_oihw, cin_p, cout_p):
    """OIHW (Co, Ci, 3, 3) -> (9*cin_p, cout_p) bf16, rows ordered (dy, dx, ci)
    to match the per-row LHS concatenation inside the kernels."""
    co, ci = w_oihw.shape[0], w_oihw.shape[1]
    w = jnp.transpose(w_oihw, (2, 3, 1, 0))                  # (dy, dx, ci, co)
    w = jnp.pad(w, ((0, 0), (0, 0), (0, cin_p - ci), (0, cout_p - co)))
    return w.reshape(9 * cin_p, cout_p).astype(jnp.bfloat16)


def _prep_vec(v, cout_p):
    # Padded channels MUST be zero (gamma/beta/bias = 0) -> padded BN lanes = 0.
    return jnp.pad(v.astype(jnp.float32), (0, cout_p - v.shape[0])).reshape(1, cout_p)


def _finalize_bn_stats(stats, hw):
    """stats: (N, 2, C) per-sample [sum, centered M2] -> (mean, rstd), each (1, C).

    Chan-style parallel-variance combine (stable vs. E[x^2]-E[x]^2)."""
    n = stats.shape[0]
    count = n * hw
    sums = stats[:, 0, :]                                    # (N, C)
    m2s = stats[:, 1, :]                                     # (N, C)
    mean = jnp.sum(sums, axis=0) / count
    mu_i = sums / hw
    var = (jnp.sum(m2s, axis=0)
           + hw * jnp.sum((mu_i - mean[None, :]) ** 2, axis=0)) / count
    rstd = jax.lax.rsqrt(jnp.maximum(var, 0.0) + EPS)
    return mean[None, :], rstd[None, :]


def _vmem_limit(bytes_needed):
    try:
        cap = int(getattr(pltpu.get_tpu_info(), "vmem_capacity_bytes", 64 << 20))
    except Exception:
        cap = 64 << 20
    return int(min(max(bytes_needed, 16 << 20), int(cap * 0.9)))


def _compiler_params(vmem_bytes):
    return pltpu.CompilerParams(dimension_semantics=("parallel",),
                                vmem_limit_bytes=_vmem_limit(vmem_bytes))


def double_conv_pallas(x_nchw, params):
    """x_nchw: (N, Cin, H, W) f32 -> (N, Cout, H, W) f32 (training-mode BN)."""
    w1, b1, g1, be1, w2, b2, g2, be2 = params
    N, Cin, H, W = x_nchw.shape
    Cout = w1.shape[0]
    Cinp = _pad_channels(Cin)
    Cp = _pad_channels(Cout)
    hw = H * W

    # NCHW -> NHWC, 1-px spatial halo, pad channels, bf16 (conv LHS dtype).
    x = jnp.transpose(x_nchw, (0, 2, 3, 1))
    x = jnp.pad(x, ((0, 0), (1, 1), (1, 1), (0, Cinp - Cin))).astype(jnp.bfloat16)

    w1m = _prep_weight(w1, Cinp, Cp)                         # (9*Cinp, Cp) bf16
    w2m = _prep_weight(w2, Cp, Cp)                           # (9*Cp,   Cp) bf16
    b1r, b2r = _prep_vec(b1, Cp), _prep_vec(b2, Cp)
    g1r, be1r = _prep_vec(g1, Cp), _prep_vec(be1, Cp)
    g2r, be2r = _prep_vec(g2, Cp), _prep_vec(be2, Cp)

    bf16, f32 = jnp.bfloat16, jnp.float32
    y_shape = jax.ShapeDtypeStruct((N, H, W, Cp), bf16)      # bf16 intermediates
    s_shape = jax.ShapeDtypeStruct((N, 2, Cp), f32)
    o_shape = jax.ShapeDtypeStruct((N, H, W, Cout), f32)     # only real channels

    img_spec = lambda c: pl.BlockSpec((None, H, W, c), lambda n: (n, 0, 0, 0))
    stat_spec = pl.BlockSpec((None, 2, Cp), lambda n: (n, 0, 0))
    const_spec = lambda a: pl.BlockSpec(a.shape, lambda n: (0, 0))

    # Per-step VMEM: double-buffered I/O blocks at 2x, weights at 2x (default
    # pipelining), live temporaries (one tap-group bf16 LHS + f32 acc) at ~2x.
    xblk = (H + 2) * (W + 2) * Cinp * 2
    yblk = hw * Cp * 2
    oblk = hw * Cout * 4
    w1b, w2b = 9 * Cinp * Cp * 2, 9 * Cp * Cp * 2
    lhs1, lhs2 = hw * 3 * Cinp * 2, hw * 3 * Cp * 2
    accb = hw * Cp * 4
    slack = 4 << 20
    a_vmem = 2 * (xblk + yblk) + 2 * w1b + 2 * (lhs1 + accb) + slack
    b_vmem = (2 * (2 * yblk) + 2 * w2b + (H + 2) * (W + 2) * Cp * 2
              + 2 * (lhs2 + accb) + slack)
    c_vmem = 2 * (yblk + oblk) + 2 * accb + slack

    # ---- stage A: conv1 + bias, per-sample partial BN1 stats ---------------
    y1, s1 = pl.pallas_call(
        _conv1_kernel,
        grid=(N,),
        in_specs=[pl.BlockSpec((None, H + 2, W + 2, Cinp),
                               lambda n: (n, 0, 0, 0)),
                  const_spec(w1m), const_spec(b1r)],
        out_specs=[img_spec(Cp), stat_spec],
        out_shape=[y_shape, s_shape],
        compiler_params=_compiler_params(a_vmem),
    )(x, w1m, b1r)
    mean1, rstd1 = _finalize_bn_stats(s1, hw)

    # ---- stage B: BN1 + ReLU + conv2 + bias, partial BN2 stats -------------
    vecs1 = jnp.concatenate([mean1, rstd1, g1r, be1r, b2r], axis=0)  # (5, Cp)
    y2, s2 = pl.pallas_call(
        _bn_relu_conv2_kernel,
        grid=(N,),
        in_specs=[img_spec(Cp), const_spec(vecs1), const_spec(w2m)],
        out_specs=[img_spec(Cp), stat_spec],
        out_shape=[y_shape, s_shape],
        compiler_params=_compiler_params(b_vmem),
    )(y1, vecs1, w2m)
    mean2, rstd2 = _finalize_bn_stats(s2, hw)

    # ---- stage C: BN2 + ReLU (writes only the real Cout channels) ----------
    vecs2 = jnp.concatenate([mean2, rstd2, g2r, be2r], axis=0)       # (4, Cp)
    out = pl.pallas_call(
        _bn_relu_out_kernel,
        grid=(N,),
        in_specs=[img_spec(Cp), const_spec(vecs2)],
        out_specs=img_spec(Cout),
        out_shape=o_shape,
        compiler_params=_compiler_params(c_vmem),
    )(y2, vecs2)

    # NHWC -> NCHW (module contract).
    return jnp.transpose(out, (0, 3, 1, 2))


# --------------------------------------------------------------------------
# Pure-JAX reference (PyTorch DoubleConv.forward, training-mode BN).
# The kernel uses bf16 MXU operands + bf16 inter-stage activations with f32
# accumulation/stats, so the check uses a bf16-operand reference and a
# tolerance sized for bf16 rounding of the activations.
# --------------------------------------------------------------------------
def double_conv_ref(x_nchw, params, conv_dtype=jnp.float32):
    w1, b1, g1, be1, w2, b2, g2, be2 = params

    def conv(x, w, b):
        y = jax.lax.conv_general_dilated(
            x.astype(conv_dtype), w.astype(conv_dtype),
            window_strides=(1, 1), padding=((1, 1), (1, 1)),
            dimension_numbers=("NCHW", "OIHW", "NCHW"),
            preferred_element_type=jnp.float32)
        return y + b[None, :, None, None]

    def bn_relu(y, g, be):
        mean = jnp.mean(y, axis=(0, 2, 3), keepdims=True)
        var = jnp.mean((y - mean) ** 2, axis=(0, 2, 3), keepdims=True)
        yhat = (y - mean) * jax.lax.rsqrt(var + EPS)
        return jnp.maximum(yhat * g[None, :, None, None]
                           + be[None, :, None, None], 0.0)

    y = bn_relu(conv(x_nchw, w1, b1), g1, be1)
    return bn_relu(conv(y, w2, b2), g2, be2)


def make_params(key, in_channels, out_channels):
    k = jax.random.split(key, 8)
    w1 = 0.1 * jax.random.normal(k[0], (out_channels, in_channels, 3, 3), jnp.float32)
    b1 = 0.1 * jax.random.normal(k[1], (out_channels,), jnp.float32)
    g1 = 1.0 + 0.1 * jax.random.normal(k[2], (out_channels,), jnp.float32)
    be1 = 0.1 * jax.random.normal(k[3], (out_channels,), jnp.float32)
    w2 = 0.1 * jax.random.normal(k[4], (out_channels, out_channels, 3, 3), jnp.float32)
    b2 = 0.1 * jax.random.normal(k[5], (out_channels,), jnp.float32)
    g2 = 1.0 + 0.1 * jax.random.normal(k[6], (out_channels,), jnp.float32)
    be2 = 0.1 * jax.random.normal(k[7], (out_channels,), jnp.float32)
    return (w1, b1, g1, be1, w2, b2, g2, be2)


if __name__ == "__main__":
    key = jax.random.PRNGKey(0)
    kx, kp = jax.random.split(key)

    N, Cin, Cout, H, W = 2, 4, 8, 16, 16
    x = jax.random.normal(kx, (N, Cin, H, W), jnp.float32)
    params = make_params(kp, Cin, Cout)

    out = jax.block_until_ready(jax.jit(double_conv_pallas)(x, params))
    ref = jax.block_until_ready(
        double_conv_ref(x, params, conv_dtype=jnp.bfloat16))

    assert out.shape == (N, Cout, H, W), out.shape
    err = jnp.abs(out - ref)
    max_err, mean_err = float(jnp.max(err)), float(jnp.mean(err))
    # bf16 MXU operands + bf16 inter-stage activations => relaxed tolerance;
    # a structural bug (misaligned taps, wrong stats) produces O(1) errors.
    assert mean_err < 2e-2 and max_err < 1.2e-1, (max_err, mean_err)
    print("KERNEL_OK")
</pallas_src>

<mosaic_0001>
module attributes {stable_mosaic.version = 11 : i64} {
  func.func @_conv1_kernel(%arg0: i32, %arg1: memref<1x18x18x8xbf16, #tpu.memory_space<vmem>>, %arg2: memref<72x8xbf16, #tpu.memory_space<vmem>>, %arg3: memref<1x8xf32, #tpu.memory_space<vmem>>, %arg4: memref<1x16x16x8xbf16, #tpu.memory_space<vmem>>, %arg5: memref<1x2x8xf32, #tpu.memory_space<vmem>>) attributes {dimension_semantics = [#tpu.dimension_semantics<parallel>], iteration_bounds = array<i64: 2>, scalar_prefetch = 0 : i64, scratch_operands = 0 : i64, tpu.core_type = #tpu.core_type<tc>, window_params = [{transform_indices = @transform_0, window_bounds = array<i64: 1, 18, 18, 8>}, {pipeline_mode = #tpu.pipeline_mode<synchronous>, transform_indices = @transform_1, window_bounds = array<i64: 72, 8>}, {pipeline_mode = #tpu.pipeline_mode<synchronous>, transform_indices = @transform_2, window_bounds = array<i64: 1, 8>}, {transform_indices = @transform_3, window_bounds = array<i64: 1, 16, 16, 8>}, {transform_indices = @transform_4, window_bounds = array<i64: 1, 2, 8>}]} {
    %c0 = arith.constant 0 : index
    %c0_0 = arith.constant 0 : index
    %c0_1 = arith.constant 0 : index
    %c0_2 = arith.constant 0 : index
    %0 = vector.load %arg1[%c0, %c0_0, %c0_1, %c0_2] : memref<1x18x18x8xbf16, #tpu.memory_space<vmem>>, vector<1x18x18x8xbf16>
    %1 = vector.shape_cast %0 : vector<1x18x18x8xbf16> to vector<18x18x8xbf16>
    %2 = vector.extract_strided_slice %1 {offsets = [0, 0, 0], sizes = [16, 16, 8], strides = [1, 1, 1]} : vector<18x18x8xbf16> to vector<16x16x8xbf16>
    %3 = vector.extract_strided_slice %1 {offsets = [0, 1, 0], sizes = [16, 16, 8], strides = [1, 1, 1]} : vector<18x18x8xbf16> to vector<16x16x8xbf16>
    %4 = vector.extract_strided_slice %1 {offsets = [0, 2, 0], sizes = [16, 16, 8], strides = [1, 1, 1]} : vector<18x18x8xbf16> to vector<16x16x8xbf16>
    %5 = tpu.concatenate %2, %3, %4 in 2 : vector<16x16x8xbf16>, vector<16x16x8xbf16>, vector<16x16x8xbf16> -> vector<16x16x24xbf16>
    %6 = vector.shape_cast %5 : vector<16x16x24xbf16> to vector<256x24xbf16>
    %c0_3 = arith.constant 0 : index
    %c0_4 = arith.constant 0 : index
    %7 = vector.load %arg2[%c0_3, %c0_4] : memref<72x8xbf16, #tpu.memory_space<vmem>>, vector<24x8xbf16>
    %cst = arith.constant dense<0.000000e+00> : vector<256x8xf32>
    %8 = tpu.matmul %6, %7, %cst {dimension_numbers = #tpu.dot_dimension_numbers<[1], [0], [0], [1], [0, 0, 1, 1], [], []>} : vector<256x24xbf16>, vector<24x8xbf16>, vector<256x8xf32> -> vector<256x8xf32>
    %9 = vector.extract_strided_slice %1 {offsets = [1, 0, 0], sizes = [16, 16, 8], strides = [1, 1, 1]} : vector<18x18x8xbf16> to vector<16x16x8xbf16>
    %10 = vector.extract_strided_slice %1 {offsets = [1, 1, 0], sizes = [16, 16, 8], strides = [1, 1, 1]} : vector<18x18x8xbf16> to vector<16x16x8xbf16>
    %11 = vector.extract_strided_slice %1 {offsets = [1, 2, 0], sizes = [16, 16, 8], strides = [1, 1, 1]} : vector<18x18x8xbf16> to vector<16x16x8xbf16>
    %12 = tpu.concatenate %9, %10, %11 in 2 : vector<16x16x8xbf16>, vector<16x16x8xbf16>, vector<16x16x8xbf16> -> vector<16x16x24xbf16>
    %13 = vector.shape_cast %12 : vector<16x16x24xbf16> to vector<256x24xbf16>
    %c24 = arith.constant 24 : index
    %c0_5 = arith.constant 0 : index
    %14 = vector.load %arg2[%c24, %c0_5] : memref<72x8xbf16, #tpu.memory_space<vmem>>, vector<24x8xbf16>
    %cst_6 = arith.constant dense<0.000000e+00> : vector<256x8xf32>
    %15 = tpu.matmul %13, %14, %cst_6 {dimension_numbers = #tpu.dot_dimension_numbers<[1], [0], [0], [1], [0, 0, 1, 1], [], []>} : vector<256x24xbf16>, vector<24x8xbf16>, vector<256x8xf32> -> vector<256x8xf32>
    %16 = arith.addf %8, %15 : vector<256x8xf32>
    %17 = vector.extract_strided_slice %1 {offsets = [2, 0, 0], sizes = [16, 16, 8], strides = [1, 1, 1]} : vector<18x18x8xbf16> to vector<16x16x8xbf16>
    %18 = vector.extract_strided_slice %1 {offsets = [2, 1, 0], sizes = [16, 16, 8], strides = [1, 1, 1]} : vector<18x18x8xbf16> to vector<16x16x8xbf16>
    %19 = vector.extract_strided_slice %1 {offsets = [2, 2, 0], sizes = [16, 16, 8], strides = [1, 1, 1]} : vector<18x18x8xbf16> to vector<16x16x8xbf16>
    %20 = tpu.concatenate %17, %18, %19 in 2 : vector<16x16x8xbf16>, vector<16x16x8xbf16>, vector<16x16x8xbf16> -> vector<16x16x24xbf16>
    %21 = vector.shape_cast %20 : vector<16x16x24xbf16> to vector<256x24xbf16>
    %c48 = arith.constant 48 : index
    %c0_7 = arith.constant 0 : index
    %22 = vector.load %arg2[%c48, %c0_7] : memref<72x8xbf16, #tpu.memory_space<vmem>>, vector<24x8xbf16>
    %cst_8 = arith.constant dense<0.000000e+00> : vector<256x8xf32>
    %23 = tpu.matmul %21, %22, %cst_8 {dimension_numbers = #tpu.dot_dimension_numbers<[1], [0], [0], [1], [0, 0, 1, 1], [], []>} : vector<256x24xbf16>, vector<24x8xbf16>, vector<256x8xf32> -> vector<256x8xf32>
    %24 = arith.addf %16, %23 : vector<256x8xf32>
    %c0_9 = arith.constant 0 : index
    %c0_10 = arith.constant 0 : index
    %25 = vector.load %arg3[%c0_9, %c0_10] : memref<1x8xf32, #tpu.memory_space<vmem>>, vector<1x8xf32>
    %26 = vector.broadcast %25 : vector<1x8xf32> to vector<256x8xf32>
    %27 = arith.addf %24, %26 : vector<256x8xf32>
    %28 = vector.shape_cast %27 : vector<256x8xf32> to vector<16x16x8xf32>
    %29 = arith.truncf %28 : vector<16x16x8xf32> to vector<16x16x8xbf16>
    %c0_11 = arith.constant 0 : index
    %c0_12 = arith.constant 0 : index
    %c0_13 = arith.constant 0 : index
    %c0_14 = arith.constant 0 : index
    %30 = vector.load %arg4[%c0_11, %c0_12, %c0_13, %c0_14] : memref<1x16x16x8xbf16, #tpu.memory_space<vmem>>, vector<1x16x16x8xbf16>
    %31 = vector.shape_cast %30 : vector<1x16x16x8xbf16> to vector<16x16x8xbf16>
    %32 = vector.shape_cast %29 : vector<16x16x8xbf16> to vector<1x16x16x8xbf16>
    tpu.vector_store %arg4[%c0_11, %c0_12, %c0_13, %c0_14], %32 {strides = array<i32>} : memref<1x16x16x8xbf16, #tpu.memory_space<vmem>>, vector<1x16x16x8xbf16>,
    %cst_15 = arith.constant dense<0.000000e+00> : vector<8xf32>
    %33 = vector.multi_reduction <add>, %27, %cst_15 [0] : vector<256x8xf32> to vector<8xf32>
    %34 = vector.shape_cast %33 : vector<8xf32> to vector<1x8xf32>
    %cst_16 = arith.constant 3.906250e-03 : f32
    %35 = vector.broadcast %cst_16 : f32 to vector<1x8xf32>
    %36 = arith.mulf %34, %35 : vector<1x8xf32>
    %37 = vector.broadcast %36 : vector<1x8xf32> to vector<256x8xf32>
    %38 = arith.subf %27, %37 : vector<256x8xf32>
    %39 = arith.mulf %38, %38 : vector<256x8xf32>
    %cst_17 = arith.constant dense<0.000000e+00> : vector<8xf32>
    %40 = vector.multi_reduction <add>, %39, %cst_17 [0] : vector<256x8xf32> to vector<8xf32>
    %41 = vector.shape_cast %40 : vector<8xf32> to vector<1x8xf32>
    %42 = tpu.concatenate %34, %41 in 0 : vector<1x8xf32>, vector<1x8xf32> -> vector<2x8xf32>
    %c0_18 = arith.constant 0 : index
    %c0_19 = arith.constant 0 : index
    %c0_20 = arith.constant 0 : index
    %43 = vector.load %arg5[%c0_18, %c0_19, %c0_20] : memref<1x2x8xf32, #tpu.memory_space<vmem>>, vector<1x2x8xf32>
    %44 = vector.shape_cast %43 : vector<1x2x8xf32> to vector<2x8xf32>
    %45 = vector.shape_cast %42 : vector<2x8xf32> to vector<1x2x8xf32>
    tpu.vector_store %arg5[%c0_18, %c0_19, %c0_20], %45 {strides = array<i32>} : memref<1x2x8xf32, #tpu.memory_space<vmem>>, vector<1x2x8xf32>,
    return
  }
  func.func @transform_0(%arg0: i32) -> (i32, i32, i32, i32) {
    %c0_i32 = arith.constant 0 : i32
    %c0_i32_0 = arith.constant 0 : i32
    %c0_i32_1 = arith.constant 0 : i32
    %c0_i32_2 = arith.constant 0 : i32
    return %arg0, %c0_i32, %c0_i32_0, %c0_i32_1 : i32, i32, i32, i32
  }
  func.func @transform_1(%arg0: i32) -> (i32, i32) {
    %c0_i32 = arith.constant 0 : i32
    %c0_i32_0 = arith.constant 0 : i32
    %c0_i32_1 = arith.constant 0 : i32
    return %c0_i32, %c0_i32_0 : i32, i32
  }
  func.func @transform_2(%arg0: i32) -> (i32, i32) {
    %c0_i32 = arith.constant 0 : i32
    %c0_i32_0 = arith.constant 0 : i32
    %c0_i32_1 = arith.constant 0 : i32
    return %c0_i32, %c0_i32_0 : i32, i32
  }
  func.func @transform_3(%arg0: i32) -> (i32, i32, i32, i32) {
    %c0_i32 = arith.constant 0 : i32
    %c0_i32_0 = arith.constant 0 : i32
    %c0_i32_1 = arith.constant 0 : i32
    %c0_i32_2 = arith.constant 0 : i32
    return %arg0, %c0_i32, %c0_i32_0, %c0_i32_1 : i32, i32, i32, i32
  }
  func.func @transform_4(%arg0: i32) -> (i32, i32, i32) {
    %c0_i32 = arith.constant 0 : i32
    %c0_i32_0 = arith.constant 0 : i32
    %c0_i32_1 = arith.constant 0 : i32
    return %arg0, %c0_i32, %c0_i32_0 : i32, i32, i32
  }
}

module attributes {stable_mosaic.version = 11 : i64} {
  func.func @_bn_relu_conv2_kernel(%arg0: i32, %arg1: memref<1x16x16x8xbf16, #tpu.memory_space<vmem>>, %arg2: memref<5x8xf32, #tpu.memory_space<vmem>>, %arg3: memref<72x8xbf16, #tpu.memory_space<vmem>>, %arg4: memref<1x16x16x8xbf16, #tpu.memory_space<vmem>>, %arg5: memref<1x2x8xf32, #tpu.memory_space<vmem>>) attributes {dimension_semantics = [#tpu.dimension_semantics<parallel>], iteration_bounds = array<i64: 2>, scalar_prefetch = 0 : i64, scratch_operands = 0 : i64, tpu.core_type = #tpu.core_type<tc>, window_params = [{transform_indices = @transform_0, window_bounds = array<i64: 1, 16, 16, 8>}, {pipeline_mode = #tpu.pipeline_mode<synchronous>, transform_indices = @transform_1, window_bounds = array<i64: 5, 8>}, {pipeline_mode = #tpu.pipeline_mode<synchronous>, transform_indices = @transform_2, window_bounds = array<i64: 72, 8>}, {transform_indices = @transform_3, window_bounds = array<i64: 1, 16, 16, 8>}, {transform_indices = @transform_4, window_bounds = array<i64: 1, 2, 8>}]} {
    %c0 = arith.constant 0 : index
    %c0_0 = arith.constant 0 : index
    %0 = vector.load %arg2[%c0, %c0_0] : memref<5x8xf32, #tpu.memory_space<vmem>>, vector<5x8xf32>
    %c0_1 = arith.constant 0 : index
    %c0_2 = arith.constant 0 : index
    %c0_3 = arith.constant 0 : index
    %c0_4 = arith.constant 0 : index
    %1 = vector.load %arg1[%c0_1, %c0_2, %c0_3, %c0_4] : memref<1x16x16x8xbf16, #tpu.memory_space<vmem>>, vector<1x16x16x8xbf16>
    %2 = vector.shape_cast %1 : vector<1x16x16x8xbf16> to vector<16x16x8xbf16>
    %3 = arith.extf %2 : vector<16x16x8xbf16> to vector<16x16x8xf32>
    %4 = vector.extract_strided_slice %0 {offsets = [0, 0], sizes = [1, 8], strides = [1, 1]} : vector<5x8xf32> to vector<1x8xf32>
    %5 = vector.shape_cast %4 : vector<1x8xf32> to vector<1x1x8xf32>
    %6 = vector.broadcast %5 : vector<1x1x8xf32> to vector<16x16x8xf32>
    %7 = arith.subf %3, %6 : vector<16x16x8xf32>
    %8 = vector.extract_strided_slice %0 {offsets = [1, 0], sizes = [1, 8], strides = [1, 1]} : vector<5x8xf32> to vector<1x8xf32>
    %9 = vector.extract_strided_slice %0 {offsets = [2, 0], sizes = [1, 8], strides = [1, 1]} : vector<5x8xf32> to vector<1x8xf32>
    %10 = arith.mulf %8, %9 : vector<1x8xf32>
    %11 = vector.shape_cast %10 : vector<1x8xf32> to vector<1x1x8xf32>
    %12 = vector.broadcast %11 : vector<1x1x8xf32> to vector<16x16x8xf32>
    %13 = arith.mulf %7, %12 : vector<16x16x8xf32>
    %14 = vector.extract_strided_slice %0 {offsets = [3, 0], sizes = [1, 8], strides = [1, 1]} : vector<5x8xf32> to vector<1x8xf32>
    %15 = vector.shape_cast %14 : vector<1x8xf32> to vector<1x1x8xf32>
    %16 = vector.broadcast %15 : vector<1x1x8xf32> to vector<16x16x8xf32>
    %17 = arith.addf %13, %16 : vector<16x16x8xf32>
    %cst = arith.constant 0.000000e+00 : f32
    %18 = vector.broadcast %cst : f32 to vector<16x16x8xf32>
    %19 = arith.maximumf %17, %18 : vector<16x16x8xf32>
    %20 = arith.truncf %19 : vector<16x16x8xf32> to vector<16x16x8xbf16>
    %cst_5 = arith.constant 0.000000e+00 : bf16
    %21 = vector.broadcast %cst_5 : bf16 to vector<1x16x8xbf16>
    %cst_6 = arith.constant 0.000000e+00 : bf16
    %22 = vector.broadcast %cst_6 : bf16 to vector<18x1x8xbf16>
    %23 = tpu.concatenate %21, %20, %21 in 0 : vector<1x16x8xbf16>, vector<16x16x8xbf16>, vector<1x16x8xbf16> -> vector<18x16x8xbf16>
    %24 = tpu.concatenate %22, %23, %22 in 1 : vector<18x1x8xbf16>, vector<18x16x8xbf16>, vector<18x1x8xbf16> -> vector<18x18x8xbf16>
    %25 = vector.extract_strided_slice %24 {offsets = [0, 0, 0], sizes = [16, 16, 8], strides = [1, 1, 1]} : vector<18x18x8xbf16> to vector<16x16x8xbf16>
    %26 = vector.extract_strided_slice %24 {offsets = [0, 1, 0], sizes = [16, 16, 8], strides = [1, 1, 1]} : vector<18x18x8xbf16> to vector<16x16x8xbf16>
    %27 = vector.extract_strided_slice %24 {offsets = [0, 2, 0], sizes = [16, 16, 8], strides = [1, 1, 1]} : vector<18x18x8xbf16> to vector<16x16x8xbf16>
    %28 = tpu.concatenate %25, %26, %27 in 2 : vector<16x16x8xbf16>, vector<16x16x8xbf16>, vector<16x16x8xbf16> -> vector<16x16x24xbf16>
    %29 = vector.shape_cast %28 : vector<16x16x24xbf16> to vector<256x24xbf16>
    %c0_7 = arith.constant 0 : index
    %c0_8 = arith.constant 0 : index
    %30 = vector.load %arg3[%c0_7, %c0_8] : memref<72x8xbf16, #tpu.memory_space<vmem>>, vector<24x8xbf16>
    %cst_9 = arith.constant dense<0.000000e+00> : vector<256x8xf32>
    %31 = tpu.matmul %29, %30, %cst_9 {dimension_numbers = #tpu.dot_dimension_numbers<[1], [0], [0], [1], [0, 0, 1, 1], [], []>} : vector<256x24xbf16>, vector<24x8xbf16>, vector<256x8xf32> -> vector<256x8xf32>
    %32 = vector.extract_strided_slice %24 {offsets = [1, 0, 0], sizes = [16, 16, 8], strides = [1, 1, 1]} : vector<18x18x8xbf16> to vector<16x16x8xbf16>
    %33 = vector.extract_strided_slice %24 {offsets = [1, 1, 0], sizes = [16, 16, 8], strides = [1, 1, 1]} : vector<18x18x8xbf16> to vector<16x16x8xbf16>
    %34 = vector.extract_strided_slice %24 {offsets = [1, 2, 0], sizes = [16, 16, 8], strides = [1, 1, 1]} : vector<18x18x8xbf16> to vector<16x16x8xbf16>
    %35 = tpu.concatenate %32, %33, %34 in 2 : vector<16x16x8xbf16>, vector<16x16x8xbf16>, vector<16x16x8xbf16> -> vector<16x16x24xbf16>
    %36 = vector.shape_cast %35 : vector<16x16x24xbf16> to vector<256x24xbf16>
    %c24 = arith.constant 24 : index
    %c0_10 = arith.constant 0 : index
    %37 = vector.load %arg3[%c24, %c0_10] : memref<72x8xbf16, #tpu.memory_space<vmem>>, vector<24x8xbf16>
    %cst_11 = arith.constant dense<0.000000e+00> : vector<256x8xf32>
    %38 = tpu.matmul %36, %37, %cst_11 {dimension_numbers = #tpu.dot_dimension_numbers<[1], [0], [0], [1], [0, 0, 1, 1], [], []>} : vector<256x24xbf16>, vector<24x8xbf16>, vector<256x8xf32> -> vector<256x8xf32>
    %39 = arith.addf %31, %38 : vector<256x8xf32>
    %40 = vector.extract_strided_slice %24 {offsets = [2, 0, 0], sizes = [16, 16, 8], strides = [1, 1, 1]} : vector<18x18x8xbf16> to vector<16x16x8xbf16>
    %41 = vector.extract_strided_slice %24 {offsets = [2, 1, 0], sizes = [16, 16, 8], strides = [1, 1, 1]} : vector<18x18x8xbf16> to vector<16x16x8xbf16>
    %42 = vector.extract_strided_slice %24 {offsets = [2, 2, 0], sizes = [16, 16, 8], strides = [1, 1, 1]} : vector<18x18x8xbf16> to vector<16x16x8xbf16>
    %43 = tpu.concatenate %40, %41, %42 in 2 : vector<16x16x8xbf16>, vector<16x16x8xbf16>, vector<16x16x8xbf16> -> vector<16x16x24xbf16>
    %44 = vector.shape_cast %43 : vector<16x16x24xbf16> to vector<256x24xbf16>
    %c48 = arith.constant 48 : index
    %c0_12 = arith.constant 0 : index
    %45 = vector.load %arg3[%c48, %c0_12] : memref<72x8xbf16, #tpu.memory_space<vmem>>, vector<24x8xbf16>
    %cst_13 = arith.constant dense<0.000000e+00> : vector<256x8xf32>
    %46 = tpu.matmul %44, %45, %cst_13 {dimension_numbers = #tpu.dot_dimension_numbers<[1], [0], [0], [1], [0, 0, 1, 1], [], []>} : vector<256x24xbf16>, vector<24x8xbf16>, vector<256x8xf32> -> vector<256x8xf32>
    %47 = arith.addf %39, %46 : vector<256x8xf32>
    %48 = vector.extract_strided_slice %0 {offsets = [4, 0], sizes = [1, 8], strides = [1, 1]} : vector<5x8xf32> to vector<1x8xf32>
    %49 = vector.broadcast %48 : vector<1x8xf32> to vector<256x8xf32>
    %50 = arith.addf %47, %49 : vector<256x8xf32>
    %51 = vector.shape_cast %50 : vector<256x8xf32> to vector<16x16x8xf32>
    %52 = arith.truncf %51 : vector<16x16x8xf32> to vector<16x16x8xbf16>
    %c0_14 = arith.constant 0 : index
    %c0_15 = arith.constant 0 : index
    %c0_16 = arith.constant 0 : index
    %c0_17 = arith.constant 0 : index
    %53 = vector.load %arg4[%c0_14, %c0_15, %c0_16, %c0_17] : memref<1x16x16x8xbf16, #tpu.memory_space<vmem>>, vector<1x16x16x8xbf16>
    %54 = vector.shape_cast %53 : vector<1x16x16x8xbf16> to vector<16x16x8xbf16>
    %55 = vector.shape_cast %52 : vector<16x16x8xbf16> to vector<1x16x16x8xbf16>
    tpu.vector_store %arg4[%c0_14, %c0_15, %c0_16, %c0_17], %55 {strides = array<i32>} : memref<1x16x16x8xbf16, #tpu.memory_space<vmem>>, vector<1x16x16x8xbf16>,
    %cst_18 = arith.constant dense<0.000000e+00> : vector<8xf32>
    %56 = vector.multi_reduction <add>, %50, %cst_18 [0] : vector<256x8xf32> to vector<8xf32>
    %57 = vector.shape_cast %56 : vector<8xf32> to vector<1x8xf32>
    %cst_19 = arith.constant 3.906250e-03 : f32
    %58 = vector.broadcast %cst_19 : f32 to vector<1x8xf32>
    %59 = arith.mulf %57, %58 : vector<1x8xf32>
    %60 = vector.broadcast %59 : vector<1x8xf32> to vector<256x8xf32>
    %61 = arith.subf %50, %60 : vector<256x8xf32>
    %62 = arith.mulf %61, %61 : vector<256x8xf32>
    %cst_20 = arith.constant dense<0.000000e+00> : vector<8xf32>
    %63 = vector.multi_reduction <add>, %62, %cst_20 [0] : vector<256x8xf32> to vector<8xf32>
    %64 = vector.shape_cast %63 : vector<8xf32> to vector<1x8xf32>
    %65 = tpu.concatenate %57, %64 in 0 : vector<1x8xf32>, vector<1x8xf32> -> vector<2x8xf32>
    %c0_21 = arith.constant 0 : index
    %c0_22 = arith.constant 0 : index
    %c0_23 = arith.constant 0 : index
    %66 = vector.load %arg5[%c0_21, %c0_22, %c0_23] : memref<1x2x8xf32, #tpu.memory_space<vmem>>, vector<1x2x8xf32>
    %67 = vector.shape_cast %66 : vector<1x2x8xf32> to vector<2x8xf32>
    %68 = vector.shape_cast %65 : vector<2x8xf32> to vector<1x2x8xf32>
    tpu.vector_store %arg5[%c0_21, %c0_22, %c0_23], %68 {strides = array<i32>} : memref<1x2x8xf32, #tpu.memory_space<vmem>>, vector<1x2x8xf32>,
    return
  }
  func.func @transform_0(%arg0: i32) -> (i32, i32, i32, i32) {
    %c0_i32 = arith.constant 0 : i32
    %c0_i32_0 = arith.constant 0 : i32
    %c0_i32_1 = arith.constant 0 : i32
    %c0_i32_2 = arith.constant 0 : i32
    return %arg0, %c0_i32, %c0_i32_0, %c0_i32_1 : i32, i32, i32, i32
  }
  func.func @transform_1(%arg0: i32) -> (i32, i32) {
    %c0_i32 = arith.constant 0 : i32
    %c0_i32_0 = arith.constant 0 : i32
    %c0_i32_1 = arith.constant 0 : i32
    return %c0_i32, %c0_i32_0 : i32, i32
  }
  func.func @transform_2(%arg0: i32) -> (i32, i32) {
    %c0_i32 = arith.constant 0 : i32
    %c0_i32_0 = arith.constant 0 : i32
    %c0_i32_1 = arith.constant 0 : i32
    return %c0_i32, %c0_i32_0 : i32, i32
  }
  func.func @transform_3(%arg0: i32) -> (i32, i32, i32, i32) {
    %c0_i32 = arith.constant 0 : i32
    %c0_i32_0 = arith.constant 0 : i32
    %c0_i32_1 = arith.constant 0 : i32
    %c0_i32_2 = arith.constant 0 : i32
    return %arg0, %c0_i32, %c0_i32_0, %c0_i32_1 : i32, i32, i32, i32
  }
  func.func @transform_4(%arg0: i32) -> (i32, i32, i32) {
    %c0_i32 = arith.constant 0 : i32
    %c0_i32_0 = arith.constant 0 : i32
    %c0_i32_1 = arith.constant 0 : i32
    return %arg0, %c0_i32, %c0_i32_0 : i32, i32, i32
  }
}

module attributes {stable_mosaic.version = 11 : i64} {
  func.func @_bn_relu_out_kernel(%arg0: i32, %arg1: memref<1x16x16x8xbf16, #tpu.memory_space<vmem>>, %arg2: memref<4x8xf32, #tpu.memory_space<vmem>>, %arg3: memref<1x16x16x8xf32, #tpu.memory_space<vmem>>) attributes {dimension_semantics = [#tpu.dimension_semantics<parallel>], iteration_bounds = array<i64: 2>, scalar_prefetch = 0 : i64, scratch_operands = 0 : i64, tpu.core_type = #tpu.core_type<tc>, window_params = [{transform_indices = @transform_0, window_bounds = array<i64: 1, 16, 16, 8>}, {pipeline_mode = #tpu.pipeline_mode<synchronous>, transform_indices = @transform_1, window_bounds = array<i64: 4, 8>}, {transform_indices = @transform_2, window_bounds = array<i64: 1, 16, 16, 8>}]} {
    %c0 = arith.constant 0 : index
    %c0_0 = arith.constant 0 : index
    %0 = vector.load %arg2[%c0, %c0_0] : memref<4x8xf32, #tpu.memory_space<vmem>>, vector<4x8xf32>
    %c0_1 = arith.constant 0 : index
    %c0_2 = arith.constant 0 : index
    %c0_3 = arith.constant 0 : index
    %c0_4 = arith.constant 0 : index
    %1 = vector.load %arg1[%c0_1, %c0_2, %c0_3, %c0_4] : memref<1x16x16x8xbf16, #tpu.memory_space<vmem>>, vector<1x16x16x8xbf16>
    %2 = vector.shape_cast %1 : vector<1x16x16x8xbf16> to vector<16x16x8xbf16>
    %3 = arith.extf %2 : vector<16x16x8xbf16> to vector<16x16x8xf32>
    %4 = vector.extract_strided_slice %0 {offsets = [0, 0], sizes = [1, 8], strides = [1, 1]} : vector<4x8xf32> to vector<1x8xf32>
    %5 = vector.shape_cast %4 : vector<1x8xf32> to vector<1x1x8xf32>
    %6 = vector.broadcast %5 : vector<1x1x8xf32> to vector<16x16x8xf32>
    %7 = arith.subf %3, %6 : vector<16x16x8xf32>
    %8 = vector.extract_strided_slice %0 {offsets = [1, 0], sizes = [1, 8], strides = [1, 1]} : vector<4x8xf32> to vector<1x8xf32>
    %9 = vector.extract_strided_slice %0 {offsets = [2, 0], sizes = [1, 8], strides = [1, 1]} : vector<4x8xf32> to vector<1x8xf32>
    %10 = arith.mulf %8, %9 : vector<1x8xf32>
    %11 = vector.shape_cast %10 : vector<1x8xf32> to vector<1x1x8xf32>
    %12 = vector.broadcast %11 : vector<1x1x8xf32> to vector<16x16x8xf32>
    %13 = arith.mulf %7, %12 : vector<16x16x8xf32>
    %14 = vector.extract_strided_slice %0 {offsets = [3, 0], sizes = [1, 8], strides = [1, 1]} : vector<4x8xf32> to vector<1x8xf32>
    %15 = vector.shape_cast %14 : vector<1x8xf32> to vector<1x1x8xf32>
    %16 = vector.broadcast %15 : vector<1x1x8xf32> to vector<16x16x8xf32>
    %17 = arith.addf %13, %16 : vector<16x16x8xf32>
    %cst = arith.constant 0.000000e+00 : f32
    %18 = vector.broadcast %cst : f32 to vector<16x16x8xf32>
    %19 = arith.maximumf %17, %18 : vector<16x16x8xf32>
    %c0_5 = arith.constant 0 : index
    %c0_6 = arith.constant 0 : index
    %c0_7 = arith.constant 0 : index
    %c0_8 = arith.constant 0 : index
    %20 = vector.load %arg3[%c0_5, %c0_6, %c0_7, %c0_8] : memref<1x16x16x8xf32, #tpu.memory_space<vmem>>, vector<1x16x16x8xf32>
    %21 = vector.shape_cast %20 : vector<1x16x16x8xf32> to vector<16x16x8xf32>
    %22 = vector.shape_cast %19 : vector<16x16x8xf32> to vector<1x16x16x8xf32>
    tpu.vector_store %arg3[%c0_5, %c0_6, %c0_7, %c0_8], %22 {strides = array<i32>} : memref<1x16x16x8xf32, #tpu.memory_space<vmem>>, vector<1x16x16x8xf32>,
    return
  }
  func.func @transform_0(%arg0: i32) -> (i32, i32, i32, i32) {
    %c0_i32 = arith.constant 0 : i32
    %c0_i32_0 = arith.constant 0 : i32
    %c0_i32_1 = arith.constant 0 : i32
    %c0_i32_2 = arith.constant 0 : i32
    return %arg0, %c0_i32, %c0_i32_0, %c0_i32_1 : i32, i32, i32, i32
  }
  func.func @transform_1(%arg0: i32) -> (i32, i32) {
    %c0_i32 = arith.constant 0 : i32
    %c0_i32_0 = arith.constant 0 : i32
    %c0_i32_1 = arith.constant 0 : i32
    return %c0_i32, %c0_i32_0 : i32, i32
  }
  func.func @transform_2(%arg0: i32) -> (i32, i32, i32, i32) {
    %c0_i32 = arith.constant 0 : i32
    %c0_i32_0 = arith.constant 0 : i32
    %c0_i32_1 = arith.constant 0 : i32
    %c0_i32_2 = arith.constant 0 : i32
    return %arg0, %c0_i32, %c0_i32_0, %c0_i32_1 : i32, i32, i32, i32
  }
}

</mosaic_0001>

<bundles_post_ra>
// kernel: double_conv_pallas.5
= control target key start
LH: loop header
LB: loop body
LE: loop exit
PB: predicated region body
PF: predicated region fallthrough
CT: control target
= control target key end

     0   :  { %s555_s9 = smov 0   ;;  %s765_s0 = inlined_call_operand.vmem [shape: bf16[2,16,16,8], index: 0, kind: input, shape index: {}]   ;;  %s766_s1 = inlined_call_operand.vmem [shape: f32[4,8], index: 1, kind: input, shape index: {}]   ;;  %s767_s2 = inlined_call_operand.vmem [shape: f32[2,16,16,8], index: 2, kind: output, shape index: {}]  }
   0x1 LB: > { %s432_s10 = sadd.s32 4294967295, %s538_s9   ;;  %p436_p0 = scmp.ge.s32.totalorder %s538_s9, 1  ;;  %s538_s9 = sphi %s555_s9, %s12_s9  }
   0x2   : > { %p112_p1 = scmp.lt.s32.totalorder %s538_s9, 3 }
   0x4   : > { %p113_p2 = pnand %p436_p0, %p112_p1 }
   0x5   : > { %p134_p3 = scmp.lt.s32.totalorder (!%p113_p2), %s432_s10, 1 }
   0x6   : > { %116 = sbr.rel (%p113_p2) target bundleno = 63 (0x3f), region = 28 }
   0xb   : > { %v144_v0 = vld [vmem:[%s766_s1] sm:$0xf]  ;;  %s769_s10 = smov (!%p134_p3, %s432_s10), 1  ;;  %vm344_vm0 = vcmask 64512  }
   0xc   : > { %v243_v1 = vrot.slane %v144_v0, 1  ;;  %s443_s13 = sshll.u32 %s769_s10, 7  ;;  %v574_v3 = vperm.slane %v144_v0, 0  ;;  %v579_v6 = vperm.slane %v144_v0, 3  ;;  %s444_s17 = sshll.u32 %s769_s10, 8 }
   0xd   : > { %s572_s16 = scalar_lea.vmem %s765_s0, %s443_s13  ;;  %s608_s20 = scalar_lea.vmem %s767_s2, %s444_s17 }
   0xe   : > { %v245_v2 = vmul.f32 %v243_v1, %v144_v0  ;;  %v446_v4 = vld [vmem:[%s572_s16] sm:$0xff]   ;;  %v509_v7 = vld [vmem:[%s572_s16 + $0x8] sm:$0xff]   ;;  %v510_v8 = vld [vmem:[%s572_s16 + $0x10] sm:$0xff]  }
   0xf   : > { %v447_v9 = vunpack.c.l.bf16 %v446_v4  ;;  %v448_v10 = vunpack.c.h.bf16 %v446_v4  ;;  %v451_v11 = vunpack.c.l.bf16 %v509_v7  ;;  %v452_v12 = vunpack.c.h.bf16 %v509_v7  ;;  %v511_v13 = vld [vmem:[%s572_s16 + $0x18] sm:$0xff]   ;;  %v512_v42 = vld [vmem:[%s572_s16 + $0x20] sm:$0xff]   ;;  %v513_v43 = vld [vmem:[%s572_s16 + $0x28] sm:$0xff]  }
  0x10   : > { %v577_v5 = vperm.slane %v245_v2, 1  ;;  %v455_v14 = vunpack.c.l.bf16 %v510_v8  ;;  %v456_v15 = vunpack.c.h.bf16 %v510_v8  ;;  %v459_v16 = vunpack.c.l.bf16 %v511_v13  ;;  %v514_v48 = vld [vmem:[%s572_s16 + $0x30] sm:$0xff]   ;;  %v515_v49 = vld [vmem:[%s572_s16 + $0x38] sm:$0xff]  }
  0x11   : > { %v460_v17 = vunpack.c.h.bf16 %v511_v13  ;;  %v210_v18 = vsub.f32 %v447_v9, %v574_v3  ;;  %v211_v19 = vsub.f32 %v448_v10, %v574_v3  ;;  %v212_v20 = vsub.f32 %v451_v11, %v574_v3 }
  0x12   : > { %v213_v21 = vsub.f32 %v452_v12, %v574_v3  ;;  %v214_v22 = vsub.f32 %v455_v14, %v574_v3  ;;  %v215_v23 = vsub.f32 %v456_v15, %v574_v3  ;;  %v216_v24 = vsub.f32 %v459_v16, %v574_v3 }
  0x13   : > { %v217_v25 = vsub.f32 %v460_v17, %v574_v3  ;;  %v247_v26 = vmul.f32 %v577_v5, %v210_v18  ;;  %v248_v27 = vmul.f32 %v577_v5, %v211_v19  ;;  %v249_v28 = vmul.f32 %v577_v5, %v212_v20 }
  0x14   : > { %v250_v29 = vmul.f32 %v577_v5, %v213_v21  ;;  %v251_v30 = vmul.f32 %v577_v5, %v214_v22  ;;  %v252_v31 = vmul.f32 %v577_v5, %v215_v23  ;;  %v253_v32 = vmul.f32 %v577_v5, %v216_v24 }
  0x15   : > { %v254_v33 = vmul.f32 %v577_v5, %v217_v25  ;;  %v280_v34 = vadd.f32 %v579_v6, %v247_v26  ;;  %v281_v35 = vadd.f32 %v579_v6, %v248_v27  ;;  %v282_v36 = vadd.f32 %v579_v6, %v249_v28  ;;  %v516_v25 = vld [vmem:[%s572_s16 + $0x40] sm:$0xff]   ;;  %v517_v26 = vld [vmem:[%s572_s16 + $0x48] sm:$0xff]  }
  0x16   : > { %v283_v37 = vadd.f32 %v579_v6, %v250_v29  ;;  %v284_v38 = vadd.f32 %v579_v6, %v251_v30  ;;  %v285_v39 = vadd.f32 %v579_v6, %v252_v31  ;;  %v286_v40 = vadd.f32 %v579_v6, %v253_v32  ;;  %v518_v31 = vld [vmem:[%s572_s16 + $0x50] sm:$0xff]   ;;  %v519_v32 = vld [vmem:[%s572_s16 + $0x58] sm:$0xff]  }
  0x17   : > { %v287_v41 = vadd.f32 %v579_v6, %v254_v33  ;;  %v312_v44 = vmax.f32 %v280_v34, 0.0  ;;  %v313_v45 = vmax.f32 %v281_v35, 0.0  ;;  %v314_v46 = vmax.f32 %v282_v36, 0.0 }
  0x18   : > { %v315_v47 = vmax.f32 %v283_v37, 0.0  ;;  %v316_v50 = vmax.f32 %v284_v38, 0.0  ;;  %v317_v51 = vmax.f32 %v285_v39, 0.0  ;;  %v318_v52 = vmax.f32 %v286_v40, 0.0 }
  0x19   : > { %v319_v53 = vmax.f32 %v287_v41, 0.0  ;;  %345 = vst.msk [vmem:[%s608_s20] sm:$0xff] %vm344_vm0, %v312_v44  ;;  %v463_v54 = vunpack.c.l.bf16 %v512_v42  ;;  %v464_v55 = vunpack.c.h.bf16 %v512_v42  ;;  %v467_v56 = vunpack.c.l.bf16 %v513_v43 }
  0x1a   : > { %v468_v57 = vunpack.c.h.bf16 %v513_v43  ;;  %346 = vst.msk [vmem:[%s608_s20 + $0x8] sm:$0xff] %vm344_vm0, %v313_v45  ;;  %v471_v58 = vunpack.c.l.bf16 %v514_v48  ;;  %v472_v59 = vunpack.c.h.bf16 %v514_v48  ;;  %v475_v60 = vunpack.c.l.bf16 %v515_v49 }
  0x1b   : > { %v476_v61 = vunpack.c.h.bf16 %v515_v49  ;;  %347 = vst.msk [vmem:[%s608_s20 + $0x10] sm:$0xff] %vm344_vm0, %v314_v46  ;;  %v218_v62 = vsub.f32 %v463_v54, %v574_v3  ;;  %v219_v63 = vsub.f32 %v464_v55, %v574_v3  ;;  %v220_v0 = vsub.f32 %v467_v56, %v574_v3 }
  0x1c   : > { %v221_v1 = vsub.f32 %v468_v57, %v574_v3  ;;  %348 = vst.msk [vmem:[%s608_s20 + $0x18] sm:$0xff] %vm344_vm0, %v315_v47  ;;  %v222_v2 = vsub.f32 %v471_v58, %v574_v3  ;;  %v223_v4 = vsub.f32 %v472_v59, %v574_v3  ;;  %v224_v7 = vsub.f32 %v475_v60, %v574_v3 }
  0x1d   : > { %v225_v8 = vsub.f32 %v476_v61, %v574_v3  ;;  %349 = vst.msk [vmem:[%s608_s20 + $0x20] sm:$0xff] %vm344_vm0, %v316_v50  ;;  %v255_v9 = vmul.f32 %v577_v5, %v218_v62  ;;  %v256_v10 = vmul.f32 %v577_v5, %v219_v63  ;;  %v257_v11 = vmul.f32 %v577_v5, %v220_v0 }
  0x1e   : > { %v258_v12 = vmul.f32 %v577_v5, %v221_v1  ;;  %350 = vst.msk [vmem:[%s608_s20 + $0x28] sm:$0xff] %vm344_vm0, %v317_v51  ;;  %v259_v13 = vmul.f32 %v577_v5, %v222_v2  ;;  %v260_v14 = vmul.f32 %v577_v5, %v223_v4  ;;  %v261_v15 = vmul.f32 %v577_v5, %v224_v7 }
  0x1f   : > { %v262_v16 = vmul.f32 %v577_v5, %v225_v8  ;;  %351 = vst.msk [vmem:[%s608_s20 + $0x30] sm:$0xff] %vm344_vm0, %v318_v52  ;;  %v288_v17 = vadd.f32 %v579_v6, %v255_v9  ;;  %v289_v18 = vadd.f32 %v579_v6, %v256_v10  ;;  %v290_v19 = vadd.f32 %v579_v6, %v257_v11  ;;  %v520_v8 = vld [vmem:[%s572_s16 + $0x60] sm:$0xff]   ;;  %v521_v9 = vld [vmem:[%s572_s16 + $0x68] sm:$0xff]  }
  0x20   : > { %v291_v20 = vadd.f32 %v579_v6, %v258_v12  ;;  %352 = vst.msk [vmem:[%s608_s20 + $0x38] sm:$0xff] %vm344_vm0, %v319_v53  ;;  %v292_v21 = vadd.f32 %v579_v6, %v259_v13  ;;  %v293_v22 = vadd.f32 %v579_v6, %v260_v14  ;;  %v294_v23 = vadd.f32 %v579_v6, %v261_v15  ;;  %v522_v14 = vld [vmem:[%s572_s16 + $0x70] sm:$0xff]   ;;  %v523_v15 = vld [vmem:[%s572_s16 + $0x78] sm:$0xff]  }
  0x21   : > { %v295_v24 = vadd.f32 %v579_v6, %v262_v16  ;;  %v320_v27 = vmax.f32 %v288_v17, 0.0  ;;  %v321_v28 = vmax.f32 %v289_v18, 0.0  ;;  %v322_v29 = vmax.f32 %v290_v19, 0.0 }
  0x22   : > { %v323_v30 = vmax.f32 %v291_v20, 0.0  ;;  %v324_v33 = vmax.f32 %v292_v21, 0.0  ;;  %v325_v34 = vmax.f32 %v293_v22, 0.0  ;;  %v326_v35 = vmax.f32 %v294_v23, 0.0 }
  0x23   : > { %v327_v36 = vmax.f32 %v295_v24, 0.0  ;;  %353 = vst.msk [vmem:[%s608_s20 + $0x40] sm:$0xff] %vm344_vm0, %v320_v27  ;;  %v479_v37 = vunpack.c.l.bf16 %v516_v25  ;;  %v480_v38 = vunpack.c.h.bf16 %v516_v25  ;;  %v483_v39 = vunpack.c.l.bf16 %v517_v26 }
  0x24   : > { %v484_v40 = vunpack.c.h.bf16 %v517_v26  ;;  %354 = vst.msk [vmem:[%s608_s20 + $0x48] sm:$0xff] %vm344_vm0, %v321_v28  ;;  %v487_v41 = vunpack.c.l.bf16 %v518_v31  ;;  %v488_v42 = vunpack.c.h.bf16 %v518_v31  ;;  %v491_v43 = vunpack.c.l.bf16 %v519_v32 }
  0x25   : > { %v492_v44 = vunpack.c.h.bf16 %v519_v32  ;;  %355 = vst.msk [vmem:[%s608_s20 + $0x50] sm:$0xff] %vm344_vm0, %v322_v29  ;;  %v226_v45 = vsub.f32 %v479_v37, %v574_v3  ;;  %v227_v46 = vsub.f32 %v480_v38, %v574_v3  ;;  %v228_v47 = vsub.f32 %v483_v39, %v574_v3 }
  0x26   : > { %v229_v48 = vsub.f32 %v484_v40, %v574_v3  ;;  %356 = vst.msk [vmem:[%s608_s20 + $0x58] sm:$0xff] %vm344_vm0, %v323_v30  ;;  %v230_v49 = vsub.f32 %v487_v41, %v574_v3  ;;  %v231_v50 = vsub.f32 %v488_v42, %v574_v3  ;;  %v232_v51 = vsub.f32 %v491_v43, %v574_v3 }
  0x27   : > { %v233_v52 = vsub.f32 %v492_v44, %v574_v3  ;;  %357 = vst.msk [vmem:[%s608_s20 + $0x60] sm:$0xff] %vm344_vm0, %v324_v33  ;;  %v263_v53 = vmul.f32 %v577_v5, %v226_v45  ;;  %v264_v54 = vmul.f32 %v577_v5, %v227_v46  ;;  %v265_v55 = vmul.f32 %v577_v5, %v228_v47 }
  0x28   : > { %v266_v56 = vmul.f32 %v577_v5, %v229_v48  ;;  %358 = vst.msk [vmem:[%s608_s20 + $0x68] sm:$0xff] %vm344_vm0, %v325_v34  ;;  %v267_v57 = vmul.f32 %v577_v5, %v230_v49  ;;  %v268_v58 = vmul.f32 %v577_v5, %v231_v50  ;;  %v269_v59 = vmul.f32 %v577_v5, %v232_v51 }
  0x29   : > { %v270_v60 = vmul.f32 %v577_v5, %v233_v52  ;;  %359 = vst.msk [vmem:[%s608_s20 + $0x70] sm:$0xff] %vm344_vm0, %v326_v35  ;;  %v296_v61 = vadd.f32 %v579_v6, %v263_v53  ;;  %v297_v62 = vadd.f32 %v579_v6, %v264_v54  ;;  %v298_v63 = vadd.f32 %v579_v6, %v265_v55 }
  0x2a   : > { %v299_v0 = vadd.f32 %v579_v6, %v266_v56  ;;  %360 = vst.msk [vmem:[%s608_s20 + $0x78] sm:$0xff] %vm344_vm0, %v327_v36  ;;  %v300_v1 = vadd.f32 %v579_v6, %v267_v57  ;;  %v301_v2 = vadd.f32 %v579_v6, %v268_v58  ;;  %v302_v4 = vadd.f32 %v579_v6, %v269_v59 }
  0x2b   : > { %v303_v7 = vadd.f32 %v579_v6, %v270_v60  ;;  %v328_v10 = vmax.f32 %v296_v61, 0.0  ;;  %v329_v11 = vmax.f32 %v297_v62, 0.0  ;;  %v330_v12 = vmax.f32 %v298_v63, 0.0 }
  0x2c   : > { %v331_v13 = vmax.f32 %v299_v0, 0.0  ;;  %v332_v16 = vmax.f32 %v300_v1, 0.0  ;;  %v333_v17 = vmax.f32 %v301_v2, 0.0  ;;  %v334_v18 = vmax.f32 %v302_v4, 0.0 }
  0x2d   : > { %v335_v19 = vmax.f32 %v303_v7, 0.0  ;;  %361 = vst.msk [vmem:[%s608_s20 + $0x80] sm:$0xff] %vm344_vm0, %v328_v10  ;;  %v495_v20 = vunpack.c.l.bf16 %v520_v8  ;;  %v496_v21 = vunpack.c.h.bf16 %v520_v8  ;;  %v499_v22 = vunpack.c.l.bf16 %v521_v9 }
  0x2e   : > { %v500_v23 = vunpack.c.h.bf16 %v521_v9  ;;  %362 = vst.msk [vmem:[%s608_s20 + $0x88] sm:$0xff] %vm344_vm0, %v329_v11  ;;  %v503_v24 = vunpack.c.l.bf16 %v522_v14  ;;  %v504_v25 = vunpack.c.h.bf16 %v522_v14  ;;  %v507_v26 = vunpack.c.l.bf16 %v523_v15 }
  0x2f   : > { %v508_v27 = vunpack.c.h.bf16 %v523_v15  ;;  %363 = vst.msk [vmem:[%s608_s20 + $0x90] sm:$0xff] %vm344_vm0, %v330_v12  ;;  %v234_v28 = vsub.f32 %v495_v20, %v574_v3  ;;  %v235_v29 = vsub.f32 %v496_v21, %v574_v3  ;;  %v236_v30 = vsub.f32 %v499_v22, %v574_v3 }
  0x30   : > { %v237_v31 = vsub.f32 %v500_v23, %v574_v3  ;;  %364 = vst.msk [vmem:[%s608_s20 + $0x98] sm:$0xff] %vm344_vm0, %v331_v13  ;;  %v238_v32 = vsub.f32 %v503_v24, %v574_v3  ;;  %v239_v33 = vsub.f32 %v504_v25, %v574_v3  ;;  %v240_v34 = vsub.f32 %v507_v26, %v574_v3 }
  0x31   : > { %v241_v35 = vsub.f32 %v508_v27, %v574_v3  ;;  %365 = vst.msk [vmem:[%s608_s20 + $0xa0] sm:$0xff] %vm344_vm0, %v332_v16  ;;  %v271_v36 = vmul.f32 %v577_v5, %v234_v28  ;;  %v272_v37 = vmul.f32 %v577_v5, %v235_v29  ;;  %v273_v38 = vmul.f32 %v577_v5, %v236_v30 }
  0x32   : > { %v274_v39 = vmul.f32 %v577_v5, %v237_v31  ;;  %366 = vst.msk [vmem:[%s608_s20 + $0xa8] sm:$0xff] %vm344_vm0, %v333_v17  ;;  %v275_v40 = vmul.f32 %v577_v5, %v238_v32  ;;  %v276_v41 = vmul.f32 %v577_v5, %v239_v33  ;;  %v277_v42 = vmul.f32 %v577_v5, %v240_v34 }
  0x33   : > { %v278_v3 = vmul.f32 %v577_v5, %v241_v35  ;;  %367 = vst.msk [vmem:[%s608_s20 + $0xb0] sm:$0xff] %vm344_vm0, %v334_v18  ;;  %v304_v43 = vadd.f32 %v579_v6, %v271_v36  ;;  %v305_v44 = vadd.f32 %v579_v6, %v272_v37  ;;  %v306_v45 = vadd.f32 %v579_v6, %v273_v38 }
  0x34   : > { %v307_v46 = vadd.f32 %v579_v6, %v274_v39  ;;  %368 = vst.msk [vmem:[%s608_s20 + $0xb8] sm:$0xff] %vm344_vm0, %v335_v19  ;;  %v308_v47 = vadd.f32 %v579_v6, %v275_v40  ;;  %v309_v5 = vadd.f32 %v579_v6, %v276_v41  ;;  %v310_v51 = vadd.f32 %v579_v6, %v277_v42 }
  0x35   : > { %v336_v48 = vmax.f32 %v304_v43, 0.0  ;;  %v337_v49 = vmax.f32 %v305_v44, 0.0  ;;  %v338_v50 = vmax.f32 %v306_v45, 0.0  ;;  %v311_v53 = vadd.f32 %v579_v6, %v278_v3 }
  0x36   : > { %v339_v52 = vmax.f32 %v307_v46, 0.0  ;;  %v340_v54 = vmax.f32 %v308_v47, 0.0  ;;  %v341_v55 = vmax.f32 %v309_v5, 0.0  ;;  %v342_v56 = vmax.f32 %v310_v51, 0.0 }
  0x37   : > { %369 = vst.msk [vmem:[%s608_s20 + $0xc0] sm:$0xff] %vm344_vm0, %v336_v48  ;;  %v343_v57 = vmax.f32 %v311_v53, 0.0 }
  0x38   : > { %370 = vst.msk [vmem:[%s608_s20 + $0xc8] sm:$0xff] %vm344_vm0, %v337_v49 }
  0x39   : > { %371 = vst.msk [vmem:[%s608_s20 + $0xd0] sm:$0xff] %vm344_vm0, %v338_v50 }
  0x3a   : > { %372 = vst.msk [vmem:[%s608_s20 + $0xd8] sm:$0xff] %vm344_vm0, %v339_v52 }
  0x3b   : > { %373 = vst.msk [vmem:[%s608_s20 + $0xe0] sm:$0xff] %vm344_vm0, %v340_v54 }
  0x3c   : > { %374 = vst.msk [vmem:[%s608_s20 + $0xe8] sm:$0xff] %vm344_vm0, %v341_v55 }
  0x3d   : > { %375 = vst.msk [vmem:[%s608_s20 + $0xf0] sm:$0xff] %vm344_vm0, %v342_v56 }
  0x3e   : > { %376 = vst.msk [vmem:[%s608_s20 + $0xf8] sm:$0xff] %vm344_vm0, %v343_v57 }
  0x3f PF: > { %s12_s9 = sadd.s32 1, %s538_s9  }
  0x40   : > { %p9_p4 = scmp.ge.s32.totalorder %s12_s9, 4  }
  0x42   :  { %11 = sbr.rel (!%p9_p4) target bundleno = 1 (0x1), region = 58 }

// kernel: double_conv_pallas.3
= control target key start
LH: loop header
LB: loop body
LE: loop exit
PB: predicated region body
PF: predicated region fallthrough
CT: control target
= control target key end

     0   :  { %s1820_s15 = smov 0   ;;  %s2653_s0 = inlined_call_operand.vmem [shape: bf16[2,18,18,8], index: 0, kind: input, shape index: {}]   ;;  %s2654_s1 = inlined_call_operand.vmem [shape: bf16[72,8], index: 1, kind: input, shape index: {}]   ;;  %s2655_s2 = inlined_call_operand.vmem [shape: f32[1,8], index: 2, kind: input, shape index: {}]   ;;  %s2656_s3 = inlined_call_operand.vmem [shape: bf16[2,16,16,8], index: 3, kind: output, shape index: {0}]   ;;  %s2657_s4 = inlined_call_operand.vmem [shape: f32[2,2,8], index: 4, kind: output, shape index: {1}]  }
   0x1 LB: > { %s1602_s16 = sadd.s32 4294967295, %s1791_s15   ;;  %p1606_p0 = scmp.ge.s32.totalorder %s1791_s15, 1  ;;  %s1791_s15 = sphi %s1820_s15, %s15_s15  }
   0x2   : > { %p165_p1 = scmp.lt.s32.totalorder %s1791_s15, 3 }
   0x4   : > { %p166_p2 = pnand %p1606_p0, %p165_p1 }
   0x5   : > { %p195_p3 = scmp.lt.s32.totalorder (!%p166_p2), %s1602_s16, 1  ;;  %s1793_s21 = smov (!%p166_p2), 8  }
   0x6   : > { %169 = sbr.rel (%p166_p2) target bundleno = 583 (0x247), region = 32  ;;  %s1794_s22 = smov (!%p166_p2), 16  }
   0xb   : > { %s2659_s16 = smov (!%p195_p3, %s1602_s16), 1  ;;  %vm392_vm0 = vsmask.f32 7424  ;;  %vm617_vm1 = vcmask 1046528   ;;  %vm843_vm2 = vcmask 1043456   ;;  %vm698_vm3 = vcmask 64512  }
   0xc   : > { %s1773_s17 = smul.u32 216, %s2659_s16  ;;  %vm731_vm4 = vcmask 130048   ;;  %vm810_vm5 = vcmask 195584   ;;  %s1745_s11 = sshll.u32 %s2659_s16, 7  ;;  %vm1276_vm6 = vcmask 60416   ;;  %vm1512_vm7 = vcmask 1040384  }
   0xd   : > { %s2184_s14 = scalar_lea.vmem %s2656_s3, %s1745_s11  ;;  %vm1514_vm8 = vcmask 58368  }
   0xe   : > { %s1834_s20 = scalar_lea.vmem %s2653_s0, %s1773_s17  ;;  %s1610_s17 = sshll.u32 %s2659_s16, 1 }
   0xf   : > { %v1837_v0 = vld [vmem:[%s1834_s20 + $0x18] sm:$0xff]  ;;  %v218_v1 = vld [vmem:[%s1834_s20 + $0x20] sm:$0x1]  ;;  %v212_v4 = vld [vmem:[%s1834_s20 + $0x8] sm:$0x1] }
  0x10   : > { %v1841_v2 = vld [vmem:[%s1834_s20] sm:$0xff]  ;;  %v362_v3 = vunpack.c.l.b16 %v218_v1  ;;  %v1845_v5 = vld [vmem:[%s1834_s20 + $0xc] sm:$0xff]  ;;  %v215_v6 = vld [vmem:[%s1834_s20 + $0x14] sm:$0x1]  ;;  %v418_v7 = vshrl.u32 %v1837_v0, 16  ;;  %v420_v8 = vshll.u32 %v1837_v0, 16  ;;  %v360_v9 = vunpack.c.l.b16 %v212_v4 }
  0x11   : > { %v394_v11 = vshrl.u32 %v1841_v2, 16  ;;  %v396_v12 = vshll.u32 %v1841_v2, 16  ;;  %v361_v13 = vunpack.c.l.b16 %v215_v6  ;;  %v221_v14 = vld [vmem:[%s1834_s20 + $0x2c] sm:$0x1]  ;;  %v408_v17 = vshll.u32 %v1845_v5, 16  ;;  %v1857_v30 = vld [vmem:[%s1834_s20 + $0x24] sm:$0xff] }
  0x12   : > { %v378_v10 = vpack.c.b16 %v362_v3, %v362_v3  ;;  %v422_v15 = vrot.slane %v420_v8, 1  ;;  %v376_v16 = vpack.c.b16 %v360_v9, %v360_v9  ;;  %v406_v23 = vshrl.u32 %v1845_v5, 16  ;;  %v251_v25 = vld [vmem:[%s1834_s20 + $0xa4] sm:$0x1]  ;;  %v1860_v32 = vld [vmem:[%s1834_s20 + $0x9c] sm:$0xff]  ;;  %v1878_v54 = vld [vmem:[%s1834_s20 + $0x30] sm:$0xff] }
  0x13   : > { %v398_v19 = vrot.slane %v396_v12, 1  ;;  %v377_v20 = vpack.c.b16 %v361_v13, %v361_v13  ;;  %v363_v24 = vunpack.c.l.b16 %v221_v14  ;;  %v410_v28 = vrot.slane %v408_v17, 1  ;;  %v224_v46 = vld [vmem:[%s1834_s20 + $0x38] sm:$0x1]  ;;  %v254_v1 = vld [vmem:[%s1834_s20 + $0xb0] sm:$0x1] }
  0x14   : > { %v425_v18 = vshll.u32 %v378_v10, 16  ;;  %v423_v21 = vor.u32 %v422_v15, %v418_v7  ;;  %v401_v22 = vshll.u32 %v376_v16, 16  ;;  %v373_v34 = vunpack.c.l.b16 %v251_v25  ;;  %v1887_v7 = vld [vmem:[%s1834_s20 + $0xa8] sm:$0xff] }
  0x15   : > { %v399_v27 = vor.u32 %v398_v19, %v394_v11  ;;  %v413_v29 = vshll.u32 %v377_v20, 16  ;;  %v624_v36 = vrot.slane %v1837_v0, 1  ;;  %v625_v37 = vrot.slane %v378_v10, 1 }
  0x16   : > { %v427_v26 = vrot.slane %v425_v18, 1  ;;  %v403_v31 = vrot.slane %v401_v22, 1  ;;  %v379_v38 = vpack.c.b16 %v363_v24, %v363_v24  ;;  %v411_v39 = vor.u32 %v410_v28, %v406_v23  ;;  %v227_v22 = vld [vmem:[%s1834_s20 + $0x44] sm:$0x1]  ;;  %v257_v24 = vld [vmem:[%s1834_s20 + $0xbc] sm:$0x1] }
  0x17   : > { %v415_v40 = vrot.slane %v413_v29, 1  ;;  %v432_v41 = vshll.u32 %v1857_v30, 16  ;;  %v389_v42 = vpack.c.b16 %v373_v34, %v373_v34  ;;  %v552_v43 = vshll.u32 %v1860_v32, 16 }
  0x18   : > { %v428_v33 = vsel %vm392_vm0, %v423_v21, %v427_v26  ;;  %v404_v35 = vsel %vm392_vm0, %v399_v27, %v403_v31  ;;  %v618_v44 = vrot.slane %v1841_v2, 1  ;;  %v619_v45 = vrot.slane %v376_v16, 1  ;;  %v1905_v31 = vld [vmem:[%s1834_s20 + $0xb4] sm:$0xff] }
  0x19   : > { %589 = vrot.lane.b32.xlu0 %v428_v33, %s1793_s21  ;;  %585 = vrot.lane.b32.xlu1 %v404_v35, %s1793_s21  ;;  %v626_v47 = vsel %vm617_vm1, %v624_v36, %v625_v37  ;;  %v430_v48 = vshrl.u32 %v1857_v30, 16  ;;  %v437_v49 = vshll.u32 %v379_v38, 16  ;;  %v416_v51 = vsel %vm392_vm0, %v411_v39, %v415_v40  ;;  %v1909_v35 = vld [vmem:[%s1834_s20 + $0x3c] sm:$0xff] }
  0x1a   : > { %v620_v50 = vsel %vm617_vm1, %v618_v44, %v619_v45  ;;  %v434_v52 = vrot.slane %v432_v41, 1  ;;  %v550_v53 = vshrl.u32 %v1860_v32, 16  ;;  %v364_v55 = vunpack.c.l.b16 %v224_v46  ;;  %v230_v46 = vld [vmem:[%s1834_s20 + $0x50] sm:$0x1] }
  0x1b   : > { %666 = vrot.lane.b32.xlu2 %v620_v50, %s1794_s22  ;;  %v554_v56 = vrot.slane %v552_v43, 1  ;;  %v557_v57 = vshll.u32 %v389_v42, 16  ;;  %v621_v58 = vrot.slane %v1845_v5, 1  ;;  %v622_v59 = vrot.slane %v377_v20, 1 }
  0x1c   : > { %v435_v60 = vor.u32 %v434_v52, %v430_v48  ;;  %v439_v61 = vrot.slane %v437_v49, 1  ;;  %v380_v62 = vpack.c.b16 %v364_v55, %v364_v55  ;;  %v444_v63 = vshll.u32 %v1878_v54, 16  ;;  %v1922_v52 = vld [vmem:[%s1834_s20 + $0x48] sm:$0xff] }
  0x1d   : > { %v555_v3 = vor.u32 %v554_v56, %v550_v53  ;;  %v559_v4 = vrot.slane %v557_v57, 1  ;;  %v623_v6 = vsel %vm617_vm1, %v621_v58, %v622_v59  ;;  %v374_v8 = vunpack.c.l.b16 %v254_v1 }
  0x1e   : > { %v440_v9 = vsel %vm392_vm0, %v435_v60, %v439_v61  ;;  %v442_v10 = vshrl.u32 %v1878_v54, 16  ;;  %v446_v11 = vrot.slane %v444_v63, 1  ;;  %v449_v12 = vshll.u32 %v380_v62, 16  ;;  %v1929_v60 = vld [vmem:[%s1834_s20 + $0xc0] sm:$0xff] }
  0x1f   : > { %v560_v13 = vsel %vm392_vm0, %v555_v3, %v559_v4  ;;  %v627_v14 = vrot.slane %v1857_v30, 1  ;;  %v628_v15 = vrot.slane %v379_v38, 1  ;;  %v564_v16 = vshll.u32 %v1887_v7, 16 }
  0x20   : > { %v390_v17 = vpack.c.b16 %v374_v8, %v374_v8  ;;  %v657_v18 = vrot.slane %v1860_v32, 1  ;;  %v658_v19 = vrot.slane %v389_v42, 1  ;;  %v447_v20 = vor.u32 %v446_v11, %v442_v10 }
  0x21   : > { %670 = vrot.lane.b32.xlu0 %v626_v47, %s1794_s22  ;;  %587 = vrot.lane.b32.xlu1 %v416_v51, %s1793_s21  ;;  %v451_v21 = vrot.slane %v449_v12, 1  ;;  %v629_v23 = vsel %vm617_vm1, %v627_v14, %v628_v15  ;;  %v562_v25 = vshrl.u32 %v1887_v7, 16  ;;  %v566_v26 = vrot.slane %v564_v16, 1  ;;  %v260_v51 = vld [vmem:[%s1834_s20 + $0xc8] sm:$0x1] }
  0x22   : > { %v569_v27 = vshll.u32 %v390_v17, 16  ;;  %v365_v28 = vunpack.c.l.b16 %v227_v22  ;;  %v659_v29 = vsel %vm617_vm1, %v657_v18, %v658_v19  ;;  %v375_v33 = vunpack.c.l.b16 %v257_v24 }
  0x23   : > { %668 = vrot.lane.b32.xlu2 %v623_v6, %s1794_s22  ;;  %v452_v34 = vsel %vm392_vm0, %v447_v20, %v451_v21  ;;  %v567_v36 = vor.u32 %v566_v26, %v562_v25  ;;  %v630_v38 = vrot.slane %v1878_v54, 1  ;;  %v631_v39 = vrot.slane %v380_v62, 1  ;;  %v1944_v20 = vld [vmem:[%s1834_s20 + $0x54] sm:$0xff] }
  0x24   : > { %v571_v37 = vrot.slane %v569_v27, 1  ;;  %v381_v40 = vpack.c.b16 %v365_v28, %v365_v28  ;;  %v456_v41 = vshll.u32 %v1909_v35, 16  ;;  %v660_v42 = vrot.slane %v1887_v7, 1  ;;  %v766_v28 = vld [vmem:[%s2654_s1 + $0x8] sm:$0xf] }
  0x25   : > { %v661_v43 = vrot.slane %v390_v17, 1  ;;  %v391_v44 = vpack.c.b16 %v375_v33, %v375_v33  ;;  %v576_v45 = vshll.u32 %v1905_v31, 16  ;;  %v454_v48 = vshrl.u32 %v1909_v35, 16 }
  0x26   : > { %v572_v47 = vsel %vm392_vm0, %v567_v36, %v571_v37  ;;  %v458_v49 = vrot.slane %v456_v41, 1  ;;  %v461_v50 = vshll.u32 %v381_v40, 16  ;;  %v366_v53 = vunpack.c.l.b16 %v230_v46 }
  0x27   : > { %v632_v55 = vsel %vm617_vm1, %v630_v38, %v631_v39  ;;  %v574_v56 = vshrl.u32 %v1905_v31, 16  ;;  %v578_v57 = vrot.slane %v576_v45, 1  ;;  %v581_v58 = vshll.u32 %v391_v44, 16 }
  0x28   : > { %v662_v59 = vsel %vm617_vm1, %v660_v42, %v661_v43  ;;  %v773_v61 = vunpack.c.l.b16 %v260_v51  ;;  %v459_v62 = vor.u32 %v458_v49, %v454_v48  ;;  %v463_v63 = vrot.slane %v461_v50, 1  ;;  %v1957_v42 = vld [vmem:[%s1834_s20 + $0x90] sm:$0xff] }
  0x29   : > { %591 = vrot.lane.b32.xlu0 %v440_v9, %s1793_s21  ;;  %611 = vrot.lane.b32.xlu1 %v560_v13, %s1793_s21  ;;  %v382_v1 = vpack.c.b16 %v366_v53, %v366_v53  ;;  %v468_v3 = vshll.u32 %v1922_v52, 16  ;;  %v633_v4 = vrot.slane %v1909_v35, 1  ;;  %v634_v6 = vrot.slane %v381_v40, 1  ;;  %v233_v13 = vld [vmem:[%s1834_s20 + $0x5c] sm:$0x1]  ;;  %v1971_v53 = vld [vmem:[%s2654_s1] sm:$0xff] }
  0x2a   : > { %v579_v8 = vor.u32 %v578_v57, %v574_v56  ;;  %v583_v9 = vrot.slane %v581_v58, 1  ;;  %v774_v10 = vpack.c.b16 %v773_v61, %v773_v61  ;;  %v778_v11 = vshll.u32 %v1929_v60, 16 }
  0x2b   : > { %672 = vrot.lane.b32.xlu2 %v629_v23, %s1794_s22  ;;  %v464_v12 = vsel %vm392_vm0, %v459_v62, %v463_v63  ;;  %v466_v14 = vshrl.u32 %v1922_v52, 16  ;;  %v470_v15 = vrot.slane %v468_v3, 1  ;;  %v473_v16 = vshll.u32 %v382_v1, 16 }
  0x2c   : > { %v635_v17 = vsel %vm617_vm1, %v633_v4, %v634_v6  ;;  %v584_v18 = vsel %vm392_vm0, %v579_v8, %v583_v9  ;;  %v776_v19 = vshrl.u32 %v1929_v60, 16  ;;  %v367_v21 = vunpack.c.l.b16 %v233_v13  ;;  %v236_v6 = vld [vmem:[%s1834_s20 + $0x68] sm:$0x1] }
  0x2d   : > { %v780_v22 = vrot.slane %v778_v11, 1  ;;  %v783_v23 = vshll.u32 %v774_v10, 16  ;;  %v663_v24 = vrot.slane %v1905_v31, 1  ;;  %v664_v25 = vrot.slane %v391_v44, 1 }
  0x2e   : > { %v471_v26 = vor.u32 %v470_v15, %v466_v14  ;;  %v475_v27 = vrot.slane %v473_v16, 1  ;;  %v480_v33 = vshll.u32 %v1944_v20, 16  ;;  %v941_v36 = vunpack.c.l.b16 %v766_v28 }
  0x2f   : > { %v781_v37 = vor.u32 %v780_v22, %v776_v19  ;;  %v785_v38 = vrot.slane %v783_v23, 1  ;;  %v665_v39 = vsel %vm617_vm1, %v663_v24, %v664_v25  ;;  %v478_v44 = vshrl.u32 %v1944_v20, 16  ;;  %v239_v24 = vld [vmem:[%s1834_s20 + $0x74] sm:$0x1]  ;;  %v2001_v25 = vld [vmem:[%s1834_s20 + $0x6c] sm:$0xff] }
  0x30   : > { %v943_v40 = vpack.c.b16 %v941_v36, %v941_v36  ;;  %v476_v41 = vsel %vm392_vm0, %v471_v26, %v475_v27  ;;  %v482_v45 = vrot.slane %v480_v33, 1  ;;  %v636_v49 = vrot.slane %v1922_v52, 1  ;;  %v1072_v27 = vld [vmem:[%s2654_s1 + $0x20] sm:$0xf] }
  0x31   : > { %692 = vrot.lane.b32.xlu0 %v659_v29, %s1794_s22  ;;  %593 = vrot.lane.b32.xlu1 %v452_v34, %s1793_s21  ;;  %v383_v29 = vpack.c.b16 %v367_v21, %v367_v21  ;;  %v248_v34 = vld [vmem:[%s1834_s20 + $0x98] sm:$0x1]  ;;  %v786_v48 = vsel %vm392_vm0, %v781_v37, %v785_v38  ;;  %v637_v50 = vrot.slane %v382_v1, 1  ;;  %v540_v51 = vshll.u32 %v1957_v42, 16 }
  0x32   : > { %v372_v43 = vunpack.c.l.b16 %v248_v34  ;;  %v789_v56 = vrot.slane %v1929_v60, 1  ;;  %v790_v57 = vrot.slane %v774_v10, 1  ;;  %v483_v58 = vor.u32 %v482_v45, %v478_v44 }
  0x33   : > { %613 = vrot.lane.b32.xlu2 %v572_v47, %s1793_s21  ;;  %v485_v46 = vshll.u32 %v383_v29, 16  ;;  %v1962_v47 = vsel %vm843_vm2, %v943_v40, 0  ;;  %v638_v61 = vsel %vm617_vm1, %v636_v49, %v637_v50  ;;  %v538_v62 = vshrl.u32 %v1957_v42, 16  ;;  %v1765_v50 = vld [vmem:[%s2654_s1 + $0xc] sm:$0xff] }
  0x34   : > { %956 = vmatpush.bf16.msra.mxu1 %v1962_v47  ;;  %v542_v63 = vrot.slane %v540_v51, 1  ;;  %v791_v3 = vsel %vm617_vm1, %v789_v56, %v790_v57  ;;  %v639_v10 = vrot.slane %v1944_v20, 1  ;;  %v640_v11 = vrot.slane %v383_v29, 1  ;;  %v800_v29 = vld [vmem:[%s2654_s1 + $0x14] sm:$0xf] }
  0x35   : > { %v654_v13 = vrot.slane %v1957_v42, 1  ;;  %v369_v26 = vunpack.c.l.b16 %v239_v24  ;;  %v1078_v28 = vunpack.c.l.b16 %v1072_v27  ;;  %v504_v34 = vshll.u32 %v2001_v25, 16 }
  0x36   : > { %v543_v8 = vor.u32 %v542_v63, %v538_v62  ;;  %v641_v16 = vsel %vm617_vm1, %v639_v10, %v640_v11  ;;  %v806_v36 = vunpack.c.l.b16 %v800_v29  ;;  %v502_v38 = vshrl.u32 %v2001_v25, 16  ;;  %v2033_v63 = vld [vmem:[%s1834_s20 + $0x78] sm:$0xff] }
  0x37   : > { %v385_v33 = vpack.c.b16 %v369_v26, %v369_v26  ;;  %v1080_v37 = vpack.c.b16 %v1078_v28, %v1078_v28  ;;  %v648_v11 = vrot.slane %v2033_v63, 1  ;;  %v2051_v26 = vld [vmem:[%s1834_s20 + $0x84] sm:$0xff] }
  0x38   : > { %957 = vmatpush.bf16.msra.mxu1 %v1971_v53  ;;  %v651_v29 = vrot.slane %v2051_v26, 1 }
  0x39   : > { %674 = vrot.lane.b32.xlu0 %v632_v55, %s1794_s22  ;;  %694 = vrot.lane.b32.xlu1 %v662_v59, %s1794_s22  ;;  %v388_v55 = vpack.c.b16 %v372_v43, %v372_v43  ;;  %v487_v59 = vrot.slane %v485_v46, 1  ;;  %v509_v40 = vshll.u32 %v385_v33, 16  ;;  %v2012_v43 = vsel %vm843_vm2, %v1080_v37, 0 }
  0x3a   : > { %1093 = vmatpush.bf16.msra.mxu2 %v2012_v43 }
  0x3b   : > { %595 = vrot.lane.b32.xlu2 %v464_v12, %s1793_s21  ;;  %v545_v1 = vshll.u32 %v388_v55, 16  ;;  %v488_v4 = vsel %vm392_vm0, %v483_v58, %v487_v59  ;;  %v368_v12 = vunpack.c.l.b16 %v236_v6  ;;  %v655_v14 = vrot.slane %v388_v55, 1 }
  0x3c   : > { %v511_v45 = vrot.slane %v509_v40, 1  ;;  %v514_v6 = vshrl.u32 %v2033_v63, 16 }
  0x3d   : > { %v547_v9 = vrot.slane %v545_v1, 1  ;;  %v656_v19 = vsel %vm617_vm1, %v654_v13, %v655_v14  ;;  %v645_v14 = vrot.slane %v2001_v25, 1 }
  0x3f   : > { %v548_v15 = vsel %vm392_vm0, %v543_v8, %v547_v9 }
  0x41   : > { %615 = vrot.lane.b32.xlu0 %v584_v18, %s1793_s21  ;;  %676 = vrot.lane.b32.xlu1 %v635_v17, %s1794_s22  ;;  %v1990_v17 = vld [vmem:[%s1834_s20 + $0x60] sm:$0xff]  ;;  %v384_v18 = vpack.c.b16 %v368_v12, %v368_v12 }
  0x42   : > { %v642_v21 = vrot.slane %v1990_v17, 1  ;;  %v492_v51 = vshll.u32 %v1990_v17, 16  ;;  %v490_v55 = vshrl.u32 %v1990_v17, 16 }
  0x43   : > { %696 = vrot.lane.b32.xlu2 %v665_v39, %s1794_s22  ;;  %v643_v22 = vrot.slane %v384_v18, 1  ;;  %v506_v39 = vrot.slane %v504_v34, 1  ;;  %v497_v57 = vshll.u32 %v384_v18, 16 }
  0x44   : > { %v494_v56 = vrot.slane %v492_v51, 1 }
  0x45   : > { %v644_v23 = vsel %vm617_vm1, %v642_v21, %v643_v22  ;;  %v507_v44 = vor.u32 %v506_v39, %v502_v38  ;;  %v499_v59 = vrot.slane %v497_v57, 1 }
  0x46   : > { %v495_v58 = vor.u32 %v494_v56, %v490_v55  ;;  %v526_v56 = vshrl.u32 %v2051_v26, 16 }
  0x47   : > { %v512_v49 = vsel %vm392_vm0, %v507_v44, %v511_v45 }
  0x48   : > { %v500_v62 = vsel %vm392_vm0, %v495_v58, %v499_v59 }
  0x49   : > { %597 = vrot.lane.b32.xlu0 %v476_v41, %s1793_s21  ;;  %787 = vrot.lane.b32.xlu1 %v786_v48, %s1793_s21  ;;  %v808_v41 = vpack.c.b16 %v806_v36, %v806_v36  ;;  %v2019_v48 = vld [vmem:[%s2654_s1 + $0x18] sm:$0xff] }
  0x4a   : > { %1094 = vmatpush.bf16.msra.mxu2 %v2019_v48 }
  0x4b   : > { %678 = vrot.lane.b32.xlu2 %v638_v61, %s1794_s22  ;;  %v845_v46 = vsel %vm843_vm2, %v808_v41, 0  ;;  %v242_v61 = vld [vmem:[%s1834_s20 + $0x80] sm:$0x1] }
  0x4c   : > { %853 = vmatpush.bf16.msra.mxu0 %v845_v46  ;;  %1767 = vmatpush.bf16.msra.mxu3 %v845_v46  ;;  %v370_v1 = vunpack.c.l.b16 %v242_v61 }
  0x50   : > { %854 = vmatpush.bf16.msra.mxu0 %v1765_v50  ;;  %1768 = vmatpush.bf16.msra.mxu3 %v1765_v50  ;;  %v528_v50 = vshll.u32 %v2051_v26, 16 }
  0x51   : > { %792 = vrot.lane.b32.xlu0 %v791_v3, %s1794_s22  ;;  %599 = vrot.lane.b32.xlu1 %v488_v4, %s1793_s21  ;;  %v386_v3 = vpack.c.b16 %v370_v1, %v370_v1  ;;  %v516_v4 = vshll.u32 %v2033_v63, 16 }
  0x52   : > { %v530_v57 = vrot.slane %v528_v50, 1 }
  0x53   : > { %609 = vrot.lane.b32.xlu2 %v548_v15, %s1793_s21  ;;  %v518_v8 = vrot.slane %v516_v4, 1  ;;  %v649_v12 = vrot.slane %v386_v3, 1  ;;  %v646_v15 = vrot.slane %v385_v33, 1 }
  0x54   : > { %1769 = vmatpush.bf16.msrb.mxu3 %v1962_v47  ;;  %v521_v47 = vshll.u32 %v386_v3, 16  ;;  %v531_v59 = vor.u32 %v530_v57, %v526_v56 }
  0x55   : > { %v519_v9 = vor.u32 %v518_v8, %v514_v6  ;;  %v647_v18 = vsel %vm617_vm1, %v645_v14, %v646_v15 }
  0x56   : > { %v523_v10 = vrot.slane %v521_v47, 1  ;;  %v263_v47 = vld [vmem:[%s1834_s20 + $0xd4] sm:$0x1] }
  0x58   : > { %1770 = vmatpush.bf16.msrb.mxu3 %v1971_v53  ;;  %v524_v13 = vsel %vm392_vm0, %v519_v9, %v523_v10  ;;  %v650_v53 = vsel %vm617_vm1, %v648_v11, %v649_v12  ;;  %v1045_v9 = vunpack.c.l.b16 %v263_v47 }
  0x59   : > { %680 = vrot.lane.b32.xlu0 %v641_v16, %s1794_s22  ;;  %690 = vrot.lane.b32.xlu1 %v656_v19, %s1794_s22  ;;  %v245_v19 = vld [vmem:[%s1834_s20 + $0x8c] sm:$0x1] }
  0x5a   : > { %v371_v22 = vunpack.c.l.b16 %v245_v19  ;;  %v1046_v10 = vpack.c.b16 %v1045_v9, %v1045_v9 }
  0x5b   : > { %601 = vrot.lane.b32.xlu2 %v500_v62, %s1793_s21 }
  0x5c   : > { %v387_v27 = vpack.c.b16 %v371_v22, %v371_v22 }
  0x5e   : > { %v652_v33 = vrot.slane %v387_v27, 1  ;;  %v533_v58 = vshll.u32 %v387_v27, 16 }
  0x60   : > { %v653_v34 = vsel %vm617_vm1, %v651_v29, %v652_v33 }
  0x61   : > { %682 = vrot.lane.b32.xlu0 %v644_v23, %s1794_s22  ;;  %603 = vrot.lane.b32.xlu1 %v512_v49, %s1793_s21 }
  0x63   : > { %684 = vrot.lane.b32.xlu2 %v647_v18, %s1794_s22 }
  0x69   : > { %605 = vrot.lane.b32.xlu0 %v524_v13, %s1793_s21  ;;  %686 = vrot.lane.b32.xlu1 %v650_v53, %s1794_s22  ;;  %v1055_v53 = vshll.u32 %v1046_v10, 16 }
  0x6b   : > { %v1057_v15 = vrot.slane %v1055_v53, 1 }
  0x71   : > { %688 = vrot.lane.b32.xlu0 %v653_v34, %s1794_s22 }
  0x75   : > { %v667_v16 = vpop.permute.xlu2 %666 }
  0x7d   : > { %v669_v38 = vpop.permute.xlu2 %668 }
  0x85   : > { %v673_v46 = vpop.permute.xlu2 %672 }
  0x8b   : > { %v590_v21 = vpop.permute.xlu0 %589  ;;  %v586_v23 = vpop.permute.xlu1 %585 }
  0x8c   : > { %v700_v24 = vsel %vm698_vm3, %v1841_v2, %v586_v23  ;;  %v704_v36 = vsel %vm698_vm3, %v1837_v0, %v590_v21 }
  0x8d   : > { %v733_v28 = vsel %vm731_vm4, %v700_v24, %v667_v16  ;;  %v614_v62 = vpop.permute.xlu2 %613 }
  0x8e   : > { %1703 = vmatmul.msk.bf16.vlgmr.msra.gmra.mxu1 %vm810_vm5, %v733_v28  ;;  %v728_v1 = vsel %vm698_vm3, %v1887_v7, %v614_v62  ;;  %v2100_v7 = vld [vmem:[%s1834_s20 + $0xcc] sm:$0xff]  ;;  %v2175_v62 = vld [vmem:[%s2655_s2] ss:$0 sm:$0xff]  ;;  %s208_s20 = scalar_lea.vmem %s2657_s4, %s1610_s17 }
  0x8f   : > { %v1048_v12 = vshrl.u32 %v2100_v7, 16 }
  0x93   : > { %v671_v37 = vpop.permute.xlu0 %670  ;;  %v588_v2 = vpop.permute.xlu1 %587 }
  0x94   : > { %v737_v39 = vsel %vm731_vm4, %v704_v36, %v671_v37  ;;  %v702_v40 = vsel %vm698_vm3, %v1845_v5, %v588_v2 }
  0x95   : > { %1727 = vmatmul.msk.bf16.vlgmr.msra.gmra.mxu2 %vm810_vm5, %v737_v39  ;;  %v735_v41 = vsel %vm731_vm4, %v702_v40, %v669_v38  ;;  %v1062_v38 = vrot.slane %v1046_v10, 1 }
  0x96   : > { %1683 = vmatmul.msk.bf16.vlgmr.msra.gmra.mxu0 %vm810_vm5, %v735_v41 }
  0x9b   : > { %v592_v44 = vpop.permute.xlu0 %591  ;;  %v612_v45 = vpop.permute.xlu1 %611 }
  0x9c   : > { %v706_v0 = vsel %vm698_vm3, %v1857_v30, %v592_v44  ;;  %v726_v49 = vsel %vm698_vm3, %v1860_v32, %v612_v45  ;;  %v535_v32 = vrot.slane %v533_v58, 1 }
  0x9d   : > { %v739_v51 = vsel %vm731_vm4, %v706_v0, %v673_v46 }
  0x9e   : > { %1704 = vmatmul.msk.bf16.gmra.mxu1 %vm810_vm5, %v735_v41  ;;  %v536_v61 = vsel %vm392_vm0, %v531_v59, %v535_v32 }
  0x9f   : > { %607 = vrot.lane.b32.xlu2 %v536_v61, %s1793_s21 }
  0xa3   : > { %v693_v5 = vpop.permute.xlu0 %692  ;;  %v594_v30 = vpop.permute.xlu1 %593 }
  0xa4   : > { %v2074_v55 = vsel %vm731_vm4, %v726_v49, %v693_v5 }
  0xa5   : > { %1695 = vmatmul.msk.bf16.vlgmr.msra.gmra.mxu3 %vm810_vm5, %v2074_v55  ;;  %1728 = vmatmul.msk.bf16.gmra.mxu2 %vm810_vm5, %v739_v51 }
  0xa6   : > { %1771 = vmatpush.bf16.msra.mxu3 %v2012_v43  ;;  %1684 = vmatmul.msk.bf16.gmra.mxu0 %vm810_vm5, %v737_v39  ;;  %v708_v43 = vsel %vm698_vm3, %v1878_v54, %v594_v30  ;;  %v1050_v54 = vshll.u32 %v2100_v7, 16 }
  0xa8   : > { %v1052_v13 = vrot.slane %v1050_v54, 1 }
  0xaa   : > { %1772 = vmatpush.bf16.msra.mxu3 %v2019_v48  ;;  %v596_v48 = vpop.permute.xlu2 %595  ;;  %v1053_v14 = vor.u32 %v1052_v13, %v1048_v12 }
  0xab   : > { %v695_v3 = vpop.permute.xlu1 %694  ;;  %v675_v4 = vpop.permute.xlu0 %674  ;;  %v710_v21 = vsel %vm698_vm3, %v1909_v35, %v596_v48 }
  0xac   : > { %v2091_v6 = vsel %vm731_vm4, %v728_v1, %v695_v3  ;;  %v741_v8 = vsel %vm731_vm4, %v708_v43, %v675_v4  ;;  %v1058_v19 = vsel %vm392_vm0, %v1053_v14, %v1057_v15 }
  0xad   : > { %1059 = vrot.lane.b32.xlu1 %v1058_v19, %s1793_s21 }
  0xae   : > { %1705 = vmatmul.msk.bf16.gmra.mxu1 %vm810_vm5, %v737_v39 }
  0xb2   : > { %v697_v18 = vpop.permute.xlu2 %696 }
  0xb3   : > { %v616_v11 = vpop.permute.xlu0 %615  ;;  %v677_v22 = vpop.permute.xlu1 %676 }
  0xb4   : > { %v730_v16 = vsel %vm698_vm3, %v1905_v31, %v616_v11  ;;  %v743_v24 = vsel %vm731_vm4, %v710_v21, %v677_v22 }
  0xb5   : > { %1696 = vmatmul.msk.bf16.gmra.mxu3 %vm810_vm5, %v2091_v6  ;;  %1729 = vmatmul.msk.bf16.gmra.mxu2 %vm810_vm5, %v741_v8  ;;  %v2112_v23 = vsel %vm731_vm4, %v730_v16, %v697_v18 }
  0xb6   : > { %1685 = vmatmul.msk.bf16.gmra.mxu0 %vm810_vm5, %v739_v51 }
  0xba   : > { %v679_v33 = vpop.permute.xlu2 %678 }
  0xbb   : > { %v598_v31 = vpop.permute.xlu0 %597  ;;  %v788_v27 = vpop.permute.xlu1 %787 }
  0xbc   : > { %v795_v35 = vsel %vm698_vm3, %v1929_v60, %v788_v27  ;;  %v712_v29 = vsel %vm698_vm3, %v1922_v52, %v598_v31  ;;  %v1061_v60 = vrot.slane %v2100_v7, 1 }
  0xbd   : > { %v745_v36 = vsel %vm731_vm4, %v712_v29, %v679_v33 }
  0xbe   : > { %1706 = vmatmul.msk.bf16.gmra.mxu1 %vm810_vm5, %v739_v51  ;;  %v1063_v2 = vsel %vm617_vm1, %v1061_v60, %v1062_v38 }
  0xbf   : > { %1064 = vrot.lane.b32.xlu2 %v1063_v2, %s1794_s22 }
  0xc2   : > { %v610_v52 = vpop.permute.xlu2 %609 }
  0xc3   : > { %v793_v28 = vpop.permute.xlu0 %792  ;;  %v600_v37 = vpop.permute.xlu1 %599  ;;  %v724_v39 = vsel %vm698_vm3, %v1957_v42, %v610_v52 }
  0xc4   : > { %v2125_v34 = vsel %vm731_vm4, %v795_v35, %v793_v28  ;;  %v714_v41 = vsel %vm698_vm3, %v1944_v20, %v600_v37 }
  0xc5   : > { %1697 = vmatmul.msk.bf16.gmra.mxu3 %vm810_vm5, %v2112_v23  ;;  %1730 = vmatmul.msk.bf16.gmra.mxu2 %vm810_vm5, %v743_v24 }
  0xc6   : > { %1686 = vmatmul.msk.bf16.gmra.mxu0 %vm810_vm5, %v741_v8 }
  0xca   : > { %v602_v46 = vpop.permute.xlu2 %601 }
  0xcb   : > { %v691_v40 = vpop.permute.xlu1 %690  ;;  %v681_v44 = vpop.permute.xlu0 %680  ;;  %v716_v42 = vsel %vm698_vm3, %v1990_v17, %v602_v46 }
  0xcc   : > { %v2141_v45 = vsel %vm731_vm4, %v724_v39, %v691_v40  ;;  %v747_v0 = vsel %vm731_vm4, %v714_v41, %v681_v44 }
  0xce   : > { %1707 = vmatmul.msk.bf16.gmra.mxu1 %vm810_vm5, %v741_v8 }
  0xd2   : > { %v685_v51 = vpop.permute.xlu2 %684 }
  0xd3   : > { %v683_v20 = vpop.permute.xlu0 %682  ;;  %v604_v50 = vpop.permute.xlu1 %603 }
  0xd4   : > { %v749_v49 = vsel %vm731_vm4, %v716_v42, %v683_v20  ;;  %v718_v5 = vsel %vm698_vm3, %v2001_v25, %v604_v50 }
  0xd5   : > { %1698 = vmatmul.msk.bf16.gmra.mxu3 %vm810_vm5, %v2125_v34  ;;  %1731 = vmatmul.msk.bf16.gmra.mxu2 %vm810_vm5, %v745_v36  ;;  %v751_v56 = vsel %vm731_vm4, %v718_v5, %v685_v51 }
  0xd6   : > { %1687 = vmatmul.msk.bf16.gmra.mxu0 %vm810_vm5, %v743_v24 }
  0xdb   : > { %v606_v57 = vpop.permute.xlu0 %605  ;;  %v687_v30 = vpop.permute.xlu1 %686 }
  0xdc   : > { %v720_v58 = vsel %vm698_vm3, %v2033_v63, %v606_v57 }
  0xdd   : > { %v753_v25 = vsel %vm731_vm4, %v720_v58, %v687_v30 }
  0xde   : > { %1708 = vmatmul.msk.bf16.gmra.mxu1 %vm810_vm5, %v743_v24 }
  0xe3   : > { %v689_v10 = vpop.permute.xlu0 %688 }
  0xe5   : > { %1715 = vmatmul.msk.bf16.vlgmr.msrb.gmra.mxu3 %vm810_vm5, %v2141_v45  ;;  %1732 = vmatmul.msk.bf16.gmra.mxu2 %vm810_vm5, %v747_v0 }
  0xe6   : > { %1688 = vmatmul.msk.bf16.gmra.mxu0 %vm810_vm5, %v745_v36 }
  0xee   : > { %1709 = vmatmul.msk.bf16.gmra.mxu1 %vm810_vm5, %v745_v36 }
  0xf5   : > { %1716 = vmatmul.msk.bf16.gmra.mxu3 %vm810_vm5, %v2074_v55  ;;  %1733 = vmatmul.msk.bf16.gmra.mxu2 %vm810_vm5, %v749_v49 }
  0xf6   : > { %1689 = vmatmul.msk.bf16.gmra.mxu0 %vm810_vm5, %v747_v0 }
  0xf9   : > { %v608_v43 = vpop.permute.xlu2 %607 }
  0xfa   : > { %v722_v9 = vsel %vm698_vm3, %v2051_v26, %v608_v43 }
  0xfb   : > { %v755_v12 = vsel %vm731_vm4, %v722_v9, %v689_v10 }
  0xfe   : > { %1710 = vmatmul.msk.bf16.gmra.mxu1 %vm810_vm5, %v747_v0 }
 0x105   : > { %1717 = vmatmul.msk.bf16.gmra.mxu3 %vm810_vm5, %v2091_v6  ;;  %1734 = vmatmul.msk.bf16.gmra.mxu2 %vm810_vm5, %v751_v56 }
 0x106   : > { %1690 = vmatmul.msk.bf16.gmra.mxu0 %vm810_vm5, %v749_v49 }
 0x10b   : > { %v959_v17 = vpop.f32.mrf.mxu1 }
 0x10e   : > { %1711 = vmatmul.msk.bf16.gmra.mxu1 %vm810_vm5, %v749_v49 }
 0x113   : > { %v856_v59 = vpop.f32.mrf.mxu0  ;;  %v961_v32 = vpop.f32.mrf.mxu1 }
 0x114   : > { %v960_v61 = vadd.f32 %v959_v17, %v856_v59 }
 0x115   : > { %1718 = vmatmul.msk.bf16.gmra.mxu3 %vm810_vm5, %v2112_v23  ;;  %1735 = vmatmul.msk.bf16.gmra.mxu2 %vm810_vm5, %v753_v25 }
 0x116   : > { %1691 = vmatmul.msk.bf16.gmra.mxu0 %vm810_vm5, %v751_v56 }
 0x118   : > { %v1096_v1 = vpop.f32.mrf.mxu2 }
 0x119   : > { %v1176_v63 = vadd.f32 %v1096_v1, %v960_v61 }
 0x11b   : > { %v2179_v3 = vadd.f32 %v2175_v62, %v1176_v63  ;;  %v858_v4 = vpop.f32.mrf.mxu0  ;;  %v964_v8 = vpop.f32.mrf.mxu1 }
 0x11c   : > { %v962_v47 = vadd.f32 %v961_v32, %v858_v4  ;;  %v1065_v32 = vpop.permute.xlu2 %1064 }
 0x11d   : > { %v1244_v48 = vpack.c.bf16 %v2179_v3, %v2179_v3 }
 0x11e   : > { %1712 = vmatmul.msk.bf16.gmra.mxu1 %vm810_vm5, %v751_v56 }
 0x11f   : > { %1277 = vst.msk [vmem:[%s2184_s14] sm:$0xf] %vm1276_vm6, %v1244_v48  ;;  %v1060_v30 = vpop.permute.xlu1 %1059 }
 0x120   : > { %v1098_v54 = vpop.f32.mrf.mxu2 }
 0x121   : > { %v1177_v11 = vadd.f32 %v1098_v54, %v962_v47 }
 0x123   : > { %v2195_v13 = vadd.f32 %v2175_v62, %v1177_v11  ;;  %v861_v53 = vpop.f32.mrf.mxu0  ;;  %v966_v14 = vpop.f32.mrf.mxu1 }
 0x124   : > { %v965_v26 = vadd.f32 %v964_v8, %v861_v53 }
 0x125   : > { %v1245_v15 = vpack.c.bf16 %v2195_v13, %v2195_v13  ;;  %1736 = vmatmul.msk.bf16.gmra.mxu2 %vm810_vm5, %v755_v12  ;;  %1739 = vmatmul.msk.bf16.vlgmr.msra.gmra.mxu3 %vm810_vm5, %v2091_v6 }
 0x126   : > { %1692 = vmatmul.msk.bf16.gmra.mxu0 %vm810_vm5, %v753_v25 }
 0x127   : > { %1278 = vst.msk [vmem:[%s2184_s14 + $0x4] sm:$0xf] %vm1276_vm6, %v1245_v15 }
 0x128   : > { %v2205_v16 = vpop.f32.mrf.mxu3  ;;  %v1101_v18 = vpop.f32.mrf.mxu2 }
 0x129   : > { %v1178_v19 = vadd.f32 %v1101_v18, %v965_v26 }
 0x12b   : > { %v2208_v21 = vadd.f32 %v2175_v62, %v1178_v19  ;;  %v863_v22 = vpop.f32.mrf.mxu0  ;;  %v969_v24 = vpop.f32.mrf.mxu1 }
 0x12c   : > { %v967_v6 = vadd.f32 %v966_v14, %v863_v22 }
 0x12d   : > { %v1246_v31 = vpack.c.bf16 %v2208_v21, %v2208_v21 }
 0x12e   : > { %1713 = vmatmul.msk.bf16.gmra.mxu1 %vm810_vm5, %v753_v25 }
 0x12f   : > { %1279 = vst.msk [vmem:[%s2184_s14 + $0x8] sm:$0xf] %vm1276_vm6, %v1246_v31 }
 0x130   : > { %v2215_v27 = vpop.f32.mrf.mxu3  ;;  %v1103_v35 = vpop.f32.mrf.mxu2 }
 0x131   : > { %v1179_v28 = vadd.f32 %v1103_v35, %v967_v6 }
 0x133   : > { %v2218_v29 = vadd.f32 %v2175_v62, %v1179_v28  ;;  %v866_v33 = vpop.f32.mrf.mxu0  ;;  %v971_v36 = vpop.f32.mrf.mxu1 }
 0x134   : > { %v970_v60 = vadd.f32 %v969_v24, %v866_v33 }
 0x135   : > { %v1247_v37 = vpack.c.bf16 %v2218_v29, %v2218_v29  ;;  %1737 = vmatmul.msk.bf16.gmra.mxu2 %vm810_vm5, %v2141_v45  ;;  %1740 = vmatmul.msk.bf16.gmra.mxu3 %vm810_vm5, %v2112_v23 }
 0x136   : > { %1693 = vmatmul.msk.bf16.gmra.mxu0 %vm810_vm5, %v755_v12 }
 0x137   : > { %1280 = vst.msk [vmem:[%s2184_s14 + $0xc] sm:$0xf] %vm1276_vm6, %v1247_v37 }
 0x138   : > { %v2229_v38 = vpop.f32.mrf.mxu3  ;;  %v1106_v2 = vpop.f32.mrf.mxu2 }
 0x139   : > { %v1180_v52 = vadd.f32 %v1106_v2, %v970_v60 }
 0x13b   : > { %v2232_v39 = vadd.f32 %v2175_v62, %v1180_v52  ;;  %v868_v40 = vpop.f32.mrf.mxu0  ;;  %v974_v41 = vpop.f32.mrf.mxu1 }
 0x13c   : > { %v972_v23 = vadd.f32 %v971_v36, %v868_v40 }
 0x13d   : > { %v1248_v44 = vpack.c.bf16 %v2232_v39, %v2232_v39 }
 0x13e   : > { %1714 = vmatmul.msk.bf16.gmra.mxu1 %vm810_vm5, %v755_v12 }
 0x13f   : > { %1281 = vst.msk [vmem:[%s2184_s14 + $0x10] sm:$0xf] %vm1276_vm6, %v1248_v44 }
 0x140   : > { %v2239_v0 = vpop.f32.mrf.mxu3  ;;  %v1108_v46 = vpop.f32.mrf.mxu2 }
 0x141   : > { %v1181_v42 = vadd.f32 %v1108_v46, %v972_v23 }
 0x143   : > { %v2242_v20 = vadd.f32 %v2175_v62, %v1181_v42  ;;  %v871_v49 = vpop.f32.mrf.mxu0  ;;  %v976_v50 = vpop.f32.mrf.mxu1 }
 0x144   : > { %v975_v51 = vadd.f32 %v974_v41, %v871_v49 }
 0x145   : > { %v1249_v5 = vpack.c.bf16 %v2242_v20, %v2242_v20  ;;  %1738 = vmatmul.msk.bf16.gmra.mxu2 %vm810_vm5, %v2074_v55  ;;  %1741 = vmatmul.msk.bf16.gmra.mxu3 %vm810_vm5, %v2125_v34 }
 0x146   : > { %1694 = vmatmul.msk.bf16.gmra.mxu0 %vm810_vm5, %v2141_v45  ;;  %v1067_v45 = vsel %vm698_vm3, %v2100_v7, %v1060_v30 }
 0x147   : > { %1282 = vst.msk [vmem:[%s2184_s14 + $0x14] sm:$0xf] %vm1276_vm6, %v1249_v5  ;;  %v1069_v43 = vsel %vm731_vm4, %v1067_v45, %v1065_v32 }
 0x148   : > { %v2254_v56 = vpop.f32.mrf.mxu3  ;;  %v1111_v17 = vpop.f32.mrf.mxu2 }
 0x149   : > { %v1182_v57 = vadd.f32 %v1111_v17, %v975_v51 }
 0x14b   : > { %v2257_v58 = vadd.f32 %v2175_v62, %v1182_v57  ;;  %v873_v25 = vpop.f32.mrf.mxu0  ;;  %v979_v55 = vpop.f32.mrf.mxu1 }
 0x14c   : > { %v977_v59 = vadd.f32 %v976_v50, %v873_v25 }
 0x14d   : > { %v1250_v34 = vpack.c.bf16 %v2257_v58, %v2257_v58 }
 0x14f   : > { %1283 = vst.msk [vmem:[%s2184_s14 + $0x18] sm:$0xf] %vm1276_vm6, %v1250_v34 }
 0x150   : > { %v2265_v61 = vpop.f32.mrf.mxu3  ;;  %v1113_v1 = vpop.f32.mrf.mxu2 }
 0x151   : > { %v1183_v63 = vadd.f32 %v1113_v1, %v977_v59 }
 0x153   : > { %v2269_v4 = vadd.f32 %v2175_v62, %v1183_v63  ;;  %v876_v8 = vpop.f32.mrf.mxu0  ;;  %v981_v48 = vpop.f32.mrf.mxu1 }
 0x154   : > { %v980_v7 = vadd.f32 %v979_v55, %v876_v8 }
 0x155   : > { %v1251_v47 = vpack.c.bf16 %v2269_v4, %v2269_v4  ;;  %1742 = vmatmul.msk.bf16.gmra.mxu3 %vm810_vm5, %v1069_v43 }
 0x157   : > { %1284 = vst.msk [vmem:[%s2184_s14 + $0x1c] sm:$0xf] %vm1276_vm6, %v1251_v47 }
 0x158   : > { %v2276_v9 = vpop.f32.mrf.mxu3  ;;  %v1116_v10 = vpop.f32.mrf.mxu2 }
 0x159   : > { %v1184_v54 = vadd.f32 %v1116_v10, %v980_v7 }
 0x15b   : > { %v2279_v11 = vadd.f32 %v2175_v62, %v1184_v54  ;;  %v878_v12 = vpop.f32.mrf.mxu0  ;;  %v984_v53 = vpop.f32.mrf.mxu1 }
 0x15c   : > { %v982_v15 = vadd.f32 %v981_v48, %v878_v12 }
 0x15d   : > { %v1252_v14 = vpack.c.bf16 %v2279_v11, %v2279_v11 }
 0x15f   : > { %1285 = vst.msk [vmem:[%s2184_s14 + $0x20] sm:$0xf] %vm1276_vm6, %v1252_v14 }
 0x160   : > { %v2285_v26 = vpop.f32.mrf.mxu3  ;;  %v1118_v18 = vpop.f32.mrf.mxu2 }
 0x161   : > { %v1185_v19 = vadd.f32 %v1118_v18, %v982_v15 }
 0x163   : > { %v2288_v22 = vadd.f32 %v2175_v62, %v1185_v19  ;;  %v881_v24 = vpop.f32.mrf.mxu0  ;;  %v986_v31 = vpop.f32.mrf.mxu1 }
 0x164   : > { %v985_v35 = vadd.f32 %v984_v53, %v881_v24 }
 0x165   : > { %v1253_v6 = vpack.c.bf16 %v2288_v22, %v2288_v22 }
 0x167   : > { %1286 = vst.msk [vmem:[%s2184_s14 + $0x24] sm:$0xf] %vm1276_vm6, %v1253_v6 }
 0x168   : > { %v2294_v28 = vpop.f32.mrf.mxu3  ;;  %v1121_v33 = vpop.f32.mrf.mxu2 }
 0x169   : > { %v1186_v36 = vadd.f32 %v1121_v33, %v985_v35 }
 0x16b   : > { %v2297_v37 = vadd.f32 %v2175_v62, %v1186_v36  ;;  %v883_v60 = vpop.f32.mrf.mxu0  ;;  %v989_v2 = vpop.f32.mrf.mxu1 }
 0x16c   : > { %v987_v40 = vadd.f32 %v986_v31, %v883_v60 }
 0x16d   : > { %v1254_v52 = vpack.c.bf16 %v2297_v37, %v2297_v37 }
 0x16f   : > { %1287 = vst.msk [vmem:[%s2184_s14 + $0x28] sm:$0xf] %vm1276_vm6, %v1254_v52 }
 0x170   : > { %v2303_v41 = vpop.f32.mrf.mxu3  ;;  %v1123_v44 = vpop.f32.mrf.mxu2 }
 0x171   : > { %v1187_v23 = vadd.f32 %v1123_v44, %v987_v40 }
 0x173   : > { %v2306_v46 = vadd.f32 %v2175_v62, %v1187_v23  ;;  %v886_v42 = vpop.f32.mrf.mxu0  ;;  %v991_v49 = vpop.f32.mrf.mxu1 }
 0x174   : > { %v990_v5 = vadd.f32 %v989_v2, %v886_v42 }
 0x175   : > { %v1255_v50 = vpack.c.bf16 %v2306_v46, %v2306_v46 }
 0x177   : > { %1288 = vst.msk [vmem:[%s2184_s14 + $0x2c] sm:$0xf] %vm1276_vm6, %v1255_v50 }
 0x178   : > { %v2312_v51 = vpop.f32.mrf.mxu3  ;;  %v1126_v17 = vpop.f32.mrf.mxu2 }
 0x179   : > { %v1188_v57 = vadd.f32 %v1126_v17, %v990_v5 }
 0x17b   : > { %v2315_v30 = vadd.f32 %v2175_v62, %v1188_v57  ;;  %v888_v25 = vpop.f32.mrf.mxu0  ;;  %v994_v55 = vpop.f32.mrf.mxu1 }
 0x17c   : > { %v992_v59 = vadd.f32 %v991_v49, %v888_v25 }
 0x17d   : > { %v1256_v34 = vpack.c.bf16 %v2315_v30, %v2315_v30 }
 0x17f   : > { %1289 = vst.msk [vmem:[%s2184_s14 + $0x30] sm:$0xf] %vm1276_vm6, %v1256_v34 }
 0x180   : > { %v2321_v45 = vpop.f32.mrf.mxu3  ;;  %v1128_v32 = vpop.f32.mrf.mxu2 }
 0x181   : > { %v1189_v1 = vadd.f32 %v1128_v32, %v992_v59  ;;  %v1310_v32 = vsel %vm698_vm3, %v2195_v13, 0.0 }
 0x183   : > { %v2324_v63 = vadd.f32 %v2175_v62, %v1189_v1  ;;  %v891_v43 = vpop.f32.mrf.mxu0  ;;  %v996_v8 = vpop.f32.mrf.mxu1  ;;  %v1020_v1 = vadd.f32 %v2294_v28, %v2205_v16 }
 0x184   : > { %v995_v47 = vadd.f32 %v994_v55, %v891_v43 }
 0x185   : > { %v1257_v48 = vpack.c.bf16 %v2324_v63, %v2324_v63 }
 0x187   : > { %1290 = vst.msk [vmem:[%s2184_s14 + $0x34] sm:$0xf] %vm1276_vm6, %v1257_v48 }
 0x188   : > { %v2330_v7 = vpop.f32.mrf.mxu3  ;;  %v1131_v10 = vpop.f32.mrf.mxu2 }
 0x189   : > { %v1190_v54 = vadd.f32 %v1131_v10, %v995_v47  ;;  %v1309_v47 = vsel %vm698_vm3, %v2179_v3, 0.0  ;;  %v1312_v10 = vsel %vm698_vm3, %v2208_v21, 0.0 }
 0x18b   : > { %v2333_v12 = vadd.f32 %v2175_v62, %v1190_v54  ;;  %v893_v53 = vpop.f32.mrf.mxu0  ;;  %v999_v14 = vpop.f32.mrf.mxu1 }
 0x18c   : > { %v997_v18 = vadd.f32 %v996_v8, %v893_v53 }
 0x18d   : > { %v1258_v15 = vpack.c.bf16 %v2333_v12, %v2333_v12 }
 0x18f   : > { %1291 = vst.msk [vmem:[%s2184_s14 + $0x38] sm:$0xf] %vm1276_vm6, %v1258_v15  ;;  %v1314_v15 = vsel %vm698_vm3, %v2218_v29, 0.0 }
 0x190   : > { %v2339_v19 = vpop.f32.mrf.mxu3  ;;  %v1133_v24 = vpop.f32.mrf.mxu2 }
 0x191   : > { %v1191_v31 = vadd.f32 %v1133_v24, %v997_v18 }
 0x193   : > { %v2342_v6 = vadd.f32 %v2175_v62, %v1191_v31  ;;  %v896_v35 = vpop.f32.mrf.mxu0  ;;  %v1001_v33 = vpop.f32.mrf.mxu1  ;;  %v1316_v31 = vsel %vm698_vm3, %v2232_v39, 0.0 }
 0x194   : > { %v1000_v60 = vadd.f32 %v999_v14, %v896_v35  ;;  %v1311_v14 = vadd.f32 %v1310_v32, %v1309_v47 }
 0x195   : > { %v1259_v36 = vpack.c.bf16 %v2342_v6, %v2342_v6 }
 0x196   : > { %v1313_v18 = vadd.f32 %v1312_v10, %v1311_v14  ;;  %v1326_v10 = vsel %vm698_vm3, %v2288_v22, 0.0 }
 0x197   : > { %1292 = vst.msk [vmem:[%s2184_s14 + $0x3c] sm:$0xf] %vm1276_vm6, %v1259_v36 }
 0x198   : > { %v2348_v2 = vpop.f32.mrf.mxu3  ;;  %v1136_v52 = vpop.f32.mrf.mxu2  ;;  %v1315_v36 = vadd.f32 %v1314_v15, %v1313_v18 }
 0x199   : > { %v1192_v40 = vadd.f32 %v1136_v52, %v1000_v60  ;;  %v1318_v60 = vsel %vm698_vm3, %v2242_v20, 0.0  ;;  %v1022_v52 = vadd.f32 %v2303_v41, %v2215_v27  ;;  %v1322_v27 = vsel %vm698_vm3, %v2269_v4, 0.0 }
 0x19b   : > { %v2351_v44 = vadd.f32 %v2175_v62, %v1192_v40  ;;  %v898_v23 = vpop.f32.mrf.mxu0  ;;  %v1004_v42 = vpop.f32.mrf.mxu1 }
 0x19c   : > { %v1002_v50 = vadd.f32 %v1001_v33, %v898_v23 }
 0x19d   : > { %v1260_v49 = vpack.c.bf16 %v2351_v44, %v2351_v44 }
 0x19f   : > { %1293 = vst.msk [vmem:[%s2184_s14 + $0x40] sm:$0xf] %vm1276_vm6, %v1260_v49 }
 0x1a0   : > { %v2357_v5 = vpop.f32.mrf.mxu3  ;;  %v1138_v17 = vpop.f32.mrf.mxu2 }
 0x1a1   : > { %v1193_v57 = vadd.f32 %v1138_v17, %v1002_v50  ;;  %v1320_v17 = vsel %vm698_vm3, %v2257_v58, 0.0 }
 0x1a3   : > { %v2360_v25 = vadd.f32 %v2175_v62, %v1193_v57  ;;  %v901_v55 = vpop.f32.mrf.mxu0  ;;  %v1006_v59 = vpop.f32.mrf.mxu1 }
 0x1a4   : > { %v1005_v43 = vadd.f32 %v1004_v42, %v901_v55  ;;  %v1317_v42 = vadd.f32 %v1316_v31, %v1315_v36 }
 0x1a5   : > { %v1261_v34 = vpack.c.bf16 %v2360_v25, %v2360_v25 }
 0x1a7   : > { %1294 = vst.msk [vmem:[%s2184_s14 + $0x44] sm:$0xf] %vm1276_vm6, %v1261_v34  ;;  %v1319_v34 = vadd.f32 %v1318_v60, %v1317_v42 }
 0x1a8   : > { %v1141_v8 = vpop.f32.mrf.mxu2  ;;  %v1156_v48 = vpop.f32.mrf.mxu3 }
 0x1a9   : > { %v1194_v54 = vadd.f32 %v1141_v8, %v1005_v43  ;;  %v1200_v53 = vadd.f32 %v1156_v48, %v1020_v1  ;;  %v1321_v32 = vadd.f32 %v1320_v17, %v1319_v34  ;;  %v1324_v43 = vsel %vm698_vm3, %v2279_v11, 0.0 }
 0x1aa   : > { %v1027_v17 = vadd.f32 %v2321_v45, %v2239_v0  ;;  %v1338_v0 = vsel %vm698_vm3, %v2342_v6, 0.0 }
 0x1ab   : > { %v2377_v16 = vadd.f32 %v2175_v62, %v1194_v54  ;;  %v2380_v28 = vadd.f32 %v2175_v62, %v1200_v53  ;;  %v903_v24 = vpop.f32.mrf.mxu0  ;;  %v1009_v23 = vpop.f32.mrf.mxu1  ;;  %v1323_v47 = vadd.f32 %v1322_v27, %v1321_v32  ;;  %v1025_v54 = vadd.f32 %v2312_v51, %v2229_v38 }
 0x1ac   : > { %v1007_v40 = vadd.f32 %v1006_v59, %v903_v24  ;;  %v1328_v24 = vsel %vm698_vm3, %v2297_v37, 0.0  ;;  %v1330_v38 = vsel %vm698_vm3, %v2306_v46, 0.0 }
 0x1ad   : > { %v1262_v35 = vpack.c.bf16 %v2377_v16, %v2377_v16  ;;  %v1268_v33 = vpack.c.bf16 %v2380_v28, %v2380_v28  ;;  %v1325_v14 = vadd.f32 %v1324_v43, %v1323_v47 }
 0x1af   : > { %1295 = vst.msk [vmem:[%s2184_s14 + $0x48] sm:$0xf] %vm1276_vm6, %v1262_v35 }
 0x1b0   : > { %1301 = vst.msk [vmem:[%s2184_s14 + $0x60] sm:$0xf] %vm1276_vm6, %v1268_v33  ;;  %v1143_v49 = vpop.f32.mrf.mxu2  ;;  %v1158_v50 = vpop.f32.mrf.mxu3  ;;  %v1327_v33 = vadd.f32 %v1326_v10, %v1325_v14  ;;  %v1340_v14 = vsel %vm698_vm3, %v2351_v44, 0.0 }
 0x1b1   : > { %v1195_v57 = vadd.f32 %v1143_v49, %v1007_v40  ;;  %v1201_v55 = vadd.f32 %v1158_v50, %v1022_v52 }
 0x1b2   : > { %v1329_v52 = vadd.f32 %v1328_v24, %v1327_v33 }
 0x1b3   : > { %v2401_v41 = vadd.f32 %v2175_v62, %v1195_v57  ;;  %v2404_v59 = vadd.f32 %v2175_v62, %v1201_v55  ;;  %v906_v1 = vpop.f32.mrf.mxu0  ;;  %v1011_v36 = vpop.f32.mrf.mxu1  ;;  %v1334_v57 = vsel %vm698_vm3, %v2324_v63, 0.0 }
 0x1b4   : > { %v1010_v53 = vadd.f32 %v1009_v23, %v906_v1  ;;  %v1332_v23 = vsel %vm698_vm3, %v2315_v30, 0.0  ;;  %v1331_v50 = vadd.f32 %v1330_v38, %v1329_v52  ;;  %v1336_v1 = vsel %vm698_vm3, %v2333_v12, 0.0 }
 0x1b5   : > { %v1263_v8 = vpack.c.bf16 %v2401_v41, %v2401_v41  ;;  %v1269_v48 = vpack.c.bf16 %v2404_v59, %v2404_v59 }
 0x1b6   : > { %v1333_v34 = vadd.f32 %v1332_v23, %v1331_v50 }
 0x1b7   : > { %1296 = vst.msk [vmem:[%s2184_s14 + $0x4c] sm:$0xf] %vm1276_vm6, %v1263_v8 }
 0x1b8   : > { %1302 = vst.msk [vmem:[%s2184_s14 + $0x64] sm:$0xf] %vm1276_vm6, %v1269_v48  ;;  %v1146_v15 = vpop.f32.mrf.mxu2  ;;  %v1161_v18 = vpop.f32.mrf.mxu3  ;;  %v1335_v48 = vadd.f32 %v1334_v57, %v1333_v34 }
 0x1b9   : > { %v1196_v31 = vadd.f32 %v1146_v15, %v1010_v53  ;;  %v1202_v35 = vadd.f32 %v1161_v18, %v1025_v54 }
 0x1ba   : > { %v1337_v10 = vadd.f32 %v1336_v1, %v1335_v48 }
 0x1bb   : > { %v2425_v51 = vadd.f32 %v2175_v62, %v1196_v31  ;;  %v2428_v60 = vadd.f32 %v2175_v62, %v1202_v35  ;;  %v908_v40 = vpop.f32.mrf.mxu0  ;;  %v1014_v54 = vpop.f32.mrf.mxu1  ;;  %v1030_v31 = vadd.f32 %v2330_v7, %v2254_v56  ;;  %v1342_v35 = vsel %vm698_vm3, %v2360_v25, 0.0 }
 0x1bc   : > { %v1012_v55 = vadd.f32 %v1011_v36, %v908_v40  ;;  %v1339_v24 = vadd.f32 %v1338_v0, %v1337_v10  ;;  %v1344_v40 = vsel %vm698_vm3, %v2377_v16, 0.0  ;;  %v1346_v56 = vsel %vm698_vm3, %v2401_v41, 0.0 }
 0x1bd   : > { %v1264_v42 = vpack.c.bf16 %v2425_v51, %v2425_v51  ;;  %v1270_v49 = vpack.c.bf16 %v2428_v60, %v2428_v60 }
 0x1be   : > { %v1341_v36 = vadd.f32 %v1340_v14, %v1339_v24 }
 0x1bf   : > { %1297 = vst.msk [vmem:[%s2184_s14 + $0x50] sm:$0xf] %vm1276_vm6, %v1264_v42 }
 0x1c0   : > { %1303 = vst.msk [vmem:[%s2184_s14 + $0x68] sm:$0xf] %vm1276_vm6, %v1270_v49  ;;  %v1148_v27 = vpop.f32.mrf.mxu2  ;;  %v1163_v32 = vpop.f32.mrf.mxu3  ;;  %v1343_v49 = vadd.f32 %v1342_v35, %v1341_v36 }
 0x1c1   : > { %v1197_v43 = vadd.f32 %v1148_v27, %v1012_v55  ;;  %v1203_v8 = vadd.f32 %v1163_v32, %v1027_v17  ;;  %v1348_v55 = vsel %vm698_vm3, %v2425_v51, 0.0 }
 0x1c2   : > { %v1345_v17 = vadd.f32 %v1344_v40, %v1343_v49 }
 0x1c3   : > { %v2449_v45 = vadd.f32 %v2175_v62, %v1197_v43  ;;  %v2452_v47 = vadd.f32 %v2175_v62, %v1203_v8  ;;  %v911_v53 = vpop.f32.mrf.mxu0  ;;  %v1016_v1 = vpop.f32.mrf.mxu1  ;;  %v1032_v43 = vadd.f32 %v2339_v19, %v2265_v61 }
 0x1c4   : > { %v1015_v33 = vadd.f32 %v1014_v54, %v911_v53  ;;  %v1347_v32 = vadd.f32 %v1346_v56, %v1345_v17  ;;  %v1360_v17 = vsel %vm698_vm3, %v2428_v60, 0.0 }
 0x1c5   : > { %v1265_v15 = vpack.c.bf16 %v2449_v45, %v2449_v45  ;;  %v1271_v18 = vpack.c.bf16 %v2452_v47, %v2452_v47  ;;  %v1350_v8 = vsel %vm698_vm3, %v2449_v45, 0.0 }
 0x1c6   : > { %v1349_v0 = vadd.f32 %v1348_v55, %v1347_v32 }
 0x1c7   : > { %1298 = vst.msk [vmem:[%s2184_s14 + $0x54] sm:$0xf] %vm1276_vm6, %v1265_v15 }
 0x1c8   : > { %1304 = vst.msk [vmem:[%s2184_s14 + $0x6c] sm:$0xf] %vm1276_vm6, %v1271_v18  ;;  %v1151_v38 = vpop.f32.mrf.mxu2  ;;  %v1166_v52 = vpop.f32.mrf.mxu3  ;;  %v1351_v18 = vadd.f32 %v1350_v8, %v1349_v0 }
 0x1c9   : > { %v1198_v23 = vadd.f32 %v1151_v38, %v1015_v33  ;;  %v1204_v42 = vadd.f32 %v1166_v52, %v1030_v31  ;;  %v1035_v38 = vadd.f32 %v2348_v2, %v2276_v9  ;;  %v1356_v52 = vsel %vm698_vm3, %v2380_v28, 0.0 }
 0x1cb   : > { %v2473_v7 = vadd.f32 %v2175_v62, %v1198_v23  ;;  %v2476_v50 = vadd.f32 %v2175_v62, %v1204_v42  ;;  %v913_v57 = vpop.f32.mrf.mxu0  ;;  %v1358_v42 = vsel %vm698_vm3, %v2404_v59, 0.0 }
 0x1cc   : > { %v1017_v48 = vadd.f32 %v1016_v1, %v913_v57  ;;  %v1362_v57 = vsel %vm698_vm3, %v2452_v47, 0.0 }
 0x1cd   : > { %v1266_v34 = vpack.c.bf16 %v2473_v7, %v2473_v7  ;;  %v1272_v27 = vpack.c.bf16 %v2476_v50, %v2476_v50  ;;  %v1352_v53 = vsel %vm698_vm3, %v2473_v7, 0.0  ;;  %v1364_v32 = vsel %vm698_vm3, %v2476_v50, 0.0 }
 0x1ce   : > { %v1353_v24 = vadd.f32 %v1352_v53, %v1351_v18 }
 0x1cf   : > { %1299 = vst.msk [vmem:[%s2184_s14 + $0x58] sm:$0xf] %vm1276_vm6, %v1266_v34 }
 0x1d0   : > { %1305 = vst.msk [vmem:[%s2184_s14 + $0x70] sm:$0xf] %vm1276_vm6, %v1272_v27  ;;  %v1153_v10 = vpop.f32.mrf.mxu2  ;;  %v1168_v54 = vpop.f32.mrf.mxu3  ;;  %v1037_v27 = vadd.f32 %v2357_v5, %v2285_v26 }
 0x1d1   : > { %v1199_v14 = vadd.f32 %v1153_v10, %v1017_v48  ;;  %v1205_v15 = vadd.f32 %v1168_v54, %v1032_v43 }
 0x1d3   : > { %v2495_v61 = vadd.f32 %v2175_v62, %v1199_v14  ;;  %v2498_v19 = vadd.f32 %v2175_v62, %v1205_v15 }
 0x1d5   : > { %v1267_v31 = vpack.c.bf16 %v2495_v61, %v2495_v61  ;;  %v1354_v35 = vsel %vm698_vm3, %v2495_v61, 0.0  ;;  %v1273_v33 = vpack.c.bf16 %v2498_v19, %v2498_v19  ;;  %v1366_v8 = vsel %vm698_vm3, %v2498_v19, 0.0 }
 0x1d6   : > { %v1355_v36 = vadd.f32 %v1354_v35, %v1353_v24 }
 0x1d7   : > { %1300 = vst.msk [vmem:[%s2184_s14 + $0x5c] sm:$0xf] %vm1276_vm6, %v1267_v31 }
 0x1d8   : > { %v1357_v40 = vadd.f32 %v1356_v52, %v1355_v36  ;;  %1306 = vst.msk [vmem:[%s2184_s14 + $0x74] sm:$0xf] %vm1276_vm6, %v1273_v33  ;;  %v1171_v23 = vpop.f32.mrf.mxu3 }
 0x1d9   : > { %v1206_v49 = vadd.f32 %v1171_v23, %v1035_v38 }
 0x1da   : > { %v1359_v56 = vadd.f32 %v1358_v42, %v1357_v40 }
 0x1db   : > { %v2519_v9 = vadd.f32 %v2175_v62, %v1206_v49 }
 0x1dc   : > { %v1361_v2 = vadd.f32 %v1360_v17, %v1359_v56 }
 0x1dd   : > { %v1274_v55 = vpack.c.bf16 %v2519_v9, %v2519_v9  ;;  %v1368_v10 = vsel %vm698_vm3, %v2519_v9, 0.0 }
 0x1de   : > { %v1363_v34 = vadd.f32 %v1362_v57, %v1361_v2 }
 0x1df   : > { %1307 = vst.msk [vmem:[%s2184_s14 + $0x78] sm:$0xf] %vm1276_vm6, %v1274_v55 }
 0x1e0   : > { %v1365_v1 = vadd.f32 %v1364_v32, %v1363_v34  ;;  %v1173_v43 = vpop.f32.mrf.mxu3 }
 0x1e1   : > { %v1207_v48 = vadd.f32 %v1173_v43, %v1037_v27 }
 0x1e2   : > { %v1367_v0 = vadd.f32 %v1366_v8, %v1365_v1 }
 0x1e3   : > { %v2536_v54 = vadd.f32 %v2175_v62, %v1207_v48 }
 0x1e4   : > { %v1369_v53 = vadd.f32 %v1368_v10, %v1367_v0 }
 0x1e5   : > { %v1275_v26 = vpack.c.bf16 %v2536_v54, %v2536_v54  ;;  %v1370_v5 = vsel %vm698_vm3, %v2536_v54, 0.0 }
 0x1e6   : > { %v1371_v14 = vadd.f32 %v1370_v5, %v1369_v53 }
 0x1e7   : > { %1308 = vst.msk [vmem:[%s2184_s14 + $0x7c] sm:$0xf] %vm1276_vm6, %v1275_v26 }
 0x1e8   : > { %v1372_v15 = vrot.slane %v1371_v14, 4 }
 0x1ea   : > { %v1373_v18 = vadd.f32 %v1372_v15, %v1371_v14 }
 0x1ec   : > { %v1374_v24 = vrot.slane %v1373_v18, 2 }
 0x1ee   : > { %v1375_v31 = vadd.f32 %v1374_v24, %v1373_v18 }
 0x1f0   : > { %v1376_v35 = vrot.slane %v1375_v31, 1 }
 0x1f2   : > { %v2544_v33 = vadd.f32 %v1376_v35, %v1375_v31 }
 0x1f4   : > { %v2547_v62 = vmul.f32 0.00390625, %v2544_v33 }
 0x1f6   : > { %v1379_v36 = vsub.f32 %v2179_v3, %v2547_v62  ;;  %v1380_v38 = vsub.f32 %v2195_v13, %v2547_v62  ;;  %v1381_v52 = vsub.f32 %v2208_v21, %v2547_v62  ;;  %v1382_v40 = vsub.f32 %v2218_v29, %v2547_v62 }
 0x1f7   : > { %v1383_v49 = vsub.f32 %v2232_v39, %v2547_v62  ;;  %v1384_v17 = vsub.f32 %v2242_v20, %v2547_v62  ;;  %v1385_v21 = vsub.f32 %v2257_v58, %v2547_v62  ;;  %v1386_v39 = vsub.f32 %v2269_v4, %v2547_v62 }
 0x1f8   : > { %v1411_v23 = vmul.f32 %v1379_v36, %v1379_v36  ;;  %v1412_v42 = vmul.f32 %v1380_v38, %v1380_v38  ;;  %v1413_v56 = vmul.f32 %v1381_v52, %v1381_v52  ;;  %v1414_v2 = vmul.f32 %v1382_v40, %v1382_v40 }
 0x1f9   : > { %v1415_v55 = vmul.f32 %v1383_v49, %v1383_v49  ;;  %v1416_v27 = vmul.f32 %v1384_v17, %v1384_v17  ;;  %v1387_v1 = vsub.f32 %v2279_v11, %v2547_v62  ;;  %v1417_v43 = vmul.f32 %v1385_v21, %v1385_v21 }
 0x1fa   : > { %v1443_v3 = vsel %vm698_vm3, %v1411_v23, 0.0  ;;  %v1444_v13 = vsel %vm698_vm3, %v1412_v42, 0.0  ;;  %v1446_v29 = vsel %vm698_vm3, %v1413_v56, 0.0  ;;  %v1448_v32 = vsel %vm698_vm3, %v1414_v2, 0.0 }
 0x1fb   : > { %v1445_v57 = vadd.f32 %v1444_v13, %v1443_v3  ;;  %v1450_v8 = vsel %vm698_vm3, %v1415_v55, 0.0  ;;  %v1388_v58 = vsub.f32 %v2288_v22, %v2547_v62  ;;  %v1418_v0 = vmul.f32 %v1386_v39, %v1386_v39 }
 0x1fc   : > { %v1452_v10 = vsel %vm698_vm3, %v1416_v27, 0.0  ;;  %v1389_v4 = vsub.f32 %v2297_v37, %v2547_v62  ;;  %v1419_v26 = vmul.f32 %v1387_v1, %v1387_v1  ;;  %v1454_v5 = vsel %vm698_vm3, %v1417_v43, 0.0 }
 0x1fd   : > { %v1447_v34 = vadd.f32 %v1446_v29, %v1445_v57  ;;  %v1390_v11 = vsub.f32 %v2306_v46, %v2547_v62  ;;  %v1420_v15 = vmul.f32 %v1388_v58, %v1388_v58  ;;  %v1456_v18 = vsel %vm698_vm3, %v1418_v0, 0.0 }
 0x1fe   : > { %v1391_v22 = vsub.f32 %v2315_v30, %v2547_v62  ;;  %v1421_v31 = vmul.f32 %v1389_v4, %v1389_v4  ;;  %v1458_v35 = vsel %vm698_vm3, %v1419_v26, 0.0  ;;  %v1392_v37 = vsub.f32 %v2324_v63, %v2547_v62 }
 0x1ff   : > { %v1449_v20 = vadd.f32 %v1448_v32, %v1447_v34  ;;  %v1422_v38 = vmul.f32 %v1390_v11, %v1390_v11  ;;  %v1460_v52 = vsel %vm698_vm3, %v1420_v15, 0.0  ;;  %v1393_v46 = vsub.f32 %v2333_v12, %v2547_v62 }
 0x200   : > { %v1423_v23 = vmul.f32 %v1391_v22, %v1391_v22  ;;  %v1462_v42 = vsel %vm698_vm3, %v1421_v31, 0.0  ;;  %v1394_v30 = vsub.f32 %v2342_v6, %v2547_v62  ;;  %v1424_v56 = vmul.f32 %v1392_v37, %v1392_v37 }
 0x201   : > { %v1451_v48 = vadd.f32 %v1450_v8, %v1449_v20  ;;  %v1464_v17 = vsel %vm698_vm3, %v1422_v38, 0.0  ;;  %v1395_v63 = vsub.f32 %v2351_v44, %v2547_v62  ;;  %v1425_v3 = vmul.f32 %v1393_v46, %v1393_v46 }
 0x202   : > { %v1466_v13 = vsel %vm698_vm3, %v1423_v23, 0.0  ;;  %v1396_v12 = vsub.f32 %v2360_v25, %v2547_v62  ;;  %v1426_v21 = vmul.f32 %v1394_v30, %v1394_v30  ;;  %v1468_v55 = vsel %vm698_vm3, %v1424_v56, 0.0 }
 0x203   : > { %v1453_v53 = vadd.f32 %v1452_v10, %v1451_v48  ;;  %v1397_v6 = vsub.f32 %v2377_v16, %v2547_v62  ;;  %v1427_v34 = vmul.f32 %v1395_v63, %v1395_v63  ;;  %v1470_v39 = vsel %vm698_vm3, %v1425_v3, 0.0 }
 0x204   : > { %v1398_v44 = vsub.f32 %v2401_v41, %v2547_v62  ;;  %v1428_v32 = vmul.f32 %v1396_v12, %v1396_v12  ;;  %v1472_v20 = vsel %vm698_vm3, %v1426_v21, 0.0  ;;  %v1399_v25 = vsub.f32 %v2425_v51, %v2547_v62 }
 0x205   : > { %v1455_v14 = vadd.f32 %v1454_v5, %v1453_v53  ;;  %v1429_v43 = vmul.f32 %v1397_v6, %v1397_v6  ;;  %v1474_v8 = vsel %vm698_vm3, %v1427_v34, 0.0  ;;  %v1400_v16 = vsub.f32 %v2449_v45, %v2547_v62 }
 0x206   : > { %v1430_v58 = vmul.f32 %v1398_v44, %v1398_v44  ;;  %v1476_v0 = vsel %vm698_vm3, %v1428_v32, 0.0  ;;  %v1401_v41 = vsub.f32 %v2473_v7, %v2547_v62  ;;  %v1431_v53 = vmul.f32 %v1399_v25, %v1399_v25 }
 0x207   : > { %v1457_v24 = vadd.f32 %v1456_v18, %v1455_v14  ;;  %v1478_v4 = vsel %vm698_vm3, %v1429_v43, 0.0  ;;  %v1402_v51 = vsub.f32 %v2495_v61, %v2547_v62  ;;  %v1432_v5 = vmul.f32 %v1400_v16, %v1400_v16 }
 0x208   : > { %v1480_v14 = vsel %vm698_vm3, %v1430_v58, 0.0  ;;  %v1403_v45 = vsub.f32 %v2380_v28, %v2547_v62  ;;  %v1433_v15 = vmul.f32 %v1401_v41, %v1401_v41  ;;  %v1482_v18 = vsel %vm698_vm3, %v1431_v53, 0.0 }
 0x209   : > { %v1459_v36 = vadd.f32 %v1458_v35, %v1457_v24  ;;  %v1404_v7 = vsub.f32 %v2404_v59, %v2547_v62  ;;  %v1434_v22 = vmul.f32 %v1402_v51, %v1402_v51  ;;  %v1484_v31 = vsel %vm698_vm3, %v1432_v5, 0.0 }
 0x20a   : > { %v1405_v61 = vsub.f32 %v2428_v60, %v2547_v62  ;;  %v1486_v37 = vsel %vm698_vm3, %v1433_v15, 0.0  ;;  %v1406_v28 = vsub.f32 %v2452_v47, %v2547_v62  ;;  %v1407_v59 = vsub.f32 %v2476_v50, %v2547_v62 }
 0x20b   : > { %v1461_v40 = vadd.f32 %v1460_v52, %v1459_v36  ;;  %v1435_v36 = vmul.f32 %v1403_v45, %v1403_v45  ;;  %v1436_v52 = vmul.f32 %v1404_v7, %v1404_v7  ;;  %v1408_v60 = vsub.f32 %v2498_v19, %v2547_v62 }
 0x20c   : > { %v1437_v23 = vmul.f32 %v1405_v61, %v1405_v61  ;;  %v1438_v30 = vmul.f32 %v1406_v28, %v1406_v28  ;;  %v1409_v47 = vsub.f32 %v2519_v9, %v2547_v62  ;;  %v1410_v50 = vsub.f32 %v2536_v54, %v2547_v62 }
 0x20d   : > { %v1463_v49 = vadd.f32 %v1462_v42, %v1461_v40  ;;  %v1488_v40 = vsel %vm698_vm3, %v1434_v22, 0.0  ;;  %v1490_v42 = vsel %vm698_vm3, %v1435_v36, 0.0  ;;  %v1492_v56 = vsel %vm698_vm3, %v1436_v52, 0.0 }
 0x20e   : > { %v1494_v63 = vsel %vm698_vm3, %v1437_v23, 0.0  ;;  %v1441_v19 = vmul.f32 %v1409_v47, %v1409_v47 }
 0x20f   : > { %v1465_v2 = vadd.f32 %v1464_v17, %v1463_v49 }
 0x210   : > { %v1502_v34 = vsel %vm698_vm3, %v1441_v19, 0.0 }
 0x211   : > { %v1467_v57 = vadd.f32 %v1466_v13, %v1465_v2  ;;  %v1439_v2 = vmul.f32 %v1407_v59, %v1407_v59  ;;  %v1440_v13 = vmul.f32 %v1408_v60, %v1408_v60 }
 0x213   : > { %v1469_v29 = vadd.f32 %v1468_v55, %v1467_v57  ;;  %v1496_v57 = vsel %vm698_vm3, %v1438_v30, 0.0  ;;  %v1498_v21 = vsel %vm698_vm3, %v1439_v2, 0.0  ;;  %v1500_v6 = vsel %vm698_vm3, %v1440_v13, 0.0 }
 0x215   : > { %v1471_v27 = vadd.f32 %v1470_v39, %v1469_v29  ;;  %v1442_v29 = vmul.f32 %v1410_v50, %v1410_v50 }
 0x217   : > { %v1473_v1 = vadd.f32 %v1472_v20, %v1471_v27  ;;  %v1504_v27 = vsel %vm698_vm3, %v1442_v29, 0.0 }
 0x219   : > { %v1475_v48 = vadd.f32 %v1474_v8, %v1473_v1 }
 0x21b   : > { %v1477_v10 = vadd.f32 %v1476_v0, %v1475_v48 }
 0x21d   : > { %v1479_v26 = vadd.f32 %v1478_v4, %v1477_v10 }
 0x21f   : > { %v1481_v11 = vadd.f32 %v1480_v14, %v1479_v26 }
 0x221   : > { %v1483_v24 = vadd.f32 %v1482_v18, %v1481_v11 }
 0x223   : > { %v1485_v35 = vadd.f32 %v1484_v31, %v1483_v24 }
 0x225   : > { %v1487_v38 = vadd.f32 %v1486_v37, %v1485_v35 }
 0x227   : > { %v1489_v46 = vadd.f32 %v1488_v40, %v1487_v38 }
 0x229   : > { %v1491_v49 = vadd.f32 %v1490_v42, %v1489_v46 }
 0x22b   : > { %v1493_v17 = vadd.f32 %v1492_v56, %v1491_v49 }
 0x22d   : > { %v1495_v3 = vadd.f32 %v1494_v63, %v1493_v17 }
 0x22f   : > { %v1497_v12 = vadd.f32 %v1496_v57, %v1495_v3 }
 0x231   : > { %v1499_v55 = vadd.f32 %v1498_v21, %v1497_v12 }
 0x233   : > { %v1501_v9 = vadd.f32 %v1500_v6, %v1499_v55 }
 0x235   : > { %v1503_v39 = vadd.f32 %v1502_v34, %v1501_v9 }
 0x237   : > { %v1505_v44 = vadd.f32 %v1504_v27, %v1503_v39 }
 0x239   : > { %v1506_v54 = vrot.slane %v1505_v44, 4 }
 0x23b   : > { %v1507_v62 = vadd.f32 %v1506_v54, %v1505_v44 }
 0x23d   : > { %v1508_v32 = vrot.slane %v1507_v62, 2 }
 0x23f   : > { %v1509_v20 = vadd.f32 %v1508_v32, %v1507_v62 }
 0x241   : > { %v1510_v1 = vrot.slane %v1509_v20, 1 }
 0x243   : > { %v1511_v25 = vadd.f32 %v1510_v1, %v1509_v20 }
 0x245   : > { %v1513_v43 = vsel %vm1512_vm7, %v2544_v33, %v1511_v25 }
 0x246   : > { %1515 = vst.msk [vmem:[%s208_s20] sm:$0x3] %vm1514_vm8, %v1513_v43 }
 0x247 PF: > { %s15_s15 = sadd.s32 1, %s1791_s15  }
 0x248   : > { %p12_p4 = scmp.ge.s32.totalorder %s15_s15, 4  }
 0x24a   :  { %14 = sbr.rel (!%p12_p4) target bundleno = 1 (0x1), region = 74 }

// kernel: double_conv_pallas.4
= control target key start
LH: loop header
LB: loop body
LE: loop exit
PB: predicated region body
PF: predicated region fallthrough
CT: control target
= control target key end

     0   :  { %s2122_s15 = smov 0   ;;  %s3113_s0 = inlined_call_operand.vmem [shape: bf16[2,16,16,8], index: 0, kind: input, shape index: {}]   ;;  %s3114_s1 = inlined_call_operand.vmem [shape: f32[5,8], index: 1, kind: input, shape index: {}]   ;;  %s3115_s2 = inlined_call_operand.vmem [shape: bf16[72,8], index: 2, kind: input, shape index: {}]   ;;  %s3116_s3 = inlined_call_operand.vmem [shape: bf16[2,16,16,8], index: 3, kind: output, shape index: {0}]   ;;  %s3117_s4 = inlined_call_operand.vmem [shape: f32[2,2,8], index: 4, kind: output, shape index: {1}]  }
   0x1 LB: > { %s1912_s16 = sadd.s32 4294967295, %s2092_s15   ;;  %p1916_p0 = scmp.ge.s32.totalorder %s2092_s15, 1  ;;  %s2092_s15 = sphi %s2122_s15, %s15_s15  }
   0x2   : > { %p165_p1 = scmp.lt.s32.totalorder %s2092_s15, 3 }
   0x4   : > { %p166_p2 = pnand %p1916_p0, %p165_p1 }
   0x5   : > { %p195_p3 = scmp.lt.s32.totalorder (!%p166_p2), %s1912_s16, 1  ;;  %s2095_s23 = smov (!%p166_p2), 8  }
   0x6   : > { %169 = sbr.rel (%p166_p2) target bundleno = 605 (0x25d), region = 32  ;;  %s2096_s24 = smov (!%p166_p2), 16  }
   0xb   : > { %vm675_vm0 = vcmask 1040384   ;;  %vm676_vm1 = vsmask.f32 256  ;;  %v2094_v0 = vmov 0   ;;  %v210_v3 = vld [vmem:[%s3114_s1] sm:$0x1f] }
   0xc   : > { %v525_v1 = vrot.slane %v2094_v0, 7  ;;  %vm2131_vm2 = vmand %vm675_vm0, %vm676_vm1  ;;  %v309_v4 = vrot.slane %v210_v3, 1  ;;  %s3121_s16 = smov (!%p195_p3, %s1912_s16), 1  ;;  %vm712_vm3 = vsmask.f32 7424  ;;  %v2156_v13 = vperm.slane %v210_v3, 0 }
   0xd   : > { %s1984_s19 = sshll.u32 %s3121_s16, 7  ;;  %v2161_v16 = vperm.slane %v210_v3, 3  ;;  %vm969_vm4 = vcmask 1046528   ;;  %vm1189_vm5 = vcmask 1043456   ;;  %vm1050_vm6 = vcmask 64512   ;;  %s1921_s18 = sshll.u32 %s3121_s16, 1 }
   0xe   : > { %v2140_v5 = vsel %vm2131_vm2, 0, %v525_v1  ;;  %v695_v6 = vsel %vm2131_vm2, %v525_v1, 0  ;;  %v311_v10 = vmul.f32 %v309_v4, %v210_v3  ;;  %s2154_s22 = scalar_lea.vmem %s3113_s0, %s1984_s19  ;;  %vm1083_vm7 = vcmask 130048   ;;  %s2646_s17 = scalar_lea.vmem %s3116_s3, %s1984_s19 }
   0xf   : > { %v714_v7 = vshrl.u32 %v2140_v5, 16  ;;  %v716_v8 = vshll.u32 %v2140_v5, 16  ;;  %v721_v9 = vshll.u32 %v695_v6, 16  ;;  %v2053_v14 = vld [vmem:[%s2154_s22 + $0x8] sm:$0xff]   ;;  %v1990_v17 = vld [vmem:[%s2154_s22] sm:$0xff]   ;;  %v2054_v18 = vld [vmem:[%s2154_s22 + $0x10] sm:$0xff]   ;;  %s208_s21 = scalar_lea.vmem %s3117_s4, %s1921_s18 }
  0x10   : > { %v2159_v15 = vperm.slane %v311_v10, 1  ;;  %v1995_v20 = vunpack.c.l.bf16 %v2053_v14  ;;  %v1996_v21 = vunpack.c.h.bf16 %v2053_v14  ;;  %v1991_v22 = vunpack.c.l.bf16 %v1990_v17  ;;  %v2064_v23 = vld [vmem:[%s2154_s22 + $0x60] sm:$0xff]  }
  0x11   : > { %v718_v11 = vrot.slane %v716_v8, 1  ;;  %v723_v12 = vrot.slane %v721_v9, 1  ;;  %v1992_v24 = vunpack.c.h.bf16 %v1990_v17  ;;  %v1999_v25 = vunpack.c.l.bf16 %v2054_v18 }
  0x12   : > { %v2000_v26 = vunpack.c.h.bf16 %v2054_v18  ;;  %v2039_v27 = vunpack.c.l.bf16 %v2064_v23  ;;  %v278_v29 = vsub.f32 %v1995_v20, %v2156_v13  ;;  %v279_v30 = vsub.f32 %v1996_v21, %v2156_v13 }
  0x13   : > { %v719_v19 = vor.u32 %v718_v11, %v714_v7  ;;  %v276_v31 = vsub.f32 %v1991_v22, %v2156_v13  ;;  %v277_v32 = vsub.f32 %v1992_v24, %v2156_v13  ;;  %v280_v33 = vsub.f32 %v1999_v25, %v2156_v13 }
  0x14   : > { %v281_v34 = vsub.f32 %v2000_v26, %v2156_v13  ;;  %v2040_v35 = vunpack.c.h.bf16 %v2064_v23  ;;  %v315_v36 = vmul.f32 %v2159_v15, %v278_v29  ;;  %v316_v37 = vmul.f32 %v2159_v15, %v279_v30  ;;  %v2198_v29 = vld [vmem:[%s2154_s22 + $0x68] sm:$0xff]  }
  0x15   : > { %v724_v28 = vsel %vm712_vm3, %v719_v19, %v723_v12  ;;  %v313_v38 = vmul.f32 %v2159_v15, %v276_v31  ;;  %v300_v39 = vsub.f32 %v2039_v27, %v2156_v13  ;;  %v314_v40 = vmul.f32 %v2159_v15, %v277_v32 }
  0x16   : > { %905 = vrot.lane.b32.xlu1 %v724_v28, %s2095_s23  ;;  %v970_v41 = vrot.slane %v2140_v5, 1  ;;  %v971_v42 = vrot.slane %v695_v6, 1  ;;  %v317_v43 = vmul.f32 %v2159_v15, %v280_v33  ;;  %v348_v44 = vadd.f32 %v2161_v16, %v315_v36  ;;  %v2055_v6 = vld [vmem:[%s2154_s22 + $0x18] sm:$0xff]  }
  0x17   : > { %v349_v45 = vadd.f32 %v2161_v16, %v316_v37  ;;  %v346_v46 = vadd.f32 %v2161_v16, %v313_v38  ;;  %v318_v47 = vmul.f32 %v2159_v15, %v281_v34  ;;  %v347_v48 = vadd.f32 %v2161_v16, %v314_v40 }
  0x18   : > { %v972_v49 = vsel %vm969_vm4, %v970_v41, %v971_v42  ;;  %v350_v50 = vadd.f32 %v2161_v16, %v317_v43  ;;  %v301_v51 = vsub.f32 %v2040_v35, %v2156_v13  ;;  %v380_v52 = vmax.f32 %v348_v44, 0.0 }
  0x19   : > { %v381_v53 = vmax.f32 %v349_v45, 0.0  ;;  %v378_v54 = vmax.f32 %v346_v46, 0.0  ;;  %1018 = vrot.lane.b32.xlu2 %v972_v49, %s2096_s24  ;;  %v351_v55 = vadd.f32 %v2161_v16, %v318_v47  ;;  %v379_v56 = vmax.f32 %v347_v48, 0.0 }
  0x1a   : > { %v382_v57 = vmax.f32 %v350_v50, 0.0  ;;  %v337_v58 = vmul.f32 %v2159_v15, %v300_v39  ;;  %v338_v59 = vmul.f32 %v2159_v15, %v301_v51  ;;  %v412_v60 = vpack.c.bf16 %v380_v52, %v380_v52 }
  0x1b   : > { %v413_v61 = vpack.c.bf16 %v381_v53, %v381_v53  ;;  %v410_v62 = vpack.c.bf16 %v378_v54, %v378_v54  ;;  %v383_v63 = vmax.f32 %v351_v55, 0.0  ;;  %v411_v0 = vpack.c.bf16 %v379_v56, %v379_v56 }
  0x1c   : > { %v414_v1 = vpack.c.bf16 %v382_v57, %v382_v57  ;;  %v370_v3 = vadd.f32 %v2161_v16, %v337_v58  ;;  %v371_v4 = vadd.f32 %v2161_v16, %v338_v59  ;;  %v476_v7 = vunpack.c.l.b16 %v412_v60 }
  0x1d   : > { %v477_v8 = vunpack.c.l.b16 %v413_v61  ;;  %v474_v9 = vunpack.c.l.b16 %v410_v62  ;;  %v415_v10 = vpack.c.bf16 %v383_v63, %v383_v63  ;;  %v475_v11 = vunpack.c.l.b16 %v411_v0 }
  0x1e   : > { %v478_v12 = vunpack.c.l.b16 %v414_v1  ;;  %v402_v14 = vmax.f32 %v370_v3, 0.0  ;;  %v403_v17 = vmax.f32 %v371_v4, 0.0  ;;  %v2003_v20 = vunpack.c.l.bf16 %v2055_v6 }
  0x1f   : > { %v507_v18 = vpack.c.b16 %v477_v8, %v476_v7  ;;  %v479_v19 = vunpack.c.l.b16 %v415_v10  ;;  %v2004_v21 = vunpack.c.h.bf16 %v2055_v6  ;;  %v506_v22 = vpack.c.b16 %v475_v11, %v474_v9 }
  0x20   : > { %v434_v23 = vpack.c.bf16 %v402_v14, %v402_v14  ;;  %v435_v24 = vpack.c.bf16 %v403_v17, %v403_v17  ;;  %v282_v28 = vsub.f32 %v2003_v20, %v2156_v13  ;;  %v2043_v41 = vunpack.c.l.bf16 %v2198_v29 }
  0x21   : > { %v537_v25 = vshrl.u32 %v507_v18, 16  ;;  %v540_v26 = vshll.u32 %v507_v18, 16  ;;  %v508_v27 = vpack.c.b16 %v479_v19, %v478_v12  ;;  %v530_v30 = vshrl.u32 %v506_v22, 16 }
  0x22   : > { %v533_v31 = vshll.u32 %v506_v22, 16  ;;  %v498_v32 = vunpack.c.l.b16 %v434_v23  ;;  %v499_v33 = vunpack.c.l.b16 %v435_v24  ;;  %v283_v37 = vsub.f32 %v2004_v21, %v2156_v13 }
  0x23   : > { %v539_v34 = vrot.slane %v537_v25, 7  ;;  %v544_v35 = vshrl.u32 %v508_v27, 16  ;;  %v547_v36 = vshll.u32 %v508_v27, 16  ;;  %v532_v38 = vrot.slane %v530_v30, 7 }
  0x24   : > { %v518_v39 = vpack.c.b16 %v499_v33, %v498_v32  ;;  %v319_v40 = vmul.f32 %v2159_v15, %v282_v28  ;;  %v2044_v45 = vunpack.c.h.bf16 %v2198_v29  ;;  %v320_v49 = vmul.f32 %v2159_v15, %v283_v37 }
  0x25   : > { %v542_v42 = vor.u32 %v540_v26, %v539_v34  ;;  %v697_v43 = vsel %vm2131_vm2, %v539_v34, 0  ;;  %v546_v44 = vrot.slane %v544_v35, 7  ;;  %v535_v47 = vor.u32 %v533_v31, %v532_v38 }
  0x26   : > { %v745_v46 = vshll.u32 %v697_v43, 16  ;;  %v696_v48 = vsel %vm2131_vm2, %v532_v38, 0  ;;  %v977_v57 = vrot.slane %v697_v43, 1  ;;  %v614_v1 = vshrl.u32 %v518_v39, 16 }
  0x27   : > { %v2211_v50 = vsel %vm2131_vm2, 0, %v542_v42  ;;  %v733_v51 = vshll.u32 %v696_v48, 16  ;;  %v549_v52 = vor.u32 %v547_v36, %v546_v44  ;;  %v698_v53 = vsel %vm2131_vm2, %v546_v44, 0 }
  0x28   : > { %v738_v54 = vshrl.u32 %v2211_v50, 16  ;;  %v740_v55 = vshll.u32 %v2211_v50, 16  ;;  %v2219_v56 = vsel %vm2131_vm2, 0, %v535_v47  ;;  %v747_v58 = vrot.slane %v745_v46, 1  ;;  %v2066_v46 = vld [vmem:[%s2154_s22 + $0x70] sm:$0xff]  }
  0x29   : > { %v726_v59 = vshrl.u32 %v2219_v56, 16  ;;  %v728_v60 = vshll.u32 %v2219_v56, 16  ;;  %v735_v61 = vrot.slane %v733_v51, 1  ;;  %v2225_v63 = vsel %vm2131_vm2, 0, %v549_v52 }
  0x2a   : > { %v742_v62 = vrot.slane %v740_v55, 1  ;;  %v757_v0 = vshll.u32 %v698_v53, 16  ;;  %v976_v4 = vrot.slane %v2211_v50, 1  ;;  %v750_v6 = vshrl.u32 %v2225_v63, 16 }
  0x2b   : > { %v730_v3 = vrot.slane %v728_v60, 1  ;;  %v752_v7 = vshll.u32 %v2225_v63, 16  ;;  %v616_v10 = vrot.slane %v614_v1, 7  ;;  %v617_v11 = vshll.u32 %v518_v39, 16  ;;  %v2056_v39 = vld [vmem:[%s2154_s22 + $0x20] sm:$0xff]   ;;  %v2057_v60 = vld [vmem:[%s2154_s22 + $0x28] sm:$0xff]  }
  0x2c   : > { %v743_v8 = vor.u32 %v742_v62, %v738_v54  ;;  %v759_v9 = vrot.slane %v757_v0, 1  ;;  %v973_v17 = vrot.slane %v2219_v56, 1  ;;  %v974_v18 = vrot.slane %v696_v48, 1 }
  0x2d   : > { %v731_v12 = vor.u32 %v730_v3, %v726_v59  ;;  %v754_v14 = vrot.slane %v752_v7, 1  ;;  %v619_v20 = vor.u32 %v617_v11, %v616_v10  ;;  %v2234_v21 = vsel %vm2131_vm2, %v616_v10, 0 }
  0x2e   : > { %v748_v19 = vsel %vm712_vm3, %v743_v8, %v747_v58  ;;  %v352_v22 = vadd.f32 %v2161_v16, %v319_v40  ;;  %v978_v24 = vsel %vm969_vm4, %v976_v4, %v977_v57  ;;  %v877_v26 = vshll.u32 %v2234_v21, 16 }
  0x2f   : > { %909 = vrot.lane.b32.xlu0 %v748_v19, %s2095_s23  ;;  %v736_v23 = vsel %vm712_vm3, %v731_v12, %v735_v61  ;;  %v755_v25 = vor.u32 %v754_v14, %v750_v6  ;;  %v2244_v27 = vsel %vm2131_vm2, 0, %v619_v20  ;;  %v975_v28 = vsel %vm969_vm4, %v973_v17, %v974_v18 }
  0x30   : > { %907 = vrot.lane.b32.xlu1 %v736_v23, %s2095_s23  ;;  %v353_v29 = vadd.f32 %v2161_v16, %v320_v49  ;;  %v384_v30 = vmax.f32 %v352_v22, 0.0  ;;  %v870_v32 = vshrl.u32 %v2244_v27, 16  ;;  %v872_v33 = vshll.u32 %v2244_v27, 16  ;;  %1020 = vrot.lane.b32.xlu2 %v975_v28, %s2096_s24 }
  0x31   : > { %v760_v31 = vsel %vm712_vm3, %v755_v25, %v759_v9  ;;  %v1010_v34 = vrot.slane %v2234_v21, 1  ;;  %v879_v35 = vrot.slane %v877_v26, 1  ;;  %v302_v38 = vsub.f32 %v2043_v41, %v2156_v13 }
  0x32   : > { %v385_v36 = vmax.f32 %v353_v29, 0.0  ;;  %v416_v37 = vpack.c.bf16 %v384_v30, %v384_v30  ;;  %v874_v40 = vrot.slane %v872_v33, 1  ;;  %v303_v42 = vsub.f32 %v2044_v45, %v2156_v13 }
  0x33   : > { %v979_v43 = vrot.slane %v2225_v63, 1  ;;  %v980_v44 = vrot.slane %v698_v53, 1  ;;  %v1009_v47 = vrot.slane %v2244_v27, 1  ;;  %v339_v51 = vmul.f32 %v2159_v15, %v302_v38 }
  0x34   : > { %v417_v48 = vpack.c.bf16 %v385_v36, %v385_v36  ;;  %v480_v49 = vunpack.c.l.b16 %v416_v37  ;;  %v875_v52 = vor.u32 %v874_v40, %v870_v32  ;;  %v340_v54 = vmul.f32 %v2159_v15, %v303_v42 }
  0x35   : > { %v981_v41 = vsel %vm969_vm4, %v979_v43, %v980_v44  ;;  %v2007_v55 = vunpack.c.l.bf16 %v2056_v39  ;;  %v372_v45 = vadd.f32 %v2161_v16, %v339_v51  ;;  %v2008_v58 = vunpack.c.h.bf16 %v2056_v39 }
  0x36   : > { %v481_v57 = vunpack.c.l.b16 %v417_v48  ;;  %v2047_v59 = vunpack.c.l.bf16 %v2066_v46  ;;  %v880_v53 = vsel %vm712_vm3, %v875_v52, %v879_v35  ;;  %v373_v61 = vadd.f32 %v2161_v16, %v340_v54 }
  0x37   : > { %1022 = vrot.lane.b32.xlu0 %v978_v24, %s2096_s24  ;;  %v284_v62 = vsub.f32 %v2007_v55, %v2156_v13  ;;  %v2048_v0 = vunpack.c.h.bf16 %v2066_v46  ;;  %v404_v3 = vmax.f32 %v372_v45, 0.0  ;;  %v285_v4 = vsub.f32 %v2008_v58, %v2156_v13 }
  0x38   : > { %931 = vrot.lane.b32.xlu1 %v880_v53, %s2095_s23  ;;  %v509_v1 = vpack.c.b16 %v481_v57, %v480_v49  ;;  %v304_v6 = vsub.f32 %v2047_v59, %v2156_v13  ;;  %v405_v7 = vmax.f32 %v373_v61, 0.0  ;;  %1024 = vrot.lane.b32.xlu2 %v981_v41, %s2096_s24  ;;  %v2011_v10 = vunpack.c.l.bf16 %v2057_v60 }
  0x39   : > { %v321_v8 = vmul.f32 %v2159_v15, %v284_v62  ;;  %v305_v9 = vsub.f32 %v2048_v0, %v2156_v13  ;;  %v436_v14 = vpack.c.bf16 %v404_v3, %v404_v3  ;;  %v322_v17 = vmul.f32 %v2159_v15, %v285_v4 }
  0x3a   : > { %v551_v11 = vshrl.u32 %v509_v1, 16  ;;  %v554_v12 = vshll.u32 %v509_v1, 16  ;;  %v437_v18 = vpack.c.bf16 %v405_v7, %v405_v7  ;;  %v341_v20 = vmul.f32 %v2159_v15, %v304_v6 }
  0x3b   : > { %v354_v19 = vadd.f32 %v2161_v16, %v321_v8  ;;  %v342_v21 = vmul.f32 %v2159_v15, %v305_v9  ;;  %v1011_v22 = vsel %vm969_vm4, %v1009_v47, %v1010_v34  ;;  %v500_v24 = vunpack.c.l.b16 %v436_v14  ;;  %v2067_v8 = vld [vmem:[%s2154_s22 + $0x78] sm:$0xff]  }
  0x3c   : > { %v553_v23 = vrot.slane %v551_v11, 7  ;;  %v355_v25 = vadd.f32 %v2161_v16, %v322_v17  ;;  %v501_v26 = vunpack.c.l.b16 %v437_v18  ;;  %v374_v29 = vadd.f32 %v2161_v16, %v341_v20 }
  0x3d   : > { %v386_v28 = vmax.f32 %v354_v19, 0.0  ;;  %v375_v30 = vadd.f32 %v2161_v16, %v342_v21  ;;  %v2012_v36 = vunpack.c.h.bf16 %v2057_v60  ;;  %v286_v39 = vsub.f32 %v2011_v10, %v2156_v13 }
  0x3e   : > { %v556_v32 = vor.u32 %v554_v12, %v553_v23  ;;  %v699_v33 = vsel %vm2131_vm2, %v553_v23, 0  ;;  %v387_v35 = vmax.f32 %v355_v25, 0.0  ;;  %v519_v34 = vpack.c.b16 %v501_v26, %v500_v24 }
  0x3f   : > { %911 = vrot.lane.b32.xlu0 %v760_v31, %s2095_s23  ;;  %v769_v37 = vshll.u32 %v699_v33, 16  ;;  %v418_v38 = vpack.c.bf16 %v386_v28, %v386_v28  ;;  %v406_v43 = vmax.f32 %v374_v29, 0.0  ;;  %v407_v44 = vmax.f32 %v375_v30, 0.0 }
  0x40   : > { %v2288_v40 = vsel %vm2131_vm2, 0, %v556_v32  ;;  %v419_v42 = vpack.c.bf16 %v387_v35, %v387_v35  ;;  %v983_v49 = vrot.slane %v699_v33, 1  ;;  %v621_v31 = vshrl.u32 %v519_v34, 16 }
  0x41   : > { %v762_v46 = vshrl.u32 %v2288_v40, 16  ;;  %v764_v47 = vshll.u32 %v2288_v40, 16  ;;  %v982_v48 = vrot.slane %v2288_v40, 1  ;;  %v624_v51 = vshll.u32 %v519_v34, 16 }
  0x42   : > { %v482_v52 = vunpack.c.l.b16 %v418_v38  ;;  %v483_v54 = vunpack.c.l.b16 %v419_v42  ;;  %v771_v55 = vrot.slane %v769_v37, 1  ;;  %v438_v57 = vpack.c.bf16 %v406_v43, %v406_v43 }
  0x43   : > { %v766_v41 = vrot.slane %v764_v47, 1  ;;  %v439_v45 = vpack.c.bf16 %v407_v44, %v407_v44  ;;  %v623_v58 = vrot.slane %v621_v31, 7  ;;  %v287_v60 = vsub.f32 %v2012_v36, %v2156_v13 }
  0x44   : > { %v510_v59 = vpack.c.b16 %v483_v54, %v482_v52  ;;  %v323_v53 = vmul.f32 %v2159_v15, %v286_v39  ;;  %v984_v62 = vsel %vm969_vm4, %v982_v48, %v983_v49  ;;  %v502_v0 = vunpack.c.l.b16 %v438_v57 }
  0x45   : > { %v767_v61 = vor.u32 %v766_v41, %v762_v46  ;;  %v503_v1 = vunpack.c.l.b16 %v439_v45  ;;  %v626_v3 = vor.u32 %v624_v51, %v623_v58  ;;  %v709_v4 = vsel %vm2131_vm2, %v623_v58, 0 }
  0x46   : > { %v558_v6 = vshrl.u32 %v510_v59, 16  ;;  %v561_v7 = vshll.u32 %v510_v59, 16  ;;  %v1013_v10 = vrot.slane %v709_v4, 1  ;;  %v889_v12 = vshll.u32 %v709_v4, 16 }
  0x47   : > { %1044 = vrot.lane.b32.xlu0 %v1011_v22, %s2096_s24  ;;  %v772_v9 = vsel %vm712_vm3, %v767_v61, %v771_v55  ;;  %v520_v11 = vpack.c.b16 %v503_v1, %v502_v0  ;;  %v2304_v14 = vsel %vm2131_vm2, 0, %v626_v3  ;;  %v324_v18 = vmul.f32 %v2159_v15, %v287_v60 }
  0x48   : > { %913 = vrot.lane.b32.xlu1 %v772_v9, %s2095_s23  ;;  %v560_v17 = vrot.slane %v558_v6, 7  ;;  %v356_v19 = vadd.f32 %v2161_v16, %v323_v53  ;;  %v1012_v20 = vrot.slane %v2304_v14, 1  ;;  %v2051_v23 = vunpack.c.l.bf16 %v2067_v8 }
  0x49   : > { %v628_v21 = vshrl.u32 %v520_v11, 16  ;;  %v631_v22 = vshll.u32 %v520_v11, 16  ;;  %v882_v26 = vshrl.u32 %v2304_v14, 16  ;;  %v884_v28 = vshll.u32 %v2304_v14, 16 }
  0x4a   : > { %v563_v24 = vor.u32 %v561_v7, %v560_v17  ;;  %v700_v25 = vsel %vm2131_vm2, %v560_v17, 0  ;;  %v1014_v29 = vsel %vm969_vm4, %v1012_v20, %v1013_v10  ;;  %v891_v32 = vrot.slane %v889_v12, 1  ;;  %v2058_v7 = vld [vmem:[%s2154_s22 + $0x30] sm:$0xff]   ;;  %v2063_v20 = vld [vmem:[%s2154_s22 + $0x58] sm:$0xff]  }
  0x4b   : > { %v630_v30 = vrot.slane %v628_v21, 7  ;;  %v357_v33 = vadd.f32 %v2161_v16, %v324_v18  ;;  %v886_v36 = vrot.slane %v884_v28, 1  ;;  %v388_v37 = vmax.f32 %v356_v19, 0.0 }
  0x4c   : > { %v2317_v35 = vsel %vm2131_vm2, 0, %v563_v24  ;;  %v2052_v34 = vunpack.c.h.bf16 %v2067_v8  ;;  %v986_v38 = vrot.slane %v700_v25, 1  ;;  %v306_v48 = vsub.f32 %v2051_v23, %v2156_v13 }
  0x4d   : > { %v633_v39 = vor.u32 %v631_v22, %v630_v30  ;;  %v2321_v42 = vsel %vm2131_vm2, %v630_v30, 0  ;;  %v389_v43 = vmax.f32 %v357_v33, 0.0  ;;  %v887_v46 = vor.u32 %v886_v36, %v882_v26 }
  0x4e   : > { %v901_v44 = vshll.u32 %v2321_v42, 16  ;;  %v420_v47 = vpack.c.bf16 %v388_v37, %v388_v37  ;;  %v985_v49 = vrot.slane %v2317_v35, 1  ;;  %v307_v52 = vsub.f32 %v2052_v34, %v2156_v13 }
  0x4f   : > { %1026 = vrot.lane.b32.xlu0 %v984_v62, %s2096_s24  ;;  %v2329_v31 = vsel %vm2131_vm2, 0, %v633_v39  ;;  %v421_v51 = vpack.c.bf16 %v389_v43, %v389_v43  ;;  %v892_v57 = vsel %vm712_vm3, %v887_v46, %v891_v32  ;;  %v343_v59 = vmul.f32 %v2159_v15, %v306_v48 }
  0x50   : > { %1046 = vrot.lane.b32.xlu1 %v1014_v29, %s2096_s24  ;;  %v894_v54 = vshrl.u32 %v2329_v31, 16  ;;  %v896_v41 = vshll.u32 %v2329_v31, 16  ;;  %v903_v55 = vrot.slane %v901_v44, 1  ;;  %933 = vrot.lane.b32.xlu2 %v892_v57, %s2095_s23  ;;  %v484_v45 = vunpack.c.l.b16 %v420_v47 }
  0x51   : > { %v485_v58 = vunpack.c.l.b16 %v421_v51  ;;  %v344_v60 = vmul.f32 %v2159_v15, %v307_v52  ;;  %v774_v61 = vshrl.u32 %v2317_v35, 16  ;;  %v776_v62 = vshll.u32 %v2317_v35, 16 }
  0x52   : > { %v898_v53 = vrot.slane %v896_v41, 1  ;;  %v781_v0 = vshll.u32 %v700_v25, 16  ;;  %v987_v1 = vsel %vm969_vm4, %v985_v49, %v986_v38  ;;  %v376_v4 = vadd.f32 %v2161_v16, %v343_v59 }
  0x53   : > { %v511_v3 = vpack.c.b16 %v485_v58, %v484_v45  ;;  %v377_v6 = vadd.f32 %v2161_v16, %v344_v60  ;;  %v778_v9 = vrot.slane %v776_v62, 1  ;;  %v1015_v11 = vrot.slane %v2329_v31, 1 }
  0x54   : > { %v899_v8 = vor.u32 %v898_v53, %v894_v54  ;;  %v783_v10 = vrot.slane %v781_v0, 1  ;;  %v408_v18 = vmax.f32 %v376_v4, 0.0  ;;  %v1016_v23 = vrot.slane %v2321_v42, 1 }
  0x55   : > { %v565_v12 = vshrl.u32 %v511_v3, 16  ;;  %v568_v17 = vshll.u32 %v511_v3, 16  ;;  %v409_v19 = vmax.f32 %v377_v6, 0.0  ;;  %v779_v22 = vor.u32 %v778_v9, %v774_v61 }
  0x56   : > { %v904_v21 = vsel %vm712_vm3, %v899_v8, %v903_v55  ;;  %v2015_v24 = vunpack.c.l.bf16 %v2058_v7  ;;  %v440_v26 = vpack.c.bf16 %v408_v18, %v408_v18  ;;  %v2016_v29 = vunpack.c.h.bf16 %v2058_v7 }
  0x57   : > { %935 = vrot.lane.b32.xlu0 %v904_v21, %s2095_s23  ;;  %v567_v25 = vrot.slane %v565_v12, 7  ;;  %v441_v28 = vpack.c.bf16 %v409_v19, %v409_v19  ;;  %v784_v30 = vsel %vm712_vm3, %v779_v22, %v783_v10  ;;  %v2035_v33 = vunpack.c.l.bf16 %v2063_v20 }
  0x58   : > { %1028 = vrot.lane.b32.xlu1 %v987_v1, %s2096_s24  ;;  %v288_v32 = vsub.f32 %v2015_v24, %v2156_v13  ;;  %v2036_v36 = vunpack.c.h.bf16 %v2063_v20  ;;  %v504_v38 = vunpack.c.l.b16 %v440_v26  ;;  %915 = vrot.lane.b32.xlu2 %v784_v30, %s2095_s23  ;;  %v289_v43 = vsub.f32 %v2016_v29, %v2156_v13  ;;  %v2059_v20 = vld [vmem:[%s2154_s22 + $0x38] sm:$0xff]  }
  0x59   : > { %v570_v37 = vor.u32 %v568_v17, %v567_v25  ;;  %v701_v34 = vsel %vm2131_vm2, %v567_v25, 0  ;;  %v505_v39 = vunpack.c.l.b16 %v441_v28  ;;  %v298_v46 = vsub.f32 %v2035_v33, %v2156_v13  ;;  %v1118_v25 = vld [vmem:[%s3115_s2 + $0x8] sm:$0xf] }
  0x5a   : > { %v793_v42 = vshll.u32 %v701_v34, 16  ;;  %v325_v44 = vmul.f32 %v2159_v15, %v288_v32  ;;  %v299_v49 = vsub.f32 %v2036_v36, %v2156_v13  ;;  %v1017_v54 = vsel %vm969_vm4, %v1015_v11, %v1016_v23 }
  0x5b   : > { %v2361_v47 = vsel %vm2131_vm2, 0, %v570_v37  ;;  %v521_v48 = vpack.c.b16 %v505_v39, %v504_v38  ;;  %v326_v41 = vmul.f32 %v2159_v15, %v289_v43  ;;  %v335_v58 = vmul.f32 %v2159_v15, %v298_v46 }
  0x5c   : > { %v786_v51 = vshrl.u32 %v2361_v47, 16  ;;  %v788_v52 = vshll.u32 %v2361_v47, 16  ;;  %v358_v45 = vadd.f32 %v2161_v16, %v325_v44  ;;  %v795_v60 = vrot.slane %v793_v42, 1 }
  0x5d   : > { %v635_v55 = vshrl.u32 %v521_v48, 16  ;;  %v638_v57 = vshll.u32 %v521_v48, 16  ;;  %v359_v53 = vadd.f32 %v2161_v16, %v326_v41  ;;  %v336_v61 = vmul.f32 %v2159_v15, %v299_v49 }
  0x5e   : > { %v790_v59 = vrot.slane %v788_v52, 1  ;;  %v390_v0 = vmax.f32 %v358_v45, 0.0  ;;  %v368_v1 = vadd.f32 %v2161_v16, %v335_v58  ;;  %v988_v7 = vrot.slane %v2361_v47, 1 }
  0x5f   : > { %v637_v62 = vrot.slane %v635_v55, 7  ;;  %v391_v4 = vmax.f32 %v359_v53, 0.0  ;;  %v369_v6 = vadd.f32 %v2161_v16, %v336_v61  ;;  %v989_v19 = vrot.slane %v701_v34, 1 }
  0x60   : > { %v791_v3 = vor.u32 %v790_v59, %v786_v51  ;;  %1048 = vrot.lane.b32.xlu2 %v1017_v54, %s2096_s24  ;;  %v422_v10 = vpack.c.bf16 %v390_v0, %v390_v0  ;;  %v400_v11 = vmax.f32 %v368_v1, 0.0  ;;  %v2019_v37 = vunpack.c.l.bf16 %v2059_v20  ;;  %v1986_v1 = vld [vmem:[%s3115_s2] sm:$0xff] }
  0x61   : > { %v640_v8 = vor.u32 %v638_v57, %v637_v62  ;;  %v711_v9 = vsel %vm2131_vm2, %v637_v62, 0  ;;  %v423_v18 = vpack.c.bf16 %v391_v4, %v391_v4  ;;  %v401_v23 = vmax.f32 %v369_v6, 0.0  ;;  %v1146_v57 = vld [vmem:[%s3115_s2 + $0x14] sm:$0xf]  ;;  %v2060_v6 = vld [vmem:[%s2154_s22 + $0x40] sm:$0xff]  }
  0x62   : > { %v796_v12 = vsel %vm712_vm3, %v791_v3, %v795_v60  ;;  %v1127_v17 = vshll.u32 %v711_v9, 16  ;;  %v486_v22 = vunpack.c.l.b16 %v422_v10  ;;  %v432_v24 = vpack.c.bf16 %v400_v11, %v400_v11 }
  0x63   : > { %917 = vrot.lane.b32.xlu0 %v796_v12, %s2095_s23  ;;  %v2383_v21 = vsel %vm2131_vm2, 0, %v640_v8  ;;  %v1136_v30 = vrot.slane %v711_v9, 1  ;;  %v487_v32 = vunpack.c.l.b16 %v423_v18  ;;  %v433_v33 = vpack.c.bf16 %v401_v23, %v401_v23  ;;  %v1987_v23 = vld [vmem:[%s3115_s2 + $0xc] sm:$0xff] }
  0x64   : > { %v1120_v26 = vshrl.u32 %v2383_v21, 16  ;;  %v1122_v28 = vshll.u32 %v2383_v21, 16  ;;  %v1135_v29 = vrot.slane %v2383_v21, 1  ;;  %v496_v36 = vunpack.c.l.b16 %v432_v24 }
  0x65   : > { %v1129_v38 = vrot.slane %v1127_v17, 1  ;;  %v990_v39 = vsel %vm969_vm4, %v988_v7, %v989_v19  ;;  %v1287_v42 = vunpack.c.l.b16 %v1118_v25  ;;  %v512_v43 = vpack.c.b16 %v487_v32, %v486_v22 }
  0x66   : > { %v1124_v34 = vrot.slane %v1122_v28, 1  ;;  %v497_v44 = vunpack.c.l.b16 %v433_v33  ;;  %v1137_v48 = vsel %vm969_vm4, %v1135_v29, %v1136_v30  ;;  %v2020_v51 = vunpack.c.h.bf16 %v2059_v20 }
  0x67   : > { %v1289_v49 = vpack.c.b16 %v1287_v42, %v1287_v42  ;;  %v572_v52 = vshrl.u32 %v512_v43, 16  ;;  %v575_v54 = vshll.u32 %v512_v43, 16  ;;  %v290_v55 = vsub.f32 %v2019_v37, %v2156_v13 }
  0x68   : > { %v1125_v46 = vor.u32 %v1124_v34, %v1120_v26  ;;  %v517_v41 = vpack.c.b16 %v497_v44, %v496_v36  ;;  %1030 = vrot.lane.b32.xlu2 %v990_v39, %s2096_s24  ;;  %v291_v59 = vsub.f32 %v2020_v51, %v2156_v13  ;;  %v1152_v60 = vunpack.c.l.b16 %v1146_v57 }
  0x69   : > { %v1294_v58 = vsel %vm1189_vm5, %v1289_v49, 0  ;;  %v574_v53 = vrot.slane %v572_v52, 7  ;;  %v327_v0 = vmul.f32 %v2159_v15, %v290_v55  ;;  %v2023_v24 = vunpack.c.l.bf16 %v2060_v6 }
  0x6a   : > { %v1130_v45 = vsel %vm712_vm3, %v1125_v46, %v1129_v38  ;;  %v607_v61 = vshrl.u32 %v517_v41, 16  ;;  %v610_v62 = vshll.u32 %v517_v41, 16  ;;  %1302 = vmatpush.bf16.msra.mxu1 %v1294_v58  ;;  %v328_v3 = vmul.f32 %v2159_v15, %v291_v59 }
  0x6b   : > { %1131 = vrot.lane.b32.xlu1 %v1130_v45, %s2095_s23  ;;  %1138 = vrot.lane.b32.xlu0 %v1137_v48, %s2096_s24  ;;  %v1154_v4 = vpack.c.b16 %v1152_v60, %v1152_v60  ;;  %v577_v7 = vor.u32 %v575_v54, %v574_v53  ;;  %v702_v8 = vsel %vm2131_vm2, %v574_v53, 0  ;;  %v360_v10 = vadd.f32 %v2161_v16, %v327_v0 }
  0x6c   : > { %v609_v9 = vrot.slane %v607_v61, 7  ;;  %v805_v11 = vshll.u32 %v702_v8, 16  ;;  %v992_v12 = vrot.slane %v702_v8, 1  ;;  %v361_v17 = vadd.f32 %v2161_v16, %v328_v3  ;;  %v2061_v3 = vld [vmem:[%s2154_s22 + $0x48] sm:$0xff]  }
  0x6d   : > { %v1191_v18 = vsel %vm1189_vm5, %v1154_v4, 0  ;;  %v2416_v19 = vsel %vm2131_vm2, 0, %v577_v7  ;;  %v392_v22 = vmax.f32 %v360_v10, 0.0  ;;  %v2024_v29 = vunpack.c.h.bf16 %v2060_v6 }
  0x6e   : > { %v612_v20 = vor.u32 %v610_v62, %v609_v9  ;;  %1199 = vmatpush.bf16.msra.mxu0 %v1191_v18  ;;  %2068 = vmatpush.bf16.msra.mxu3 %v1191_v18  ;;  %v798_v25 = vshrl.u32 %v2416_v19, 16  ;;  %v800_v26 = vshll.u32 %v2416_v19, 16  ;;  %v991_v28 = vrot.slane %v2416_v19, 1 }
  0x6f   : > { %1303 = vmatpush.bf16.msra.mxu1 %v1986_v1  ;;  %v707_v32 = vsel %vm2131_vm2, %v609_v9, 0  ;;  %v393_v33 = vmax.f32 %v361_v17, 0.0  ;;  %v424_v36 = vpack.c.bf16 %v392_v22, %v392_v22  ;;  %v807_v34 = vrot.slane %v805_v11, 1 }
  0x70   : > { %v2426_v30 = vsel %vm2131_vm2, 0, %v612_v20  ;;  %v802_v37 = vrot.slane %v800_v26, 1  ;;  %v993_v38 = vsel %vm969_vm4, %v991_v28, %v992_v12  ;;  %v865_v46 = vshll.u32 %v707_v32, 16 }
  0x71   : > { %v858_v39 = vshrl.u32 %v2426_v30, 16  ;;  %v425_v42 = vpack.c.bf16 %v393_v33, %v393_v33  ;;  %v488_v43 = vunpack.c.l.b16 %v424_v36  ;;  %v860_v44 = vshll.u32 %v2426_v30, 16  ;;  %v1387_v33 = vld [vmem:[%s3115_s2 + $0x20] sm:$0xf] }
  0x72   : > { %1200 = vmatpush.bf16.msra.mxu0 %v1987_v23  ;;  %v803_v48 = vor.u32 %v802_v37, %v798_v25  ;;  %v292_v49 = vsub.f32 %v2023_v24, %v2156_v13  ;;  %v293_v51 = vsub.f32 %v2024_v29, %v2156_v13  ;;  %2069 = vmatpush.bf16.msra.mxu3 %v1987_v23  ;;  %v867_v41 = vrot.slane %v865_v46, 1 }
  0x73   : > { %1032 = vrot.lane.b32.xlu0 %v993_v38, %s2096_s24  ;;  %v489_v52 = vunpack.c.l.b16 %v425_v42  ;;  %v862_v54 = vrot.slane %v860_v44, 1  ;;  %v1006_v53 = vrot.slane %v2426_v30, 1  ;;  %v1007_v61 = vrot.slane %v707_v32, 1 }
  0x74   : > { %v808_v55 = vsel %vm712_vm3, %v803_v48, %v807_v34  ;;  %v329_v57 = vmul.f32 %v2159_v15, %v292_v49  ;;  %v330_v45 = vmul.f32 %v2159_v15, %v293_v51  ;;  %v2027_v7 = vunpack.c.l.bf16 %v2061_v3 }
  0x75   : > { %919 = vrot.lane.b32.xlu1 %v808_v55, %s2095_s23  ;;  %v513_v59 = vpack.c.b16 %v489_v52, %v488_v43  ;;  %v863_v60 = vor.u32 %v862_v54, %v858_v39  ;;  %v2028_v10 = vunpack.c.h.bf16 %v2061_v3  ;;  %v1008_v17 = vsel %vm969_vm4, %v1006_v53, %v1007_v61  ;;  %v2473_v55 = vld [vmem:[%s3115_s2 + $0x18] sm:$0xff] }
  0x76   : > { %2070 = vmatpush.bf16.msrb.mxu3 %v1294_v58  ;;  %v362_v62 = vadd.f32 %v2161_v16, %v329_v57  ;;  %v363_v0 = vadd.f32 %v2161_v16, %v330_v45  ;;  %v294_v12 = vsub.f32 %v2027_v7, %v2156_v13  ;;  %v1393_v34 = vunpack.c.l.b16 %v1387_v33 }
  0x77   : > { %v579_v4 = vshrl.u32 %v513_v59, 16  ;;  %v582_v58 = vshll.u32 %v513_v59, 16  ;;  %v868_v6 = vsel %vm712_vm3, %v863_v60, %v867_v41  ;;  %v295_v22 = vsub.f32 %v2028_v10, %v2156_v13  ;;  %v1019_v41 = vpop.permute.xlu2 %1018 }
  0x78   : > { %929 = vrot.lane.b32.xlu2 %v868_v6, %s2095_s23  ;;  %v394_v8 = vmax.f32 %v362_v62, 0.0  ;;  %v395_v9 = vmax.f32 %v363_v0, 0.0  ;;  %v1395_v44 = vpack.c.b16 %v1393_v34, %v1393_v34  ;;  %vm1156_vm8 = vcmask 195584  }
  0x79   : > { %v581_v11 = vrot.slane %v579_v4, 7  ;;  %v332_v29 = vmul.f32 %v2159_v15, %v295_v22  ;;  %vm1586_vm9 = vcmask 60416   ;;  %vm1824_vm10 = vcmask 58368  }
  0x7a   : > { %2071 = vmatpush.bf16.msrb.mxu3 %v1986_v1  ;;  %v426_v18 = vpack.c.bf16 %v394_v8, %v394_v8  ;;  %v427_v20 = vpack.c.bf16 %v395_v9, %v395_v9  ;;  %v331_v1 = vmul.f32 %v2159_v15, %v294_v12  ;;  %v2467_v52 = vsel %vm1189_vm5, %v1395_v44, 0 }
  0x7b   : > { %v584_v23 = vor.u32 %v582_v58, %v581_v11  ;;  %v703_v24 = vsel %vm2131_vm2, %v581_v11, 0  ;;  %v365_v39 = vadd.f32 %v2161_v16, %v332_v29  ;;  %1406 = vmatpush.bf16.msra.mxu2 %v2467_v52 }
  0x7c   : > { %v995_v25 = vrot.slane %v703_v24, 1  ;;  %v490_v26 = vunpack.c.l.b16 %v426_v18  ;;  %v491_v28 = vunpack.c.l.b16 %v427_v20  ;;  %v364_v36 = vadd.f32 %v2161_v16, %v331_v1 }
  0x7d   : > { %1042 = vrot.lane.b32.xlu1 %v1008_v17, %s2096_s24  ;;  %v2456_v32 = vsel %vm2131_vm2, 0, %v584_v23  ;;  %v397_v49 = vmax.f32 %v365_v39, 0.0  ;;  %v817_v10 = vshll.u32 %v703_v24, 16 }
  0x7e   : > { %v994_v37 = vrot.slane %v2456_v32, 1  ;;  %v514_v38 = vpack.c.b16 %v491_v28, %v490_v26  ;;  %v396_v42 = vmax.f32 %v364_v36, 0.0  ;;  %v812_v58 = vshll.u32 %v2456_v32, 16 }
  0x7f   : > { %v429_v57 = vpack.c.bf16 %v397_v49, %v397_v49  ;;  %1407 = vmatpush.bf16.msra.mxu2 %v2473_v55  ;;  %v810_v8 = vshrl.u32 %v2456_v32, 16  ;;  %v819_v22 = vrot.slane %v817_v10, 1 }
  0x80   : > { %v996_v43 = vsel %vm969_vm4, %v994_v37, %v995_v25  ;;  %v586_v46 = vshrl.u32 %v514_v38, 16  ;;  %v589_v48 = vshll.u32 %v514_v38, 16  ;;  %v428_v51 = vpack.c.bf16 %v396_v42, %v396_v42  ;;  %v2062_v25 = vld [vmem:[%s2154_s22 + $0x50] sm:$0xff]  }
  0x81   : > { %1034 = vrot.lane.b32.xlu0 %v996_v43, %s2096_s24  ;;  %v493_v0 = vunpack.c.l.b16 %v429_v57  ;;  %v814_v9 = vrot.slane %v812_v58, 1  ;;  %v2031_v28 = vunpack.c.l.bf16 %v2062_v25  ;;  %v2032_v29 = vunpack.c.h.bf16 %v2062_v25 }
  0x82   : > { %v588_v54 = vrot.slane %v586_v46, 7  ;;  %v492_v45 = vunpack.c.l.b16 %v428_v51 }
  0x83   : > { %v815_v20 = vor.u32 %v814_v9, %v810_v8  ;;  %v296_v24 = vsub.f32 %v2031_v28, %v2156_v13  ;;  %v297_v37 = vsub.f32 %v2032_v29, %v2156_v13 }
  0x84   : > { %v591_v60 = vor.u32 %v589_v48, %v588_v54  ;;  %v704_v53 = vsel %vm2131_vm2, %v588_v54, 0 }
  0x85   : > { %v829_v62 = vshll.u32 %v704_v53, 16  ;;  %v820_v26 = vsel %vm712_vm3, %v815_v20, %v819_v22  ;;  %v333_v44 = vmul.f32 %v2159_v15, %v296_v24  ;;  %v334_v46 = vmul.f32 %v2159_v15, %v297_v37 }
  0x86   : > { %v2484_v4 = vsel %vm2131_vm2, 0, %v591_v60  ;;  %921 = vrot.lane.b32.xlu2 %v820_v26, %s2095_s23 }
  0x87   : > { %v822_v6 = vshrl.u32 %v2484_v4, 16  ;;  %v824_v7 = vshll.u32 %v2484_v4, 16  ;;  %v831_v12 = vrot.slane %v829_v62, 1  ;;  %v366_v13 = vadd.f32 %v2161_v16, %v333_v44 }
  0x88   : > { %v906_v59 = vpop.permute.xlu1 %905  ;;  %v997_v58 = vrot.slane %v2484_v4, 1 }
  0x89   : > { %v1052_v61 = vsel %vm1050_vm6, %v2140_v5, %v906_v59  ;;  %v515_v5 = vpack.c.b16 %v493_v0, %v492_v45  ;;  %v826_v11 = vrot.slane %v824_v7, 1  ;;  %v398_v45 = vmax.f32 %v366_v13, 0.0 }
  0x8a   : > { %v2480_v3 = vsel %vm1083_vm7, %v1052_v61, %v1019_v41  ;;  %v367_v41 = vadd.f32 %v2161_v16, %v334_v46 }
  0x8b   : > { %1946 = vmatmul.msk.bf16.vlgmr.msra.gmra.mxu1 %vm1156_vm8, %v2480_v3  ;;  %v593_v17 = vshrl.u32 %v515_v5, 16  ;;  %v596_v18 = vshll.u32 %v515_v5, 16  ;;  %v827_v23 = vor.u32 %v826_v11, %v822_v6  ;;  %v430_v62 = vpack.c.bf16 %v398_v45, %v398_v45  ;;  %v1021_v11 = vpop.permute.xlu2 %1020 }
  0x8c   : > { %v399_v60 = vmax.f32 %v367_v41, 0.0  ;;  %v998_v6 = vrot.slane %v704_v53, 1 }
  0x8d   : > { %v595_v1 = vrot.slane %v593_v17, 7  ;;  %v832_v33 = vsel %vm712_vm3, %v827_v23, %v831_v12  ;;  %v494_v0 = vunpack.c.l.b16 %v430_v62 }
  0x8e   : > { %923 = vrot.lane.b32.xlu1 %v832_v33, %s2095_s23  ;;  %v431_v15 = vpack.c.bf16 %v399_v60, %v399_v60  ;;  %v999_v16 = vsel %vm969_vm4, %v997_v58, %v998_v6 }
  0x8f   : > { %v598_v36 = vor.u32 %v596_v18, %v595_v1  ;;  %v705_v38 = vsel %vm2131_vm2, %v595_v1, 0  ;;  %1036 = vrot.lane.b32.xlu2 %v999_v16, %s2096_s24 }
  0x90   : > { %v841_v43 = vshll.u32 %v705_v38, 16  ;;  %v1001_v54 = vrot.slane %v705_v38, 1  ;;  %v495_v7 = vunpack.c.l.b16 %v431_v15 }
  0x91   : > { %v2502_v34 = vsel %vm2131_vm2, 0, %v598_v36 }
  0x92   : > { %v834_v39 = vshrl.u32 %v2502_v34, 16  ;;  %v836_v42 = vshll.u32 %v2502_v34, 16  ;;  %v843_v49 = vrot.slane %v841_v43, 1  ;;  %v1000_v51 = vrot.slane %v2502_v34, 1 }
  0x93   : > { %v516_v5 = vpack.c.b16 %v495_v7, %v494_v0  ;;  %v1025_v24 = vpop.permute.xlu2 %1024 }
  0x94   : > { %v838_v48 = vrot.slane %v836_v42, 1  ;;  %v1002_v59 = vsel %vm969_vm4, %v1000_v51, %v1001_v54 }
  0x95   : > { %v600_v8 = vshrl.u32 %v516_v5, 16  ;;  %v603_v9 = vshll.u32 %v516_v5, 16 }
  0x96   : > { %v839_v57 = vor.u32 %v838_v48, %v834_v39  ;;  %1038 = vrot.lane.b32.xlu1 %v1002_v59, %s2096_s24 }
  0x97   : > { %v602_v12 = vrot.slane %v600_v8, 7 }
  0x98   : > { %v844_v61 = vsel %vm712_vm3, %v839_v57, %v843_v49 }
  0x99   : > { %925 = vrot.lane.b32.xlu0 %v844_v61, %s2095_s23  ;;  %v605_v20 = vor.u32 %v603_v9, %v602_v12  ;;  %v706_v53 = vsel %vm2131_vm2, %v602_v12, 0 }
  0x9a   : > { %v1004_v1 = vrot.slane %v706_v53, 1  ;;  %v853_v46 = vshll.u32 %v706_v53, 16 }
  0x9b   : > { %v2529_v23 = vsel %vm2131_vm2, 0, %v605_v20 }
  0x9c   : > { %v1003_v25 = vrot.slane %v2529_v23, 1  ;;  %v848_v37 = vshll.u32 %v2529_v23, 16  ;;  %v846_v43 = vshrl.u32 %v2529_v23, 16 }
  0x9e   : > { %v1005_v26 = vsel %vm969_vm4, %v1003_v25, %v1004_v1  ;;  %v850_v44 = vrot.slane %v848_v37, 1  ;;  %v2085_v37 = vld [vmem:[%s3114_s1] sm:$0x1f] }
  0xa0   : > { %v851_v48 = vor.u32 %v850_v44, %v846_v43 }
  0xa1   : > { %v910_v10 = vpop.permute.xlu0 %909  ;;  %1040 = vrot.lane.b32.xlu0 %v1005_v26, %s2096_s24 }
  0xa2   : > { %v908_v17 = vpop.permute.xlu1 %907 }
  0xa3   : > { %v1054_v18 = vsel %vm1050_vm6, %v2219_v56, %v908_v17  ;;  %v1056_v56 = vsel %vm1050_vm6, %v2211_v50, %v910_v10 }
  0xa4   : > { %v1087_v22 = vsel %vm1083_vm7, %v1054_v18, %v1021_v11 }
  0xa5   : > { %1926 = vmatmul.msk.bf16.vlgmr.msra.gmra.mxu0 %vm1156_vm8, %v1087_v22  ;;  %1947 = vmatmul.msk.bf16.gmra.mxu1 %vm1156_vm8, %v1087_v22 }
  0xa9   : > { %v1023_v28 = vpop.permute.xlu0 %1022 }
  0xaa   : > { %v1089_v29 = vsel %vm1083_vm7, %v1056_v56, %v1023_v28  ;;  %v932_v36 = vpop.permute.xlu1 %931  ;;  %v934_v13 = vpop.permute.xlu2 %933 }
  0xab   : > { %1966 = vmatmul.msk.bf16.vlgmr.msra.gmra.mxu2 %vm1156_vm8, %v1089_v29  ;;  %v1078_v50 = vsel %vm1050_vm6, %v2244_v27, %v932_v36  ;;  %v855_v27 = vrot.slane %v853_v46, 1  ;;  %v1080_v51 = vsel %vm1050_vm6, %v2304_v14, %v934_v13 }
  0xad   : > { %v856_v49 = vsel %vm712_vm3, %v851_v48, %v855_v27 }
  0xae   : > { %927 = vrot.lane.b32.xlu2 %v856_v49, %s2095_s23 }
  0xb1   : > { %v912_v33 = vpop.permute.xlu0 %911 }
  0xb2   : > { %v1058_v2 = vsel %vm1050_vm6, %v2225_v63, %v912_v33 }
  0xb3   : > { %v1091_v39 = vsel %vm1083_vm7, %v1058_v2, %v1025_v24 }
  0xb5   : > { %1927 = vmatmul.msk.bf16.gmra.mxu0 %vm1156_vm8, %v1089_v29  ;;  %1948 = vmatmul.msk.bf16.gmra.mxu1 %vm1156_vm8, %v1089_v29 }
  0xb9   : > { %v1045_v38 = vpop.permute.xlu0 %1044 }
  0xba   : > { %v2547_v42 = vsel %vm1083_vm7, %v1078_v50, %v1045_v38  ;;  %v914_v63 = vpop.permute.xlu1 %913  ;;  %v2636_v38 = vperm.slane %v2085_v37, 4 }
  0xbb   : > { %1938 = vmatmul.msk.bf16.vlgmr.msra.gmra.mxu3 %vm1156_vm8, %v2547_v42  ;;  %1967 = vmatmul.msk.bf16.gmra.mxu2 %vm1156_vm8, %v1091_v39  ;;  %v1060_v41 = vsel %vm1050_vm6, %v2288_v40, %v914_v63 }
  0xbc   : > { %2072 = vmatpush.bf16.msra.mxu3 %v2467_v52 }
  0xc0   : > { %2073 = vmatpush.bf16.msra.mxu3 %v2473_v55  ;;  %v916_v55 = vpop.permute.xlu2 %915 }
  0xc1   : > { %v1027_v57 = vpop.permute.xlu0 %1026  ;;  %v1062_v60 = vsel %vm1050_vm6, %v2317_v35, %v916_v55 }
  0xc2   : > { %v1047_v54 = vpop.permute.xlu1 %1046  ;;  %v1093_v45 = vsel %vm1083_vm7, %v1060_v41, %v1027_v57 }
  0xc3   : > { %v2564_v52 = vsel %vm1083_vm7, %v1080_v51, %v1047_v54 }
  0xc5   : > { %1928 = vmatmul.msk.bf16.gmra.mxu0 %vm1156_vm8, %v1091_v39  ;;  %1949 = vmatmul.msk.bf16.gmra.mxu1 %vm1156_vm8, %v1091_v39 }
  0xc8   : > { %v1049_v14 = vpop.permute.xlu2 %1048 }
  0xc9   : > { %v936_v59 = vpop.permute.xlu0 %935 }
  0xca   : > { %v1082_v40 = vsel %vm1050_vm6, %v2329_v31, %v936_v59  ;;  %v1029_v61 = vpop.permute.xlu1 %1028 }
  0xcb   : > { %1939 = vmatmul.msk.bf16.gmra.mxu3 %vm1156_vm8, %v2564_v52  ;;  %1968 = vmatmul.msk.bf16.gmra.mxu2 %vm1156_vm8, %v1093_v45  ;;  %v2577_v62 = vsel %vm1083_vm7, %v1082_v40, %v1049_v14  ;;  %v1095_v15 = vsel %vm1083_vm7, %v1062_v60, %v1029_v61 }
  0xd0   : > { %v1031_v7 = vpop.permute.xlu2 %1030 }
  0xd5   : > { %1929 = vmatmul.msk.bf16.gmra.mxu0 %vm1156_vm8, %v1093_v45  ;;  %1950 = vmatmul.msk.bf16.gmra.mxu1 %vm1156_vm8, %v1093_v45  ;;  %v918_v0 = vpop.permute.xlu0 %917 }
  0xd6   : > { %v1064_v6 = vsel %vm1050_vm6, %v2361_v47, %v918_v0 }
  0xd7   : > { %v1097_v5 = vsel %vm1083_vm7, %v1064_v6, %v1031_v7 }
  0xd8   : > { %v930_v9 = vpop.permute.xlu2 %929 }
  0xd9   : > { %v1076_v47 = vsel %vm1050_vm6, %v2426_v30, %v930_v9 }
  0xdb   : > { %1940 = vmatmul.msk.bf16.gmra.mxu3 %vm1156_vm8, %v2577_v62  ;;  %1969 = vmatmul.msk.bf16.gmra.mxu2 %vm1156_vm8, %v1095_v15 }
  0xdd   : > { %v1132_v58 = vpop.permute.xlu1 %1131  ;;  %v1139_v31 = vpop.permute.xlu0 %1138 }
  0xde   : > { %v1141_v35 = vsel %vm1050_vm6, %v2383_v21, %v1132_v58 }
  0xdf   : > { %v2590_v16 = vsel %vm1083_vm7, %v1141_v35, %v1139_v31 }
  0xe0   : > { %v922_v18 = vpop.permute.xlu2 %921 }
  0xe1   : > { %v1068_v30 = vsel %vm1050_vm6, %v2456_v32, %v922_v18 }
  0xe5   : > { %1930 = vmatmul.msk.bf16.gmra.mxu0 %vm1156_vm8, %v1095_v15  ;;  %1951 = vmatmul.msk.bf16.gmra.mxu1 %vm1156_vm8, %v1095_v15  ;;  %v1033_v11 = vpop.permute.xlu0 %1032 }
  0xe7   : > { %v920_v8 = vpop.permute.xlu1 %919 }
  0xe8   : > { %v1066_v10 = vsel %vm1050_vm6, %v2416_v19, %v920_v8 }
  0xe9   : > { %v1099_v17 = vsel %vm1083_vm7, %v1066_v10, %v1033_v11  ;;  %v1037_v25 = vpop.permute.xlu2 %1036 }
  0xeb   : > { %1941 = vmatmul.msk.bf16.gmra.mxu3 %vm1156_vm8, %v2590_v16  ;;  %1970 = vmatmul.msk.bf16.gmra.mxu2 %vm1156_vm8, %v1097_v5 }
  0xef   : > { %v1043_v21 = vpop.permute.xlu1 %1042 }
  0xf0   : > { %v2603_v12 = vsel %vm1083_vm7, %v1076_v47, %v1043_v21 }
  0xf3   : > { %v1035_v19 = vpop.permute.xlu0 %1034 }
  0xf4   : > { %v1101_v20 = vsel %vm1083_vm7, %v1068_v30, %v1035_v19 }
  0xf5   : > { %1931 = vmatmul.msk.bf16.gmra.mxu0 %vm1156_vm8, %v1097_v5  ;;  %1952 = vmatmul.msk.bf16.gmra.mxu1 %vm1156_vm8, %v1097_v5 }
  0xfb   : > { %1958 = vmatmul.msk.bf16.vlgmr.msrb.gmra.mxu3 %vm1156_vm8, %v2603_v12  ;;  %1971 = vmatmul.msk.bf16.gmra.mxu2 %vm1156_vm8, %v1099_v17 }
 0x100   : > { %v924_v53 = vpop.permute.xlu1 %923 }
 0x101   : > { %v1070_v1 = vsel %vm1050_vm6, %v2484_v4, %v924_v53 }
 0x102   : > { %v1103_v32 = vsel %vm1083_vm7, %v1070_v1, %v1037_v25 }
 0x105   : > { %1932 = vmatmul.msk.bf16.gmra.mxu0 %vm1156_vm8, %v1099_v17  ;;  %1953 = vmatmul.msk.bf16.gmra.mxu1 %vm1156_vm8, %v1099_v17 }
 0x108   : > { %v1305_v22 = vpop.f32.mrf.mxu1  ;;  %v1039_v33 = vpop.permute.xlu1 %1038 }
 0x109   : > { %v928_v44 = vpop.permute.xlu2 %927 }
 0x10a   : > { %v1074_v49 = vsel %vm1050_vm6, %v2529_v23, %v928_v44 }
 0x10b   : > { %1959 = vmatmul.msk.bf16.gmra.mxu3 %vm1156_vm8, %v2547_v42  ;;  %1972 = vmatmul.msk.bf16.gmra.mxu2 %vm1156_vm8, %v1101_v20  ;;  %v926_v56 = vpop.permute.xlu0 %925 }
 0x10c   : > { %v1072_v4 = vsel %vm1050_vm6, %v2502_v34, %v926_v56 }
 0x10d   : > { %v1105_v36 = vsel %vm1083_vm7, %v1072_v4, %v1039_v33 }
 0x110   : > { %v1307_v26 = vpop.f32.mrf.mxu1 }
 0x113   : > { %v1041_v13 = vpop.permute.xlu0 %1040 }
 0x114   : > { %v1107_v41 = vsel %vm1083_vm7, %v1074_v49, %v1041_v13 }
 0x115   : > { %1933 = vmatmul.msk.bf16.gmra.mxu0 %vm1156_vm8, %v1101_v20  ;;  %1954 = vmatmul.msk.bf16.gmra.mxu1 %vm1156_vm8, %v1101_v20 }
 0x11b   : > { %1960 = vmatmul.msk.bf16.gmra.mxu3 %vm1156_vm8, %v2564_v52  ;;  %1973 = vmatmul.msk.bf16.gmra.mxu2 %vm1156_vm8, %v1103_v32 }
 0x122   : > { %v1202_v28 = vpop.f32.mrf.mxu0  ;;  %v1310_v29 = vpop.f32.mrf.mxu1 }
 0x123   : > { %v1306_v50 = vadd.f32 %v1305_v22, %v1202_v28 }
 0x125   : > { %1934 = vmatmul.msk.bf16.gmra.mxu0 %vm1156_vm8, %v1103_v32  ;;  %1955 = vmatmul.msk.bf16.gmra.mxu1 %vm1156_vm8, %v1103_v32 }
 0x12a   : > { %v1204_v2 = vpop.f32.mrf.mxu0  ;;  %v1312_v24 = vpop.f32.mrf.mxu1 }
 0x12b   : > { %1961 = vmatmul.msk.bf16.gmra.mxu3 %vm1156_vm8, %v2577_v62  ;;  %1974 = vmatmul.msk.bf16.gmra.mxu2 %vm1156_vm8, %v1105_v36  ;;  %v1308_v27 = vadd.f32 %v1307_v26, %v1204_v2 }
 0x12e   : > { %v1409_v39 = vpop.f32.mrf.mxu2 }
 0x12f   : > { %v1489_v43 = vadd.f32 %v1409_v39, %v1306_v50 }
 0x131   : > { %v2639_v34 = vadd.f32 %v2636_v38, %v1489_v43 }
 0x132   : > { %v1207_v46 = vpop.f32.mrf.mxu0  ;;  %v1315_v63 = vpop.f32.mrf.mxu1 }
 0x133   : > { %v1554_v48 = vpack.c.bf16 %v2639_v34, %v2639_v34  ;;  %v1311_v23 = vadd.f32 %v1310_v29, %v1207_v46 }
 0x135   : > { %1587 = vst.msk [vmem:[%s2646_s17] sm:$0xf] %vm1586_vm9, %v1554_v48  ;;  %1935 = vmatmul.msk.bf16.gmra.mxu0 %vm1156_vm8, %v1105_v36  ;;  %1956 = vmatmul.msk.bf16.gmra.mxu1 %vm1156_vm8, %v1105_v36 }
 0x136   : > { %v1411_v51 = vpop.f32.mrf.mxu2 }
 0x137   : > { %v1490_v54 = vadd.f32 %v1411_v51, %v1308_v27 }
 0x139   : > { %v2658_v57 = vadd.f32 %v2636_v38, %v1490_v54 }
 0x13a   : > { %v1209_v45 = vpop.f32.mrf.mxu0  ;;  %v1317_v55 = vpop.f32.mrf.mxu1 }
 0x13b   : > { %v1555_v59 = vpack.c.bf16 %v2658_v57, %v2658_v57  ;;  %1975 = vmatmul.msk.bf16.gmra.mxu2 %vm1156_vm8, %v1107_v41  ;;  %1978 = vmatmul.msk.bf16.vlgmr.msra.gmra.mxu3 %vm1156_vm8, %v2564_v52  ;;  %v1313_v35 = vadd.f32 %v1312_v24, %v1209_v45 }
 0x13d   : > { %1588 = vst.msk [vmem:[%s2646_s17 + $0x4] sm:$0xf] %vm1586_vm9, %v1555_v59 }
 0x13e   : > { %v2667_v40 = vpop.f32.mrf.mxu3  ;;  %v1414_v14 = vpop.f32.mrf.mxu2 }
 0x13f   : > { %v1491_v60 = vadd.f32 %v1414_v14, %v1311_v23 }
 0x141   : > { %v2670_v61 = vadd.f32 %v2636_v38, %v1491_v60 }
 0x142   : > { %v1212_v15 = vpop.f32.mrf.mxu0  ;;  %v1320_v0 = vpop.f32.mrf.mxu1 }
 0x143   : > { %v1556_v58 = vpack.c.bf16 %v2670_v61, %v2670_v61  ;;  %v1316_v47 = vadd.f32 %v1315_v63, %v1212_v15 }
 0x145   : > { %1589 = vst.msk [vmem:[%s2646_s17 + $0x8] sm:$0xf] %vm1586_vm9, %v1556_v58  ;;  %1936 = vmatmul.msk.bf16.gmra.mxu0 %vm1156_vm8, %v1107_v41  ;;  %1957 = vmatmul.msk.bf16.gmra.mxu1 %vm1156_vm8, %v1107_v41 }
 0x146   : > { %v2678_v52 = vpop.f32.mrf.mxu3  ;;  %v1416_v31 = vpop.f32.mrf.mxu2 }
 0x147   : > { %v1492_v6 = vadd.f32 %v1416_v31, %v1313_v35 }
 0x149   : > { %v2681_v7 = vadd.f32 %v2636_v38, %v1492_v6 }
 0x14a   : > { %v1214_v5 = vpop.f32.mrf.mxu0  ;;  %v1322_v8 = vpop.f32.mrf.mxu1 }
 0x14b   : > { %v1557_v9 = vpack.c.bf16 %v2681_v7, %v2681_v7  ;;  %1976 = vmatmul.msk.bf16.gmra.mxu2 %vm1156_vm8, %v2603_v12  ;;  %1979 = vmatmul.msk.bf16.gmra.mxu3 %vm1156_vm8, %v2577_v62  ;;  %v1318_v20 = vadd.f32 %v1317_v55, %v1214_v5 }
 0x14d   : > { %1590 = vst.msk [vmem:[%s2646_s17 + $0xc] sm:$0xf] %vm1586_vm9, %v1557_v9 }
 0x14e   : > { %v2691_v21 = vpop.f32.mrf.mxu3  ;;  %v1419_v10 = vpop.f32.mrf.mxu2 }
 0x14f   : > { %v1493_v11 = vadd.f32 %v1419_v10, %v1316_v47 }
 0x151   : > { %v2694_v17 = vadd.f32 %v2636_v38, %v1493_v11 }
 0x152   : > { %v1217_v18 = vpop.f32.mrf.mxu0  ;;  %v1325_v30 = vpop.f32.mrf.mxu1 }
 0x153   : > { %v1558_v19 = vpack.c.bf16 %v2694_v17, %v2694_v17 }
 0x155   : > { %1591 = vst.msk [vmem:[%s2646_s17 + $0x10] sm:$0xf] %vm1586_vm9, %v1558_v19  ;;  %1937 = vmatmul.msk.bf16.gmra.mxu0 %vm1156_vm8, %v2603_v12  ;;  %v1321_v12 = vadd.f32 %v1320_v0, %v1217_v18 }
 0x156   : > { %v2702_v62 = vpop.f32.mrf.mxu3  ;;  %v1421_v22 = vpop.f32.mrf.mxu2 }
 0x157   : > { %v1494_v53 = vadd.f32 %v1421_v22, %v1318_v20 }
 0x159   : > { %v2705_v1 = vadd.f32 %v2636_v38, %v1494_v53 }
 0x15a   : > { %v1219_v25 = vpop.f32.mrf.mxu0  ;;  %v1327_v26 = vpop.f32.mrf.mxu1 }
 0x15b   : > { %v1559_v32 = vpack.c.bf16 %v2705_v1, %v2705_v1  ;;  %1977 = vmatmul.msk.bf16.gmra.mxu2 %vm1156_vm8, %v2547_v42  ;;  %1980 = vmatmul.msk.bf16.gmra.mxu3 %vm1156_vm8, %v2590_v16  ;;  %v1323_v42 = vadd.f32 %v1322_v8, %v1219_v25 }
 0x15d   : > { %1592 = vst.msk [vmem:[%s2646_s17 + $0x14] sm:$0xf] %vm1586_vm9, %v1559_v32 }
 0x15e   : > { %v2715_v56 = vpop.f32.mrf.mxu3  ;;  %v1424_v28 = vpop.f32.mrf.mxu2 }
 0x15f   : > { %v1495_v29 = vadd.f32 %v1424_v28, %v1321_v12 }
 0x161   : > { %v2718_v4 = vadd.f32 %v2636_v38, %v1495_v29 }
 0x162   : > { %v1222_v33 = vpop.f32.mrf.mxu0  ;;  %v1330_v36 = vpop.f32.mrf.mxu1 }
 0x163   : > { %v1560_v2 = vpack.c.bf16 %v2718_v4, %v2718_v4  ;;  %v1326_v46 = vadd.f32 %v1325_v30, %v1222_v33 }
 0x165   : > { %1593 = vst.msk [vmem:[%s2646_s17 + $0x18] sm:$0xf] %vm1586_vm9, %v1560_v2 }
 0x166   : > { %v2724_v16 = vpop.f32.mrf.mxu3  ;;  %v1426_v24 = vpop.f32.mrf.mxu2 }
 0x167   : > { %v1496_v50 = vadd.f32 %v1426_v24, %v1323_v42 }
 0x169   : > { %v2727_v37 = vadd.f32 %v2636_v38, %v1496_v50 }
 0x16a   : > { %v1224_v39 = vpop.f32.mrf.mxu0  ;;  %v1332_v44 = vpop.f32.mrf.mxu1 }
 0x16b   : > { %v1561_v43 = vpack.c.bf16 %v2727_v37, %v2727_v37  ;;  %1981 = vmatmul.msk.bf16.gmra.mxu3 %vm1156_vm8, %v2480_v3  ;;  %v1328_v54 = vadd.f32 %v1327_v26, %v1224_v39 }
 0x16d   : > { %1594 = vst.msk [vmem:[%s2646_s17 + $0x1c] sm:$0xf] %vm1586_vm9, %v1561_v43 }
 0x16e   : > { %v2735_v63 = vpop.f32.mrf.mxu3  ;;  %v1429_v48 = vpop.f32.mrf.mxu2 }
 0x16f   : > { %v1497_v27 = vadd.f32 %v1429_v48, %v1326_v46 }
 0x171   : > { %v2738_v49 = vadd.f32 %v2636_v38, %v1497_v27 }
 0x172   : > { %v1227_v13 = vpop.f32.mrf.mxu0  ;;  %v1335_v41 = vpop.f32.mrf.mxu1 }
 0x173   : > { %v1562_v51 = vpack.c.bf16 %v2738_v49, %v2738_v49  ;;  %v1331_v60 = vadd.f32 %v1330_v36, %v1227_v13 }
 0x175   : > { %1595 = vst.msk [vmem:[%s2646_s17 + $0x20] sm:$0xf] %vm1586_vm9, %v1562_v51 }
 0x176   : > { %v2744_v3 = vpop.f32.mrf.mxu3  ;;  %v1431_v45 = vpop.f32.mrf.mxu2 }
 0x177   : > { %v1498_v55 = vadd.f32 %v1431_v45, %v1328_v54 }
 0x179   : > { %v2747_v59 = vadd.f32 %v2636_v38, %v1498_v55 }
 0x17a   : > { %v1229_v23 = vpop.f32.mrf.mxu0  ;;  %v1337_v58 = vpop.f32.mrf.mxu1 }
 0x17b   : > { %v1563_v14 = vpack.c.bf16 %v2747_v59, %v2747_v59  ;;  %v1333_v8 = vadd.f32 %v1332_v44, %v1229_v23 }
 0x17d   : > { %1596 = vst.msk [vmem:[%s2646_s17 + $0x24] sm:$0xf] %vm1586_vm9, %v1563_v14 }
 0x17e   : > { %v2753_v15 = vpop.f32.mrf.mxu3  ;;  %v1434_v0 = vpop.f32.mrf.mxu2 }
 0x17f   : > { %v1499_v35 = vadd.f32 %v1434_v0, %v1331_v60 }
 0x181   : > { %v2756_v31 = vadd.f32 %v2636_v38, %v1499_v35 }
 0x182   : > { %v1232_v6 = vpop.f32.mrf.mxu0  ;;  %v1340_v11 = vpop.f32.mrf.mxu1 }
 0x183   : > { %v1564_v5 = vpack.c.bf16 %v2756_v31, %v2756_v31  ;;  %v1336_v20 = vadd.f32 %v1335_v41, %v1232_v6 }
 0x185   : > { %1597 = vst.msk [vmem:[%s2646_s17 + $0x28] sm:$0xf] %vm1586_vm9, %v1564_v5 }
 0x186   : > { %v2762_v9 = vpop.f32.mrf.mxu3  ;;  %v1436_v47 = vpop.f32.mrf.mxu2 }
 0x187   : > { %v1500_v10 = vadd.f32 %v1436_v47, %v1333_v8 }
 0x189   : > { %v2765_v18 = vadd.f32 %v2636_v38, %v1500_v10 }
 0x18a   : > { %v1234_v30 = vpop.f32.mrf.mxu0  ;;  %v1342_v12 = vpop.f32.mrf.mxu1 }
 0x18b   : > { %v1565_v19 = vpack.c.bf16 %v2765_v18, %v2765_v18  ;;  %v1338_v29 = vadd.f32 %v1337_v58, %v1234_v30 }
 0x18d   : > { %1598 = vst.msk [vmem:[%s2646_s17 + $0x2c] sm:$0xf] %vm1586_vm9, %v1565_v19 }
 0x18e   : > { %v2771_v22 = vpop.f32.mrf.mxu3  ;;  %v1439_v53 = vpop.f32.mrf.mxu2 }
 0x18f   : > { %v1501_v25 = vadd.f32 %v1439_v53, %v1336_v20 }
 0x191   : > { %v2774_v26 = vadd.f32 %v2636_v38, %v1501_v25 }
 0x192   : > { %v1237_v32 = vpop.f32.mrf.mxu0  ;;  %v1345_v43 = vpop.f32.mrf.mxu1 }
 0x193   : > { %v1566_v28 = vpack.c.bf16 %v2774_v26, %v2774_v26  ;;  %v1341_v39 = vadd.f32 %v1340_v11, %v1237_v32 }
 0x195   : > { %1599 = vst.msk [vmem:[%s2646_s17 + $0x30] sm:$0xf] %vm1586_vm9, %v1566_v28 }
 0x196   : > { %v2780_v33 = vpop.f32.mrf.mxu3  ;;  %v1441_v36 = vpop.f32.mrf.mxu2 }
 0x197   : > { %v1502_v2 = vadd.f32 %v1441_v36, %v1338_v29  ;;  %v1620_v29 = vsel %vm1050_vm6, %v2658_v57, 0.0  ;;  %v1366_v36 = vadd.f32 %v2753_v15, %v2667_v40 }
 0x199   : > { %v2783_v42 = vadd.f32 %v2636_v38, %v1502_v2 }
 0x19a   : > { %v1239_v24 = vpop.f32.mrf.mxu0  ;;  %v1347_v55 = vpop.f32.mrf.mxu1 }
 0x19b   : > { %v1567_v50 = vpack.c.bf16 %v2783_v42, %v2783_v42  ;;  %v1343_v54 = vadd.f32 %v1342_v12, %v1239_v24 }
 0x19d   : > { %1600 = vst.msk [vmem:[%s2646_s17 + $0x34] sm:$0xf] %vm1586_vm9, %v1567_v50 }
 0x19e   : > { %v2789_v44 = vpop.f32.mrf.mxu3  ;;  %v1444_v46 = vpop.f32.mrf.mxu2 }
 0x19f   : > { %v1503_v48 = vadd.f32 %v1444_v46, %v1341_v39  ;;  %v1619_v39 = vsel %vm1050_vm6, %v2639_v34, 0.0 }
 0x1a1   : > { %v2792_v27 = vadd.f32 %v2636_v38, %v1503_v48 }
 0x1a2   : > { %v1242_v13 = vpop.f32.mrf.mxu0  ;;  %v1350_v8 = vpop.f32.mrf.mxu1 }
 0x1a3   : > { %v1568_v51 = vpack.c.bf16 %v2792_v27, %v2792_v27  ;;  %v1346_v58 = vadd.f32 %v1345_v43, %v1242_v13  ;;  %v1622_v43 = vsel %vm1050_vm6, %v2670_v61, 0.0  ;;  %v1621_v13 = vadd.f32 %v1620_v29, %v1619_v39 }
 0x1a4   : > { %v1636_v39 = vsel %vm1050_vm6, %v2747_v59, 0.0 }
 0x1a5   : > { %1601 = vst.msk [vmem:[%s2646_s17 + $0x38] sm:$0xf] %vm1586_vm9, %v1568_v51  ;;  %v1624_v51 = vsel %vm1050_vm6, %v2681_v7, 0.0 }
 0x1a6   : > { %v2798_v41 = vpop.f32.mrf.mxu3  ;;  %v1446_v45 = vpop.f32.mrf.mxu2 }
 0x1a7   : > { %v1504_v23 = vadd.f32 %v1446_v45, %v1343_v54  ;;  %v1623_v54 = vadd.f32 %v1622_v43, %v1621_v13  ;;  %v1626_v45 = vsel %vm1050_vm6, %v2694_v17, 0.0  ;;  %v1371_v43 = vadd.f32 %v2771_v22, %v2691_v21 }
 0x1a8   : > { %v1640_v21 = vsel %vm1050_vm6, %v2765_v18, 0.0 }
 0x1a9   : > { %v2801_v14 = vadd.f32 %v2636_v38, %v1504_v23 }
 0x1aa   : > { %v1244_v60 = vpop.f32.mrf.mxu0  ;;  %v1352_v12 = vpop.f32.mrf.mxu1 }
 0x1ab   : > { %v1569_v0 = vpack.c.bf16 %v2801_v14, %v2801_v14  ;;  %v1348_v30 = vadd.f32 %v1347_v55, %v1244_v60 }
 0x1ad   : > { %1602 = vst.msk [vmem:[%s2646_s17 + $0x3c] sm:$0xf] %vm1586_vm9, %v1569_v0  ;;  %v1625_v0 = vadd.f32 %v1624_v51, %v1623_v54 }
 0x1ae   : > { %v2807_v35 = vpop.f32.mrf.mxu3  ;;  %v1449_v6 = vpop.f32.mrf.mxu2 }
 0x1af   : > { %v1505_v5 = vadd.f32 %v1449_v6, %v1346_v58  ;;  %v1628_v58 = vsel %vm1050_vm6, %v2705_v1, 0.0  ;;  %v1368_v6 = vadd.f32 %v2762_v9, %v2678_v52  ;;  %v1632_v52 = vsel %vm1050_vm6, %v2727_v37, 0.0 }
 0x1b1   : > { %v2810_v47 = vadd.f32 %v2636_v38, %v1505_v5 }
 0x1b2   : > { %v1247_v10 = vpop.f32.mrf.mxu0  ;;  %v1355_v5 = vpop.f32.mrf.mxu1 }
 0x1b3   : > { %v1570_v11 = vpack.c.bf16 %v2810_v47, %v2810_v47  ;;  %v1351_v2 = vadd.f32 %v1350_v8, %v1247_v10  ;;  %v1627_v10 = vadd.f32 %v1626_v45, %v1625_v0  ;;  %v1638_v45 = vsel %vm1050_vm6, %v2756_v31, 0.0 }
 0x1b5   : > { %1603 = vst.msk [vmem:[%s2646_s17 + $0x40] sm:$0xf] %vm1586_vm9, %v1570_v11  ;;  %v1629_v29 = vadd.f32 %v1628_v58, %v1627_v10 }
 0x1b6   : > { %v2816_v19 = vpop.f32.mrf.mxu3  ;;  %v1451_v20 = vpop.f32.mrf.mxu2 }
 0x1b7   : > { %v1506_v53 = vadd.f32 %v1451_v20, %v1348_v30  ;;  %v1630_v20 = vsel %vm1050_vm6, %v2718_v4, 0.0 }
 0x1b9   : > { %v2819_v25 = vadd.f32 %v2636_v38, %v1506_v53 }
 0x1ba   : > { %v1249_v32 = vpop.f32.mrf.mxu0  ;;  %v1357_v58 = vpop.f32.mrf.mxu1 }
 0x1bb   : > { %v1571_v28 = vpack.c.bf16 %v2819_v25, %v2819_v25  ;;  %v1353_v8 = vadd.f32 %v1352_v12, %v1249_v32  ;;  %v1631_v12 = vadd.f32 %v1630_v20, %v1629_v29  ;;  %v1644_v20 = vsel %vm1050_vm6, %v2783_v42, 0.0 }
 0x1bd   : > { %1604 = vst.msk [vmem:[%s2646_s17 + $0x44] sm:$0xf] %vm1586_vm9, %v1571_v28 }
 0x1be   : > { %v1454_v24 = vpop.f32.mrf.mxu2  ;;  %v1469_v50 = vpop.f32.mrf.mxu3 }
 0x1bf   : > { %v1507_v46 = vadd.f32 %v1454_v24, %v1351_v2  ;;  %v1513_v48 = vadd.f32 %v1469_v50, %v1366_v36  ;;  %v1634_v36 = vsel %vm1050_vm6, %v2738_v49, 0.0  ;;  %v1633_v50 = vadd.f32 %v1632_v52, %v1631_v12 }
 0x1c0   : > { %v1646_v12 = vsel %vm1050_vm6, %v2792_v27, 0.0 }
 0x1c1   : > { %v2836_v40 = vadd.f32 %v2636_v38, %v1507_v46  ;;  %v2839_v15 = vadd.f32 %v2636_v38, %v1513_v48  ;;  %v1635_v13 = vadd.f32 %v1634_v36, %v1633_v50 }
 0x1c2   : > { %v1252_v60 = vpop.f32.mrf.mxu0 }
 0x1c3   : > { %v1572_v55 = vpack.c.bf16 %v2836_v40, %v2836_v40  ;;  %v1578_v23 = vpack.c.bf16 %v2839_v15, %v2839_v15  ;;  %v1356_v46 = vadd.f32 %v1355_v5, %v1252_v60  ;;  %v1637_v0 = vadd.f32 %v1636_v39, %v1635_v13 }
 0x1c4   : > { %v1642_v5 = vsel %vm1050_vm6, %v2774_v26, 0.0 }
 0x1c5   : > { %1605 = vst.msk [vmem:[%s2646_s17 + $0x48] sm:$0xf] %vm1586_vm9, %v1572_v55 }
 0x1c6   : > { %1611 = vst.msk [vmem:[%s2646_s17 + $0x60] sm:$0xf] %vm1586_vm9, %v1578_v23  ;;  %v1456_v11 = vpop.f32.mrf.mxu2  ;;  %v1471_v30 = vpop.f32.mrf.mxu3 }
 0x1c7   : > { %v1508_v53 = vadd.f32 %v1456_v11, %v1353_v8  ;;  %v1514_v28 = vadd.f32 %v1471_v30, %v1368_v6  ;;  %v1639_v6 = vadd.f32 %v1638_v45, %v1637_v0  ;;  %v1373_v30 = vadd.f32 %v2780_v33, %v2702_v62 }
 0x1c8   : > { %v1648_v33 = vsel %vm1050_vm6, %v2801_v14, 0.0  ;;  %v1376_v45 = vadd.f32 %v2789_v44, %v2715_v56 }
 0x1c9   : > { %v2860_v9 = vadd.f32 %v2636_v38, %v1508_v53  ;;  %v2863_v32 = vadd.f32 %v2636_v38, %v1514_v28  ;;  %v1641_v11 = vadd.f32 %v1640_v21, %v1639_v6  ;;  %v1654_v6 = vsel %vm1050_vm6, %v2836_v40, 0.0 }
 0x1ca   : > { %v1254_v48 = vpop.f32.mrf.mxu0 }
 0x1cb   : > { %v1573_v2 = vpack.c.bf16 %v2860_v9, %v2860_v9  ;;  %v1579_v24 = vpack.c.bf16 %v2863_v32, %v2863_v32  ;;  %v1358_v53 = vadd.f32 %v1357_v58, %v1254_v48  ;;  %v1643_v28 = vadd.f32 %v1642_v5, %v1641_v11 }
 0x1cc   : > { %v1650_v48 = vsel %vm1050_vm6, %v2810_v47, 0.0  ;;  %v1656_v56 = vsel %vm1050_vm6, %v2860_v9, 0.0 }
 0x1cd   : > { %1606 = vst.msk [vmem:[%s2646_s17 + $0x4c] sm:$0xf] %vm1586_vm9, %v1573_v2 }
 0x1ce   : > { %1612 = vst.msk [vmem:[%s2646_s17 + $0x64] sm:$0xf] %vm1586_vm9, %v1579_v24  ;;  %v1459_v51 = vpop.f32.mrf.mxu2  ;;  %v1474_v54 = vpop.f32.mrf.mxu3  ;;  %v1645_v24 = vadd.f32 %v1644_v20, %v1643_v28 }
 0x1cf   : > { %v1509_v55 = vadd.f32 %v1459_v51, %v1356_v46  ;;  %v1515_v23 = vadd.f32 %v1474_v54, %v1371_v43  ;;  %v1360_v46 = vpop.f32.mrf.mxu1 }
 0x1d0   : > { %v1647_v43 = vadd.f32 %v1646_v12, %v1645_v24 }
 0x1d1   : > { %v2884_v22 = vadd.f32 %v2636_v38, %v1509_v55  ;;  %v2887_v60 = vadd.f32 %v2636_v38, %v1515_v23  ;;  %v1652_v55 = vsel %vm1050_vm6, %v2819_v25, 0.0 }
 0x1d2   : > { %v1257_v62 = vpop.f32.mrf.mxu0  ;;  %v1649_v54 = vadd.f32 %v1648_v33, %v1647_v43 }
 0x1d3   : > { %v1574_v8 = vpack.c.bf16 %v2884_v22, %v2884_v22  ;;  %v1580_v10 = vpack.c.bf16 %v2887_v60, %v2887_v60  ;;  %v1361_v23 = vadd.f32 %v1360_v46, %v1257_v62 }
 0x1d4   : > { %v1651_v0 = vadd.f32 %v1650_v48, %v1649_v54 }
 0x1d5   : > { %1607 = vst.msk [vmem:[%s2646_s17 + $0x50] sm:$0xf] %vm1586_vm9, %v1574_v8 }
 0x1d6   : > { %1613 = vst.msk [vmem:[%s2646_s17 + $0x68] sm:$0xf] %vm1586_vm9, %v1580_v10  ;;  %v1461_v29 = vpop.f32.mrf.mxu2  ;;  %v1476_v52 = vpop.f32.mrf.mxu3  ;;  %v1653_v10 = vadd.f32 %v1652_v55, %v1651_v0 }
 0x1d7   : > { %v1510_v36 = vadd.f32 %v1461_v29, %v1358_v53  ;;  %v1516_v2 = vadd.f32 %v1476_v52, %v1373_v30  ;;  %v1658_v53 = vsel %vm1050_vm6, %v2884_v22, 0.0  ;;  %v1362_v12 = vpop.f32.mrf.mxu1 }
 0x1d8   : > { %v1655_v30 = vadd.f32 %v1654_v6, %v1653_v10 }
 0x1d9   : > { %v2908_v50 = vadd.f32 %v2636_v38, %v1510_v36  ;;  %v2911_v39 = vadd.f32 %v2636_v38, %v1516_v2  ;;  %v1378_v36 = vadd.f32 %v2798_v41, %v2724_v16 }
 0x1da   : > { %v1259_v20 = vpop.f32.mrf.mxu0  ;;  %v1657_v52 = vadd.f32 %v1656_v56, %v1655_v30  ;;  %v1670_v30 = vsel %vm1050_vm6, %v2887_v60, 0.0 }
 0x1db   : > { %v1575_v13 = vpack.c.bf16 %v2908_v50, %v2908_v50  ;;  %v1581_v51 = vpack.c.bf16 %v2911_v39, %v2911_v39  ;;  %v1660_v2 = vsel %vm1050_vm6, %v2908_v50, 0.0  ;;  %v1363_v24 = vadd.f32 %v1362_v12, %v1259_v20 }
 0x1dc   : > { %v1659_v62 = vadd.f32 %v1658_v53, %v1657_v52  ;;  %v1672_v20 = vsel %vm1050_vm6, %v2911_v39, 0.0 }
 0x1dd   : > { %1608 = vst.msk [vmem:[%s2646_s17 + $0x54] sm:$0xf] %vm1586_vm9, %v1575_v13 }
 0x1de   : > { %1614 = vst.msk [vmem:[%s2646_s17 + $0x6c] sm:$0xf] %vm1586_vm9, %v1581_v51  ;;  %v1464_v58 = vpop.f32.mrf.mxu2  ;;  %v1479_v21 = vpop.f32.mrf.mxu3  ;;  %v1661_v51 = vadd.f32 %v1660_v2, %v1659_v62 }
 0x1df   : > { %v1511_v5 = vadd.f32 %v1464_v58, %v1361_v23  ;;  %v1517_v8 = vadd.f32 %v1479_v21, %v1376_v45  ;;  %v1381_v58 = vadd.f32 %v2807_v35, %v2735_v63  ;;  %v1666_v21 = vsel %vm1050_vm6, %v2839_v15, 0.0 }
 0x1e1   : > { %v2932_v44 = vadd.f32 %v2636_v38, %v1511_v5  ;;  %v2935_v11 = vadd.f32 %v2636_v38, %v1517_v8  ;;  %v1668_v8 = vsel %vm1050_vm6, %v2863_v32, 0.0 }
 0x1e3   : > { %v1576_v28 = vpack.c.bf16 %v2932_v44, %v2932_v44  ;;  %v1582_v29 = vpack.c.bf16 %v2935_v11, %v2935_v11  ;;  %v1662_v46 = vsel %vm1050_vm6, %v2932_v44, 0.0  ;;  %v1674_v52 = vsel %vm1050_vm6, %v2935_v11, 0.0 }
 0x1e4   : > { %v1663_v54 = vadd.f32 %v1662_v46, %v1661_v51 }
 0x1e5   : > { %1609 = vst.msk [vmem:[%s2646_s17 + $0x58] sm:$0xf] %vm1586_vm9, %v1576_v28 }
 0x1e6   : > { %1615 = vst.msk [vmem:[%s2646_s17 + $0x70] sm:$0xf] %vm1586_vm9, %v1582_v29  ;;  %v1466_v33 = vpop.f32.mrf.mxu2  ;;  %v1481_v43 = vpop.f32.mrf.mxu3  ;;  %v1383_v29 = vadd.f32 %v2816_v19, %v2744_v3 }
 0x1e7   : > { %v1512_v48 = vadd.f32 %v1466_v33, %v1363_v24  ;;  %v1518_v13 = vadd.f32 %v1481_v43, %v1378_v36 }
 0x1e9   : > { %v2954_v16 = vadd.f32 %v2636_v38, %v1512_v48  ;;  %v2957_v41 = vadd.f32 %v2636_v38, %v1518_v13 }
 0x1eb   : > { %v1577_v45 = vpack.c.bf16 %v2954_v16, %v2954_v16  ;;  %v1664_v55 = vsel %vm1050_vm6, %v2954_v16, 0.0  ;;  %v1583_v23 = vpack.c.bf16 %v2957_v41, %v2957_v41  ;;  %v1676_v2 = vsel %vm1050_vm6, %v2957_v41, 0.0 }
 0x1ec   : > { %v1665_v0 = vadd.f32 %v1664_v55, %v1663_v54 }
 0x1ed   : > { %1610 = vst.msk [vmem:[%s2646_s17 + $0x5c] sm:$0xf] %vm1586_vm9, %v1577_v45 }
 0x1ee   : > { %v1667_v6 = vadd.f32 %v1666_v21, %v1665_v0  ;;  %1616 = vst.msk [vmem:[%s2646_s17 + $0x74] sm:$0xf] %vm1586_vm9, %v1583_v23  ;;  %v1484_v5 = vpop.f32.mrf.mxu3 }
 0x1ef   : > { %v1519_v10 = vadd.f32 %v1484_v5, %v1381_v58 }
 0x1f0   : > { %v1669_v56 = vadd.f32 %v1668_v8, %v1667_v6 }
 0x1f1   : > { %v2978_v63 = vadd.f32 %v2636_v38, %v1519_v10 }
 0x1f2   : > { %v1671_v35 = vadd.f32 %v1670_v30, %v1669_v56 }
 0x1f3   : > { %v1584_v53 = vpack.c.bf16 %v2978_v63, %v2978_v63  ;;  %v1678_v33 = vsel %vm1050_vm6, %v2978_v63, 0.0 }
 0x1f4   : > { %v1673_v28 = vadd.f32 %v1672_v20, %v1671_v35 }
 0x1f5   : > { %1617 = vst.msk [vmem:[%s2646_s17 + $0x78] sm:$0xf] %vm1586_vm9, %v1584_v53 }
 0x1f6   : > { %v1675_v12 = vadd.f32 %v1674_v52, %v1673_v28  ;;  %v1486_v36 = vpop.f32.mrf.mxu3 }
 0x1f7   : > { %v1520_v24 = vadd.f32 %v1486_v36, %v1383_v29 }
 0x1f8   : > { %v1677_v62 = vadd.f32 %v1676_v2, %v1675_v12 }
 0x1f9   : > { %v2995_v43 = vadd.f32 %v2636_v38, %v1520_v24 }
 0x1fa   : > { %v1679_v46 = vadd.f32 %v1678_v33, %v1677_v62 }
 0x1fb   : > { %v1585_v3 = vpack.c.bf16 %v2995_v43, %v2995_v43  ;;  %v1680_v19 = vsel %vm1050_vm6, %v2995_v43, 0.0 }
 0x1fc   : > { %v1681_v48 = vadd.f32 %v1680_v19, %v1679_v46 }
 0x1fd   : > { %1618 = vst.msk [vmem:[%s2646_s17 + $0x7c] sm:$0xf] %vm1586_vm9, %v1585_v3 }
 0x1fe   : > { %v1682_v13 = vrot.slane %v1681_v48, 4 }
 0x200   : > { %v1683_v51 = vadd.f32 %v1682_v13, %v1681_v48 }
 0x202   : > { %v1684_v54 = vrot.slane %v1683_v51, 2 }
 0x204   : > { %v1685_v45 = vadd.f32 %v1684_v54, %v1683_v51 }
 0x206   : > { %v1686_v55 = vrot.slane %v1685_v45, 1 }
 0x208   : > { %v3003_v23 = vadd.f32 %v1686_v55, %v1685_v45 }
 0x20a   : > { %v3006_v38 = vmul.f32 0.00390625, %v3003_v23 }
 0x20c   : > { %v1689_v0 = vsub.f32 %v2639_v34, %v3006_v38  ;;  %v1690_v58 = vsub.f32 %v2658_v57, %v3006_v38  ;;  %v1691_v21 = vsub.f32 %v2670_v61, %v3006_v38  ;;  %v1692_v6 = vsub.f32 %v2681_v7, %v3006_v38 }
 0x20d   : > { %v1693_v10 = vsub.f32 %v2694_v17, %v3006_v38  ;;  %v1694_v30 = vsub.f32 %v2705_v1, %v3006_v38  ;;  %v1695_v61 = vsub.f32 %v2718_v4, %v3006_v38  ;;  %v1696_v17 = vsub.f32 %v2727_v37, %v3006_v38 }
 0x20e   : > { %v1721_v5 = vmul.f32 %v1689_v0, %v1689_v0  ;;  %v1722_v8 = vmul.f32 %v1690_v58, %v1690_v58  ;;  %v1723_v56 = vmul.f32 %v1691_v21, %v1691_v21  ;;  %v1724_v35 = vmul.f32 %v1692_v6, %v1692_v6 }
 0x20f   : > { %v1725_v53 = vmul.f32 %v1693_v10, %v1693_v10  ;;  %v1726_v29 = vmul.f32 %v1694_v30, %v1694_v30  ;;  %v1697_v12 = vsub.f32 %v2738_v49, %v3006_v38  ;;  %v1727_v36 = vmul.f32 %v1695_v61, %v1695_v61 }
 0x210   : > { %v1753_v34 = vsel %vm1050_vm6, %v1721_v5, 0.0  ;;  %v1754_v57 = vsel %vm1050_vm6, %v1722_v8, 0.0  ;;  %v1756_v7 = vsel %vm1050_vm6, %v1723_v56, 0.0  ;;  %v1758_v52 = vsel %vm1050_vm6, %v1724_v35, 0.0 }
 0x211   : > { %v1755_v20 = vadd.f32 %v1754_v57, %v1753_v34  ;;  %v1760_v2 = vsel %vm1050_vm6, %v1725_v53, 0.0  ;;  %v1698_v4 = vsub.f32 %v2747_v59, %v3006_v38  ;;  %v1728_v62 = vmul.f32 %v1696_v17, %v1696_v17 }
 0x212   : > { %v1762_v33 = vsel %vm1050_vm6, %v1726_v29, 0.0  ;;  %v1699_v37 = vsub.f32 %v2756_v31, %v3006_v38  ;;  %v1729_v3 = vmul.f32 %v1697_v12, %v1697_v12  ;;  %v1764_v19 = vsel %vm1050_vm6, %v1727_v36, 0.0 }
 0x213   : > { %v1757_v28 = vadd.f32 %v1756_v7, %v1755_v20  ;;  %v1700_v49 = vsub.f32 %v2765_v18, %v3006_v38  ;;  %v1730_v13 = vmul.f32 %v1698_v4, %v1698_v4  ;;  %v1766_v51 = vsel %vm1050_vm6, %v1728_v62, 0.0 }
 0x214   : > { %v1701_v59 = vsub.f32 %v2774_v26, %v3006_v38  ;;  %v1731_v45 = vmul.f32 %v1699_v37, %v1699_v37  ;;  %v1768_v55 = vsel %vm1050_vm6, %v1729_v3, 0.0  ;;  %v1702_v31 = vsub.f32 %v2783_v42, %v3006_v38 }
 0x215   : > { %v1759_v1 = vadd.f32 %v1758_v52, %v1757_v28  ;;  %v1732_v58 = vmul.f32 %v1700_v49, %v1700_v49  ;;  %v1770_v21 = vsel %vm1050_vm6, %v1730_v13, 0.0  ;;  %v1703_v18 = vsub.f32 %v2792_v27, %v3006_v38 }
 0x216   : > { %v1733_v5 = vmul.f32 %v1701_v59, %v1701_v59  ;;  %v1772_v8 = vsel %vm1050_vm6, %v1731_v45, 0.0  ;;  %v1704_v26 = vsub.f32 %v2801_v14, %v3006_v38  ;;  %v1734_v56 = vmul.f32 %v1702_v31, %v1702_v31 }
 0x217   : > { %v1761_v24 = vadd.f32 %v1760_v2, %v1759_v1  ;;  %v1774_v30 = vsel %vm1050_vm6, %v1732_v58, 0.0  ;;  %v1705_v42 = vsub.f32 %v2810_v47, %v3006_v38  ;;  %v1735_v34 = vmul.f32 %v1703_v18, %v1703_v18 }
 0x218   : > { %v1776_v57 = vsel %vm1050_vm6, %v1733_v5, 0.0  ;;  %v1706_v27 = vsub.f32 %v2819_v25, %v3006_v38  ;;  %v1736_v61 = vmul.f32 %v1704_v26, %v1704_v26  ;;  %v1778_v53 = vsel %vm1050_vm6, %v1734_v56, 0.0 }
 0x219   : > { %v1763_v46 = vadd.f32 %v1762_v33, %v1761_v24  ;;  %v1707_v14 = vsub.f32 %v2836_v40, %v3006_v38  ;;  %v1737_v28 = vmul.f32 %v1705_v42, %v1705_v42  ;;  %v1780_v17 = vsel %vm1050_vm6, %v1735_v34, 0.0 }
 0x21a   : > { %v1708_v47 = vsub.f32 %v2860_v9, %v3006_v38  ;;  %v1738_v52 = vmul.f32 %v1706_v27, %v1706_v27  ;;  %v1782_v1 = vsel %vm1050_vm6, %v1736_v61, 0.0  ;;  %v1709_v25 = vsub.f32 %v2884_v22, %v3006_v38 }
 0x21b   : > { %v1765_v48 = vadd.f32 %v1764_v19, %v1763_v46  ;;  %v1739_v36 = vmul.f32 %v1707_v14, %v1707_v14  ;;  %v1784_v2 = vsel %vm1050_vm6, %v1737_v28, 0.0  ;;  %v1710_v40 = vsub.f32 %v2908_v50, %v3006_v38 }
 0x21c   : > { %v1740_v4 = vmul.f32 %v1708_v47, %v1708_v47  ;;  %v1786_v62 = vsel %vm1050_vm6, %v1738_v52, 0.0  ;;  %v1711_v9 = vsub.f32 %v2932_v44, %v3006_v38  ;;  %v1741_v46 = vmul.f32 %v1709_v25, %v1709_v25 }
 0x21d   : > { %v1767_v54 = vadd.f32 %v1766_v51, %v1765_v48  ;;  %v1788_v37 = vsel %vm1050_vm6, %v1739_v36, 0.0  ;;  %v1712_v22 = vsub.f32 %v2954_v16, %v3006_v38  ;;  %v1742_v19 = vmul.f32 %v1710_v40, %v1710_v40 }
 0x21e   : > { %v1790_v48 = vsel %vm1050_vm6, %v1740_v4, 0.0  ;;  %v1713_v50 = vsub.f32 %v2839_v15, %v3006_v38  ;;  %v1743_v13 = vmul.f32 %v1711_v9, %v1711_v9  ;;  %v1792_v51 = vsel %vm1050_vm6, %v1741_v46, 0.0 }
 0x21f   : > { %v1769_v0 = vadd.f32 %v1768_v55, %v1767_v54  ;;  %v1714_v44 = vsub.f32 %v2863_v32, %v3006_v38  ;;  %v1744_v59 = vmul.f32 %v1712_v22, %v1712_v22  ;;  %v1794_v45 = vsel %vm1050_vm6, %v1742_v19, 0.0 }
 0x220   : > { %v1715_v16 = vsub.f32 %v2887_v60, %v3006_v38  ;;  %v1796_v31 = vsel %vm1050_vm6, %v1743_v13, 0.0  ;;  %v1716_v15 = vsub.f32 %v2911_v39, %v3006_v38  ;;  %v1717_v32 = vsub.f32 %v2935_v11, %v3006_v38 }
 0x221   : > { %v1771_v6 = vadd.f32 %v1770_v21, %v1769_v0  ;;  %v1745_v0 = vmul.f32 %v1713_v50, %v1713_v50  ;;  %v1746_v21 = vmul.f32 %v1714_v44, %v1714_v44  ;;  %v1718_v60 = vsub.f32 %v2957_v41, %v3006_v38 }
 0x222   : > { %v1747_v5 = vmul.f32 %v1715_v16, %v1715_v16  ;;  %v1748_v26 = vmul.f32 %v1716_v15, %v1716_v15  ;;  %v1719_v39 = vsub.f32 %v2978_v63, %v3006_v38  ;;  %v1720_v11 = vsub.f32 %v2995_v43, %v3006_v38 }
 0x223   : > { %v1773_v10 = vadd.f32 %v1772_v8, %v1771_v6  ;;  %v1798_v6 = vsel %vm1050_vm6, %v1744_v59, 0.0  ;;  %v1800_v8 = vsel %vm1050_vm6, %v1745_v0, 0.0  ;;  %v1802_v56 = vsel %vm1050_vm6, %v1746_v21, 0.0 }
 0x224   : > { %v1804_v42 = vsel %vm1050_vm6, %v1747_v5, 0.0  ;;  %v1751_v41 = vmul.f32 %v1719_v39, %v1719_v39 }
 0x225   : > { %v1775_v35 = vadd.f32 %v1774_v30, %v1773_v10 }
 0x226   : > { %v1812_v28 = vsel %vm1050_vm6, %v1751_v41, 0.0 }
 0x227   : > { %v1777_v20 = vadd.f32 %v1776_v57, %v1775_v35  ;;  %v1749_v35 = vmul.f32 %v1717_v32, %v1717_v32  ;;  %v1750_v57 = vmul.f32 %v1718_v60, %v1718_v60 }
 0x229   : > { %v1779_v7 = vadd.f32 %v1778_v53, %v1777_v20  ;;  %v1806_v20 = vsel %vm1050_vm6, %v1748_v26, 0.0  ;;  %v1808_v61 = vsel %vm1050_vm6, %v1749_v35, 0.0  ;;  %v1810_v14 = vsel %vm1050_vm6, %v1750_v57, 0.0 }
 0x22b   : > { %v1781_v29 = vadd.f32 %v1780_v17, %v1779_v7  ;;  %v1752_v7 = vmul.f32 %v1720_v11, %v1720_v11 }
 0x22d   : > { %v1783_v12 = vadd.f32 %v1782_v1, %v1781_v29  ;;  %v1814_v29 = vsel %vm1050_vm6, %v1752_v7, 0.0 }
 0x22f   : > { %v1785_v24 = vadd.f32 %v1784_v2, %v1783_v12 }
 0x231   : > { %v1787_v33 = vadd.f32 %v1786_v62, %v1785_v24 }
 0x233   : > { %v1789_v3 = vadd.f32 %v1788_v37, %v1787_v33 }
 0x235   : > { %v1791_v49 = vadd.f32 %v1790_v48, %v1789_v3 }
 0x237   : > { %v1793_v54 = vadd.f32 %v1792_v51, %v1791_v49 }
 0x239   : > { %v1795_v55 = vadd.f32 %v1794_v45, %v1793_v54 }
 0x23b   : > { %v1797_v58 = vadd.f32 %v1796_v31, %v1795_v55 }
 0x23d   : > { %v1799_v18 = vadd.f32 %v1798_v6, %v1797_v58 }
 0x23f   : > { %v1801_v10 = vadd.f32 %v1800_v8, %v1799_v18 }
 0x241   : > { %v1803_v30 = vadd.f32 %v1802_v56, %v1801_v10 }
 0x243   : > { %v1805_v34 = vadd.f32 %v1804_v42, %v1803_v30 }
 0x245   : > { %v1807_v27 = vadd.f32 %v1806_v20, %v1805_v34 }
 0x247   : > { %v1809_v53 = vadd.f32 %v1808_v61, %v1807_v27 }
 0x249   : > { %v1811_v63 = vadd.f32 %v1810_v14, %v1809_v53 }
 0x24b   : > { %v1813_v17 = vadd.f32 %v1812_v28, %v1811_v63 }
 0x24d   : > { %v1815_v47 = vadd.f32 %v1814_v29, %v1813_v17 }
 0x24f   : > { %v1816_v43 = vrot.slane %v1815_v47, 4 }
 0x251   : > { %v1817_v38 = vadd.f32 %v1816_v43, %v1815_v47 }
 0x253   : > { %v1818_v52 = vrot.slane %v1817_v38, 2 }
 0x255   : > { %v1819_v1 = vadd.f32 %v1818_v52, %v1817_v38 }
 0x257   : > { %v1820_v12 = vrot.slane %v1819_v1, 1 }
 0x259   : > { %v1821_v25 = vadd.f32 %v1820_v12, %v1819_v1 }
 0x25b   : > { %v1823_v36 = vsel %vm675_vm0, %v3003_v23, %v1821_v25 }
 0x25c   : > { %1825 = vst.msk [vmem:[%s208_s21] sm:$0x3] %vm1824_vm10, %v1823_v36 }
 0x25d PF: > { %s15_s15 = sadd.s32 1, %s2092_s15  }
 0x25e   : > { %p12_p4 = scmp.ge.s32.totalorder %s15_s15, 4  }
 0x260   :  { %14 = sbr.rel (!%p12_p4) target bundleno = 1 (0x1), region = 74 }

</bundles_post_ra>
